<compile_context>
chip_gen: v7x
topology: tpu7x:2x2x1
jax: 0.10.0
libtpu: 0.0.40
codegen_flags: <defaults>
</compile_context>

<pallas_src>
import functools

import jax
import jax.numpy as jnp
from jax.experimental import pallas as pl
from jax.experimental.pallas import tpu as pltpu


def _interval_conv_kernel(c_ref, e_ref, w_ref, wabs_ref, b_ref, lo_ref, hi_ref, *,
                          kh, kw, stride, toh, ow, compute_dtype):
    """One (batch, OH-block, Cout-block) tile of the interval conv.

    c_ref / e_ref : (Hp, Wp, Cin)       full padded image (squeezed batch dim)
    w_ref / wabs_ref : (KH, KW, Cin, tCout)   W and |W| tiles
    b_ref         : (1, tCout)          bias tile (zero in padded channels)
    lo_ref/hi_ref : (toh, ow, tCout)    lower / upper bound tiles (NHWC)
    """
    cin = c_ref.shape[-1]
    cout = lo_ref.shape[-1]
    m = toh * ow
    span_h = (toh - 1) * stride + 1
    span_w = (ow - 1) * stride + 1
    h0 = pl.program_id(1) * (toh * stride)        # first padded input row of block

    acc_c = jnp.zeros((m, cout), jnp.float32)
    acc_e = jnp.zeros((m, cout), jnp.float32)

    # Shifted-matmul conv: for each kernel tap (i, j) take the corresponding
    # shifted input window and accumulate a (M, Cin) x (Cin, Cout) matmul.
    for i in range(kh):
        for j in range(kw):
            xc = c_ref[pl.ds(h0 + i, span_h), pl.ds(j, span_w), :]
            xe = e_ref[pl.ds(h0 + i, span_h), pl.ds(j, span_w), :]
            if stride > 1:
                xc = xc[::stride, ::stride, :]
                xe = xe[::stride, ::stride, :]
            xc = xc.reshape(m, cin).astype(compute_dtype)
            xe = xe.reshape(m, cin).astype(compute_dtype)
            w_ij = w_ref[i, j].astype(compute_dtype)       # (Cin, tCout)
            wa_ij = wabs_ref[i, j].astype(compute_dtype)   # (Cin, tCout), |W|
            acc_c += jnp.dot(xc, w_ij, preferred_element_type=jnp.float32)
            acc_e += jnp.dot(xe, wa_ij, preferred_element_type=jnp.float32)

    # f32 epilogue (kept f32 even if matmul inputs are bf16; v5e-friendly).
    c_out = acc_c + b_ref[...]
    lo_ref[...] = (c_out - acc_e).reshape(toh, ow, cout).astype(lo_ref.dtype)
    hi_ref[...] = (c_out + acc_e).reshape(toh, ow, cout).astype(hi_ref.dtype)


@functools.partial(
    jax.jit,
    static_argnames=("stride", "padding", "rows_per_tile", "compute_dtype"))
def interval_conv2d(c, e, weight, bias, *, stride=1, padding=1,
                    rows_per_tile=512, compute_dtype=jnp.float32):
    """Interval forward through a Conv2d.

    c, e   : (N, Cin, H, W)   center / error (NCHW, matches F.conv2d inputs)
    weight : (Cout, Cin, KH, KW)
    bias   : (Cout,)
    returns (lower, upper), each (N, Cout, OH, OW)
    """
    n, cin, h, w = c.shape
    cout, _, kh, kw = weight.shape
    oh = (h + 2 * padding - kh) // stride + 1
    ow = (w + 2 * padding - kw) // stride + 1

    # ---- output tiling -------------------------------------------------------
    ow_pad = -(-ow // 8) * 8                         # sublane-aligned output width
    toh = max(1, min(oh, rows_per_tile // ow_pad))   # output rows per grid step
    n_oh = -(-oh // toh)
    oh_pad = n_oh * toh
    cout_pad = -(-cout // 128) * 128                 # lane-dense output channels
    tcout = 256 if cout_pad % 256 == 0 else 128      # Cout tile (MXU N dimension)
    n_co = cout_pad // tcout

    # ---- inputs: NCHW -> NHWC, conv padding + extra zero rows/cols so every
    #      (grid-padded) output position reads in-bounds zeros -----------------
    hp = max(h + 2 * padding, (oh_pad - 1) * stride + kh)
    wp = max(w + 2 * padding, (ow_pad - 1) * stride + kw)
    pad_b = hp - h - padding
    pad_r = wp - w - padding

    def to_nhwc_padded(x):
        x = jnp.transpose(x, (0, 2, 3, 1))
        return jnp.pad(x, ((0, 0), (padding, pad_b), (padding, pad_r), (0, 0)))

    cn = to_nhwc_padded(c)
    en = to_nhwc_padded(e)

    # ---- weights: OIHW -> (KH, KW, Cin, Cout_pad); |W| hoisted out of kernel --
    w_hwio = jnp.transpose(weight, (2, 3, 1, 0))
    w_hwio = jnp.pad(w_hwio, ((0, 0), (0, 0), (0, 0), (0, cout_pad - cout)))
    w_abs = jnp.abs(w_hwio)
    b_mat = jnp.pad(bias, (0, cout_pad - cout)).reshape(1, cout_pad)

    kernel = functools.partial(
        _interval_conv_kernel, kh=kh, kw=kw, stride=stride,
        toh=toh, ow=ow_pad, compute_dtype=compute_dtype)

    # ---- VMEM budget / cost hint ----------------------------------------------
    f32b = 4
    vmem_bytes = f32b * (
        2 * 2 * hp * wp * cin                # c, e image blocks (double-buffered)
        + 2 * 2 * kh * kw * cin * tcout      # W, |W| tiles
        + 2 * tcout                          # bias
        + 2 * 2 * toh * ow_pad * tcout       # lo, hi output blocks
        + 2 * toh * ow_pad * tcout)          # in-kernel accumulators
    vmem_limit = min(max(int(1.5 * vmem_bytes) + (8 << 20), 32 << 20), 64 << 20)

    flops = 4 * n * oh_pad * ow_pad * (cin * kh * kw) * cout_pad
    bytes_accessed = f32b * (2 * n * hp * wp * cin
                             + 2 * kh * kw * cin * cout_pad + cout_pad
                             + 2 * n * oh_pad * ow_pad * cout_pad)

    grid = (n, n_oh, n_co)
    lo, hi = pl.pallas_call(
        kernel,
        out_shape=(
            jax.ShapeDtypeStruct((n, oh_pad, ow_pad, cout_pad), c.dtype),
            jax.ShapeDtypeStruct((n, oh_pad, ow_pad, cout_pad), c.dtype),
        ),
        grid_spec=pltpu.PrefetchScalarGridSpec(
            num_scalar_prefetch=0,
            grid=grid,
            in_specs=[
                pl.BlockSpec((None, hp, wp, cin), lambda b, y, co: (b, 0, 0, 0)),
                pl.BlockSpec((None, hp, wp, cin), lambda b, y, co: (b, 0, 0, 0)),
                pl.BlockSpec((kh, kw, cin, tcout), lambda b, y, co: (0, 0, 0, co)),
                pl.BlockSpec((kh, kw, cin, tcout), lambda b, y, co: (0, 0, 0, co)),
                pl.BlockSpec((1, tcout), lambda b, y, co: (0, co)),
            ],
            out_specs=[
                pl.BlockSpec((None, toh, ow_pad, tcout),
                             lambda b, y, co: (b, y, 0, co)),
                pl.BlockSpec((None, toh, ow_pad, tcout),
                             lambda b, y, co: (b, y, 0, co)),
            ],
        ),
        compiler_params=pltpu.CompilerParams(
            dimension_semantics=("parallel", "parallel", "parallel"),
            vmem_limit_bytes=vmem_limit),
        cost_estimate=pl.CostEstimate(flops=flops, transcendentals=0,
                                      bytes_accessed=bytes_accessed),
    )(cn, en, w_hwio, w_abs, b_mat)

    # TODO(synk): very large feature maps (e.g. >100x100 spatial with Cin>=256) need a
    # halo-tiled H axis / Cin reduction axis instead of one full padded image per step.
    lo = jnp.transpose(lo[:, :oh, :ow, :cout], (0, 3, 1, 2))
    hi = jnp.transpose(hi[:, :oh, :ow, :cout], (0, 3, 1, 2))
    return lo, hi


def _reference(c, e, weight, bias, stride, padding):
    dn = jax.lax.conv_dimension_numbers(c.shape, weight.shape, ("NCHW", "OIHW", "NCHW"))
    conv = lambda x, w: jax.lax.conv_general_dilated(
        x, w, window_strides=(stride, stride),
        padding=[(padding, padding), (padding, padding)], dimension_numbers=dn)
    c_out = conv(c, weight) + bias.reshape(1, -1, 1, 1)
    e_out = conv(e, jnp.abs(weight))
    return c_out - e_out, c_out + e_out


if __name__ == "__main__":
    key = jax.random.PRNGKey(0)
    k1, k2, k3, k4 = jax.random.split(key, 4)

    N, Cin, H, W = 2, 4, 16, 16
    Cout, KH, KW = 8, 3, 3
    stride, padding = 1, 1

    c = jax.random.normal(k1, (N, Cin, H, W), dtype=jnp.float32)
    # error term of an interval is nonnegative
    e = jnp.abs(jax.random.normal(k2, (N, Cin, H, W), dtype=jnp.float32))
    weight = jax.random.normal(k3, (Cout, Cin, KH, KW), dtype=jnp.float32) * 0.1
    bias = jax.random.normal(k4, (Cout,), dtype=jnp.float32) * 0.1

    lo, hi = interval_conv2d(c, e, weight, bias, stride=stride, padding=padding)
    jax.block_until_ready((lo, hi))

    lo_ref, hi_ref = _reference(c, e, weight, bias, stride, padding)
    assert lo.shape == lo_ref.shape and hi.shape == hi_ref.shape
    assert jnp.allclose(lo, lo_ref, atol=1e-3, rtol=1e-3)
    assert jnp.allclose(hi, hi_ref, atol=1e-3, rtol=1e-3)

    print("KERNEL_OK")
</pallas_src>

<mosaic_0001>
module attributes {stable_mosaic.version = 11 : i64} {
  func.func @_interval_conv_kernel(%arg0: i32, %arg1: i32, %arg2: i32, %arg3: memref<1x18x18x4xf32, #tpu.memory_space<vmem>>, %arg4: memref<1x18x18x4xf32, #tpu.memory_space<vmem>>, %arg5: memref<3x3x4x128xf32, #tpu.memory_space<vmem>>, %arg6: memref<3x3x4x128xf32, #tpu.memory_space<vmem>>, %arg7: memref<1x128xf32, #tpu.memory_space<vmem>>, %arg8: memref<1x16x16x128xf32, #tpu.memory_space<vmem>>, %arg9: memref<1x16x16x128xf32, #tpu.memory_space<vmem>>) attributes {dimension_semantics = [#tpu.dimension_semantics<parallel>, #tpu.dimension_semantics<parallel>, #tpu.dimension_semantics<parallel>], iteration_bounds = array<i64: 2, 1, 1>, scalar_prefetch = 0 : i64, scratch_operands = 0 : i64, tpu.core_type = #tpu.core_type<tc>, window_params = [{transform_indices = @transform_0, window_bounds = array<i64: 1, 18, 18, 4>}, {transform_indices = @transform_1, window_bounds = array<i64: 1, 18, 18, 4>}, {transform_indices = @transform_2, window_bounds = array<i64: 3, 3, 4, 128>}, {transform_indices = @transform_3, window_bounds = array<i64: 3, 3, 4, 128>}, {transform_indices = @transform_4, window_bounds = array<i64: 1, 128>}, {transform_indices = @transform_5, window_bounds = array<i64: 1, 16, 16, 128>}, {transform_indices = @transform_6, window_bounds = array<i64: 1, 16, 16, 128>}]} {
    %c16_i32 = arith.constant 16 : i32
    %0 = arith.muli %arg1, %c16_i32 : i32
    %cst = arith.constant 0.000000e+00 : f32
    %1 = vector.broadcast %cst : f32 to vector<256x128xf32>
    %cst_0 = arith.constant 0.000000e+00 : f32
    %2 = vector.broadcast %cst_0 : f32 to vector<256x128xf32>
    %c0_i32 = arith.constant 0 : i32
    %3 = arith.addi %0, %c0_i32 : i32
    %c0 = arith.constant 0 : index
    %4 = arith.index_cast %3 : i32 to index
    %c0_1 = arith.constant 0 : index
    %c0_2 = arith.constant 0 : index
    %5 = vector.load %arg3[%c0, %4, %c0_1, %c0_2] : memref<1x18x18x4xf32, #tpu.memory_space<vmem>>, vector<1x16x16x4xf32>
    %6 = vector.shape_cast %5 : vector<1x16x16x4xf32> to vector<16x16x4xf32>
    %c0_i32_3 = arith.constant 0 : i32
    %7 = arith.addi %0, %c0_i32_3 : i32
    %c0_4 = arith.constant 0 : index
    %8 = arith.index_cast %7 : i32 to index
    %c0_5 = arith.constant 0 : index
    %c0_6 = arith.constant 0 : index
    %9 = vector.load %arg4[%c0_4, %8, %c0_5, %c0_6] : memref<1x18x18x4xf32, #tpu.memory_space<vmem>>, vector<1x16x16x4xf32>
    %10 = vector.shape_cast %9 : vector<1x16x16x4xf32> to vector<16x16x4xf32>
    %11 = vector.shape_cast %6 : vector<16x16x4xf32> to vector<256x4xf32>
    %12 = vector.shape_cast %10 : vector<16x16x4xf32> to vector<256x4xf32>
    %c0_7 = arith.constant 0 : index
    %c0_8 = arith.constant 0 : index
    %c0_9 = arith.constant 0 : index
    %c0_10 = arith.constant 0 : index
    %13 = vector.load %arg5[%c0_7, %c0_8, %c0_9, %c0_10] : memref<3x3x4x128xf32, #tpu.memory_space<vmem>>, vector<1x1x4x128xf32>
    %14 = vector.shape_cast %13 : vector<1x1x4x128xf32> to vector<4x128xf32>
    %c0_11 = arith.constant 0 : index
    %c0_12 = arith.constant 0 : index
    %c0_13 = arith.constant 0 : index
    %c0_14 = arith.constant 0 : index
    %15 = vector.load %arg6[%c0_11, %c0_12, %c0_13, %c0_14] : memref<3x3x4x128xf32, #tpu.memory_space<vmem>>, vector<1x1x4x128xf32>
    %16 = vector.shape_cast %15 : vector<1x1x4x128xf32> to vector<4x128xf32>
    %cst_15 = arith.constant dense<0.000000e+00> : vector<256x128xf32>
    %17 = tpu.matmul %11, %14, %cst_15 {dimension_numbers = #tpu.dot_dimension_numbers<[1], [0], [0], [1], [0, 0, 1, 1], [], []>} : vector<256x4xf32>, vector<4x128xf32>, vector<256x128xf32> -> vector<256x128xf32>
    %18 = arith.addf %1, %17 : vector<256x128xf32>
    %cst_16 = arith.constant dense<0.000000e+00> : vector<256x128xf32>
    %19 = tpu.matmul %12, %16, %cst_16 {dimension_numbers = #tpu.dot_dimension_numbers<[1], [0], [0], [1], [0, 0, 1, 1], [], []>} : vector<256x4xf32>, vector<4x128xf32>, vector<256x128xf32> -> vector<256x128xf32>
    %20 = arith.addf %2, %19 : vector<256x128xf32>
    %c0_i32_17 = arith.constant 0 : i32
    %21 = arith.addi %0, %c0_i32_17 : i32
    %c0_18 = arith.constant 0 : index
    %22 = arith.index_cast %21 : i32 to index
    %c1 = arith.constant 1 : index
    %c0_19 = arith.constant 0 : index
    %23 = vector.load %arg3[%c0_18, %22, %c1, %c0_19] : memref<1x18x18x4xf32, #tpu.memory_space<vmem>>, vector<1x16x16x4xf32>
    %24 = vector.shape_cast %23 : vector<1x16x16x4xf32> to vector<16x16x4xf32>
    %c0_i32_20 = arith.constant 0 : i32
    %25 = arith.addi %0, %c0_i32_20 : i32
    %c0_21 = arith.constant 0 : index
    %26 = arith.index_cast %25 : i32 to index
    %c1_22 = arith.constant 1 : index
    %c0_23 = arith.constant 0 : index
    %27 = vector.load %arg4[%c0_21, %26, %c1_22, %c0_23] : memref<1x18x18x4xf32, #tpu.memory_space<vmem>>, vector<1x16x16x4xf32>
    %28 = vector.shape_cast %27 : vector<1x16x16x4xf32> to vector<16x16x4xf32>
    %29 = vector.shape_cast %24 : vector<16x16x4xf32> to vector<256x4xf32>
    %30 = vector.shape_cast %28 : vector<16x16x4xf32> to vector<256x4xf32>
    %c0_24 = arith.constant 0 : index
    %c1_25 = arith.constant 1 : index
    %c0_26 = arith.constant 0 : index
    %c0_27 = arith.constant 0 : index
    %31 = vector.load %arg5[%c0_24, %c1_25, %c0_26, %c0_27] : memref<3x3x4x128xf32, #tpu.memory_space<vmem>>, vector<1x1x4x128xf32>
    %32 = vector.shape_cast %31 : vector<1x1x4x128xf32> to vector<4x128xf32>
    %c0_28 = arith.constant 0 : index
    %c1_29 = arith.constant 1 : index
    %c0_30 = arith.constant 0 : index
    %c0_31 = arith.constant 0 : index
    %33 = vector.load %arg6[%c0_28, %c1_29, %c0_30, %c0_31] : memref<3x3x4x128xf32, #tpu.memory_space<vmem>>, vector<1x1x4x128xf32>
    %34 = vector.shape_cast %33 : vector<1x1x4x128xf32> to vector<4x128xf32>
    %cst_32 = arith.constant dense<0.000000e+00> : vector<256x128xf32>
    %35 = tpu.matmul %29, %32, %cst_32 {dimension_numbers = #tpu.dot_dimension_numbers<[1], [0], [0], [1], [0, 0, 1, 1], [], []>} : vector<256x4xf32>, vector<4x128xf32>, vector<256x128xf32> -> vector<256x128xf32>
    %36 = arith.addf %18, %35 : vector<256x128xf32>
    %cst_33 = arith.constant dense<0.000000e+00> : vector<256x128xf32>
    %37 = tpu.matmul %30, %34, %cst_33 {dimension_numbers = #tpu.dot_dimension_numbers<[1], [0], [0], [1], [0, 0, 1, 1], [], []>} : vector<256x4xf32>, vector<4x128xf32>, vector<256x128xf32> -> vector<256x128xf32>
    %38 = arith.addf %20, %37 : vector<256x128xf32>
    %c0_i32_34 = arith.constant 0 : i32
    %39 = arith.addi %0, %c0_i32_34 : i32
    %c0_35 = arith.constant 0 : index
    %40 = arith.index_cast %39 : i32 to index
    %c2 = arith.constant 2 : index
    %c0_36 = arith.constant 0 : index
    %41 = vector.load %arg3[%c0_35, %40, %c2, %c0_36] : memref<1x18x18x4xf32, #tpu.memory_space<vmem>>, vector<1x16x16x4xf32>
    %42 = vector.shape_cast %41 : vector<1x16x16x4xf32> to vector<16x16x4xf32>
    %c0_i32_37 = arith.constant 0 : i32
    %43 = arith.addi %0, %c0_i32_37 : i32
    %c0_38 = arith.constant 0 : index
    %44 = arith.index_cast %43 : i32 to index
    %c2_39 = arith.constant 2 : index
    %c0_40 = arith.constant 0 : index
    %45 = vector.load %arg4[%c0_38, %44, %c2_39, %c0_40] : memref<1x18x18x4xf32, #tpu.memory_space<vmem>>, vector<1x16x16x4xf32>
    %46 = vector.shape_cast %45 : vector<1x16x16x4xf32> to vector<16x16x4xf32>
    %47 = vector.shape_cast %42 : vector<16x16x4xf32> to vector<256x4xf32>
    %48 = vector.shape_cast %46 : vector<16x16x4xf32> to vector<256x4xf32>
    %c0_41 = arith.constant 0 : index
    %c2_42 = arith.constant 2 : index
    %c0_43 = arith.constant 0 : index
    %c0_44 = arith.constant 0 : index
    %49 = vector.load %arg5[%c0_41, %c2_42, %c0_43, %c0_44] : memref<3x3x4x128xf32, #tpu.memory_space<vmem>>, vector<1x1x4x128xf32>
    %50 = vector.shape_cast %49 : vector<1x1x4x128xf32> to vector<4x128xf32>
    %c0_45 = arith.constant 0 : index
    %c2_46 = arith.constant 2 : index
    %c0_47 = arith.constant 0 : index
    %c0_48 = arith.constant 0 : index
    %51 = vector.load %arg6[%c0_45, %c2_46, %c0_47, %c0_48] : memref<3x3x4x128xf32, #tpu.memory_space<vmem>>, vector<1x1x4x128xf32>
    %52 = vector.shape_cast %51 : vector<1x1x4x128xf32> to vector<4x128xf32>
    %cst_49 = arith.constant dense<0.000000e+00> : vector<256x128xf32>
    %53 = tpu.matmul %47, %50, %cst_49 {dimension_numbers = #tpu.dot_dimension_numbers<[1], [0], [0], [1], [0, 0, 1, 1], [], []>} : vector<256x4xf32>, vector<4x128xf32>, vector<256x128xf32> -> vector<256x128xf32>
    %54 = arith.addf %36, %53 : vector<256x128xf32>
    %cst_50 = arith.constant dense<0.000000e+00> : vector<256x128xf32>
    %55 = tpu.matmul %48, %52, %cst_50 {dimension_numbers = #tpu.dot_dimension_numbers<[1], [0], [0], [1], [0, 0, 1, 1], [], []>} : vector<256x4xf32>, vector<4x128xf32>, vector<256x128xf32> -> vector<256x128xf32>
    %56 = arith.addf %38, %55 : vector<256x128xf32>
    %c1_i32 = arith.constant 1 : i32
    %57 = arith.addi %0, %c1_i32 : i32
    %c0_51 = arith.constant 0 : index
    %58 = arith.index_cast %57 : i32 to index
    %c0_52 = arith.constant 0 : index
    %c0_53 = arith.constant 0 : index
    %59 = vector.load %arg3[%c0_51, %58, %c0_52, %c0_53] : memref<1x18x18x4xf32, #tpu.memory_space<vmem>>, vector<1x16x16x4xf32>
    %60 = vector.shape_cast %59 : vector<1x16x16x4xf32> to vector<16x16x4xf32>
    %c1_i32_54 = arith.constant 1 : i32
    %61 = arith.addi %0, %c1_i32_54 : i32
    %c0_55 = arith.constant 0 : index
    %62 = arith.index_cast %61 : i32 to index
    %c0_56 = arith.constant 0 : index
    %c0_57 = arith.constant 0 : index
    %63 = vector.load %arg4[%c0_55, %62, %c0_56, %c0_57] : memref<1x18x18x4xf32, #tpu.memory_space<vmem>>, vector<1x16x16x4xf32>
    %64 = vector.shape_cast %63 : vector<1x16x16x4xf32> to vector<16x16x4xf32>
    %65 = vector.shape_cast %60 : vector<16x16x4xf32> to vector<256x4xf32>
    %66 = vector.shape_cast %64 : vector<16x16x4xf32> to vector<256x4xf32>
    %c1_58 = arith.constant 1 : index
    %c0_59 = arith.constant 0 : index
    %c0_60 = arith.constant 0 : index
    %c0_61 = arith.constant 0 : index
    %67 = vector.load %arg5[%c1_58, %c0_59, %c0_60, %c0_61] : memref<3x3x4x128xf32, #tpu.memory_space<vmem>>, vector<1x1x4x128xf32>
    %68 = vector.shape_cast %67 : vector<1x1x4x128xf32> to vector<4x128xf32>
    %c1_62 = arith.constant 1 : index
    %c0_63 = arith.constant 0 : index
    %c0_64 = arith.constant 0 : index
    %c0_65 = arith.constant 0 : index
    %69 = vector.load %arg6[%c1_62, %c0_63, %c0_64, %c0_65] : memref<3x3x4x128xf32, #tpu.memory_space<vmem>>, vector<1x1x4x128xf32>
    %70 = vector.shape_cast %69 : vector<1x1x4x128xf32> to vector<4x128xf32>
    %cst_66 = arith.constant dense<0.000000e+00> : vector<256x128xf32>
    %71 = tpu.matmul %65, %68, %cst_66 {dimension_numbers = #tpu.dot_dimension_numbers<[1], [0], [0], [1], [0, 0, 1, 1], [], []>} : vector<256x4xf32>, vector<4x128xf32>, vector<256x128xf32> -> vector<256x128xf32>
    %72 = arith.addf %54, %71 : vector<256x128xf32>
    %cst_67 = arith.constant dense<0.000000e+00> : vector<256x128xf32>
    %73 = tpu.matmul %66, %70, %cst_67 {dimension_numbers = #tpu.dot_dimension_numbers<[1], [0], [0], [1], [0, 0, 1, 1], [], []>} : vector<256x4xf32>, vector<4x128xf32>, vector<256x128xf32> -> vector<256x128xf32>
    %74 = arith.addf %56, %73 : vector<256x128xf32>
    %c1_i32_68 = arith.constant 1 : i32
    %75 = arith.addi %0, %c1_i32_68 : i32
    %c0_69 = arith.constant 0 : index
    %76 = arith.index_cast %75 : i32 to index
    %c1_70 = arith.constant 1 : index
    %c0_71 = arith.constant 0 : index
    %77 = vector.load %arg3[%c0_69, %76, %c1_70, %c0_71] : memref<1x18x18x4xf32, #tpu.memory_space<vmem>>, vector<1x16x16x4xf32>
    %78 = vector.shape_cast %77 : vector<1x16x16x4xf32> to vector<16x16x4xf32>
    %c1_i32_72 = arith.constant 1 : i32
    %79 = arith.addi %0, %c1_i32_72 : i32
    %c0_73 = arith.constant 0 : index
    %80 = arith.index_cast %79 : i32 to index
    %c1_74 = arith.constant 1 : index
    %c0_75 = arith.constant 0 : index
    %81 = vector.load %arg4[%c0_73, %80, %c1_74, %c0_75] : memref<1x18x18x4xf32, #tpu.memory_space<vmem>>, vector<1x16x16x4xf32>
    %82 = vector.shape_cast %81 : vector<1x16x16x4xf32> to vector<16x16x4xf32>
    %83 = vector.shape_cast %78 : vector<16x16x4xf32> to vector<256x4xf32>
    %84 = vector.shape_cast %82 : vector<16x16x4xf32> to vector<256x4xf32>
    %c1_76 = arith.constant 1 : index
    %c1_77 = arith.constant 1 : index
    %c0_78 = arith.constant 0 : index
    %c0_79 = arith.constant 0 : index
    %85 = vector.load %arg5[%c1_76, %c1_77, %c0_78, %c0_79] : memref<3x3x4x128xf32, #tpu.memory_space<vmem>>, vector<1x1x4x128xf32>
    %86 = vector.shape_cast %85 : vector<1x1x4x128xf32> to vector<4x128xf32>
    %c1_80 = arith.constant 1 : index
    %c1_81 = arith.constant 1 : index
    %c0_82 = arith.constant 0 : index
    %c0_83 = arith.constant 0 : index
    %87 = vector.load %arg6[%c1_80, %c1_81, %c0_82, %c0_83] : memref<3x3x4x128xf32, #tpu.memory_space<vmem>>, vector<1x1x4x128xf32>
    %88 = vector.shape_cast %87 : vector<1x1x4x128xf32> to vector<4x128xf32>
    %cst_84 = arith.constant dense<0.000000e+00> : vector<256x128xf32>
    %89 = tpu.matmul %83, %86, %cst_84 {dimension_numbers = #tpu.dot_dimension_numbers<[1], [0], [0], [1], [0, 0, 1, 1], [], []>} : vector<256x4xf32>, vector<4x128xf32>, vector<256x128xf32> -> vector<256x128xf32>
    %90 = arith.addf %72, %89 : vector<256x128xf32>
    %cst_85 = arith.constant dense<0.000000e+00> : vector<256x128xf32>
    %91 = tpu.matmul %84, %88, %cst_85 {dimension_numbers = #tpu.dot_dimension_numbers<[1], [0], [0], [1], [0, 0, 1, 1], [], []>} : vector<256x4xf32>, vector<4x128xf32>, vector<256x128xf32> -> vector<256x128xf32>
    %92 = arith.addf %74, %91 : vector<256x128xf32>
    %c1_i32_86 = arith.constant 1 : i32
    %93 = arith.addi %0, %c1_i32_86 : i32
    %c0_87 = arith.constant 0 : index
    %94 = arith.index_cast %93 : i32 to index
    %c2_88 = arith.constant 2 : index
    %c0_89 = arith.constant 0 : index
    %95 = vector.load %arg3[%c0_87, %94, %c2_88, %c0_89] : memref<1x18x18x4xf32, #tpu.memory_space<vmem>>, vector<1x16x16x4xf32>
    %96 = vector.shape_cast %95 : vector<1x16x16x4xf32> to vector<16x16x4xf32>
    %c1_i32_90 = arith.constant 1 : i32
    %97 = arith.addi %0, %c1_i32_90 : i32
    %c0_91 = arith.constant 0 : index
    %98 = arith.index_cast %97 : i32 to index
    %c2_92 = arith.constant 2 : index
    %c0_93 = arith.constant 0 : index
    %99 = vector.load %arg4[%c0_91, %98, %c2_92, %c0_93] : memref<1x18x18x4xf32, #tpu.memory_space<vmem>>, vector<1x16x16x4xf32>
    %100 = vector.shape_cast %99 : vector<1x16x16x4xf32> to vector<16x16x4xf32>
    %101 = vector.shape_cast %96 : vector<16x16x4xf32> to vector<256x4xf32>
    %102 = vector.shape_cast %100 : vector<16x16x4xf32> to vector<256x4xf32>
    %c1_94 = arith.constant 1 : index
    %c2_95 = arith.constant 2 : index
    %c0_96 = arith.constant 0 : index
    %c0_97 = arith.constant 0 : index
    %103 = vector.load %arg5[%c1_94, %c2_95, %c0_96, %c0_97] : memref<3x3x4x128xf32, #tpu.memory_space<vmem>>, vector<1x1x4x128xf32>
    %104 = vector.shape_cast %103 : vector<1x1x4x128xf32> to vector<4x128xf32>
    %c1_98 = arith.constant 1 : index
    %c2_99 = arith.constant 2 : index
    %c0_100 = arith.constant 0 : index
    %c0_101 = arith.constant 0 : index
    %105 = vector.load %arg6[%c1_98, %c2_99, %c0_100, %c0_101] : memref<3x3x4x128xf32, #tpu.memory_space<vmem>>, vector<1x1x4x128xf32>
    %106 = vector.shape_cast %105 : vector<1x1x4x128xf32> to vector<4x128xf32>
    %cst_102 = arith.constant dense<0.000000e+00> : vector<256x128xf32>
    %107 = tpu.matmul %101, %104, %cst_102 {dimension_numbers = #tpu.dot_dimension_numbers<[1], [0], [0], [1], [0, 0, 1, 1], [], []>} : vector<256x4xf32>, vector<4x128xf32>, vector<256x128xf32> -> vector<256x128xf32>
    %108 = arith.addf %90, %107 : vector<256x128xf32>
    %cst_103 = arith.constant dense<0.000000e+00> : vector<256x128xf32>
    %109 = tpu.matmul %102, %106, %cst_103 {dimension_numbers = #tpu.dot_dimension_numbers<[1], [0], [0], [1], [0, 0, 1, 1], [], []>} : vector<256x4xf32>, vector<4x128xf32>, vector<256x128xf32> -> vector<256x128xf32>
    %110 = arith.addf %92, %109 : vector<256x128xf32>
    %c2_i32 = arith.constant 2 : i32
    %111 = arith.addi %0, %c2_i32 : i32
    %c0_104 = arith.constant 0 : index
    %112 = arith.index_cast %111 : i32 to index
    %c0_105 = arith.constant 0 : index
    %c0_106 = arith.constant 0 : index
    %113 = vector.load %arg3[%c0_104, %112, %c0_105, %c0_106] : memref<1x18x18x4xf32, #tpu.memory_space<vmem>>, vector<1x16x16x4xf32>
    %114 = vector.shape_cast %113 : vector<1x16x16x4xf32> to vector<16x16x4xf32>
    %c2_i32_107 = arith.constant 2 : i32
    %115 = arith.addi %0, %c2_i32_107 : i32
    %c0_108 = arith.constant 0 : index
    %116 = arith.index_cast %115 : i32 to index
    %c0_109 = arith.constant 0 : index
    %c0_110 = arith.constant 0 : index
    %117 = vector.load %arg4[%c0_108, %116, %c0_109, %c0_110] : memref<1x18x18x4xf32, #tpu.memory_space<vmem>>, vector<1x16x16x4xf32>
    %118 = vector.shape_cast %117 : vector<1x16x16x4xf32> to vector<16x16x4xf32>
    %119 = vector.shape_cast %114 : vector<16x16x4xf32> to vector<256x4xf32>
    %120 = vector.shape_cast %118 : vector<16x16x4xf32> to vector<256x4xf32>
    %c2_111 = arith.constant 2 : index
    %c0_112 = arith.constant 0 : index
    %c0_113 = arith.constant 0 : index
    %c0_114 = arith.constant 0 : index
    %121 = vector.load %arg5[%c2_111, %c0_112, %c0_113, %c0_114] : memref<3x3x4x128xf32, #tpu.memory_space<vmem>>, vector<1x1x4x128xf32>
    %122 = vector.shape_cast %121 : vector<1x1x4x128xf32> to vector<4x128xf32>
    %c2_115 = arith.constant 2 : index
    %c0_116 = arith.constant 0 : index
    %c0_117 = arith.constant 0 : index
    %c0_118 = arith.constant 0 : index
    %123 = vector.load %arg6[%c2_115, %c0_116, %c0_117, %c0_118] : memref<3x3x4x128xf32, #tpu.memory_space<vmem>>, vector<1x1x4x128xf32>
    %124 = vector.shape_cast %123 : vector<1x1x4x128xf32> to vector<4x128xf32>
    %cst_119 = arith.constant dense<0.000000e+00> : vector<256x128xf32>
    %125 = tpu.matmul %119, %122, %cst_119 {dimension_numbers = #tpu.dot_dimension_numbers<[1], [0], [0], [1], [0, 0, 1, 1], [], []>} : vector<256x4xf32>, vector<4x128xf32>, vector<256x128xf32> -> vector<256x128xf32>
    %126 = arith.addf %108, %125 : vector<256x128xf32>
    %cst_120 = arith.constant dense<0.000000e+00> : vector<256x128xf32>
    %127 = tpu.matmul %120, %124, %cst_120 {dimension_numbers = #tpu.dot_dimension_numbers<[1], [0], [0], [1], [0, 0, 1, 1], [], []>} : vector<256x4xf32>, vector<4x128xf32>, vector<256x128xf32> -> vector<256x128xf32>
    %128 = arith.addf %110, %127 : vector<256x128xf32>
    %c2_i32_121 = arith.constant 2 : i32
    %129 = arith.addi %0, %c2_i32_121 : i32
    %c0_122 = arith.constant 0 : index
    %130 = arith.index_cast %129 : i32 to index
    %c1_123 = arith.constant 1 : index
    %c0_124 = arith.constant 0 : index
    %131 = vector.load %arg3[%c0_122, %130, %c1_123, %c0_124] : memref<1x18x18x4xf32, #tpu.memory_space<vmem>>, vector<1x16x16x4xf32>
    %132 = vector.shape_cast %131 : vector<1x16x16x4xf32> to vector<16x16x4xf32>
    %c2_i32_125 = arith.constant 2 : i32
    %133 = arith.addi %0, %c2_i32_125 : i32
    %c0_126 = arith.constant 0 : index
    %134 = arith.index_cast %133 : i32 to index
    %c1_127 = arith.constant 1 : index
    %c0_128 = arith.constant 0 : index
    %135 = vector.load %arg4[%c0_126, %134, %c1_127, %c0_128] : memref<1x18x18x4xf32, #tpu.memory_space<vmem>>, vector<1x16x16x4xf32>
    %136 = vector.shape_cast %135 : vector<1x16x16x4xf32> to vector<16x16x4xf32>
    %137 = vector.shape_cast %132 : vector<16x16x4xf32> to vector<256x4xf32>
    %138 = vector.shape_cast %136 : vector<16x16x4xf32> to vector<256x4xf32>
    %c2_129 = arith.constant 2 : index
    %c1_130 = arith.constant 1 : index
    %c0_131 = arith.constant 0 : index
    %c0_132 = arith.constant 0 : index
    %139 = vector.load %arg5[%c2_129, %c1_130, %c0_131, %c0_132] : memref<3x3x4x128xf32, #tpu.memory_space<vmem>>, vector<1x1x4x128xf32>
    %140 = vector.shape_cast %139 : vector<1x1x4x128xf32> to vector<4x128xf32>
    %c2_133 = arith.constant 2 : index
    %c1_134 = arith.constant 1 : index
    %c0_135 = arith.constant 0 : index
    %c0_136 = arith.constant 0 : index
    %141 = vector.load %arg6[%c2_133, %c1_134, %c0_135, %c0_136] : memref<3x3x4x128xf32, #tpu.memory_space<vmem>>, vector<1x1x4x128xf32>
    %142 = vector.shape_cast %141 : vector<1x1x4x128xf32> to vector<4x128xf32>
    %cst_137 = arith.constant dense<0.000000e+00> : vector<256x128xf32>
    %143 = tpu.matmul %137, %140, %cst_137 {dimension_numbers = #tpu.dot_dimension_numbers<[1], [0], [0], [1], [0, 0, 1, 1], [], []>} : vector<256x4xf32>, vector<4x128xf32>, vector<256x128xf32> -> vector<256x128xf32>
    %144 = arith.addf %126, %143 : vector<256x128xf32>
    %cst_138 = arith.constant dense<0.000000e+00> : vector<256x128xf32>
    %145 = tpu.matmul %138, %142, %cst_138 {dimension_numbers = #tpu.dot_dimension_numbers<[1], [0], [0], [1], [0, 0, 1, 1], [], []>} : vector<256x4xf32>, vector<4x128xf32>, vector<256x128xf32> -> vector<256x128xf32>
    %146 = arith.addf %128, %145 : vector<256x128xf32>
    %c2_i32_139 = arith.constant 2 : i32
    %147 = arith.addi %0, %c2_i32_139 : i32
    %c0_140 = arith.constant 0 : index
    %148 = arith.index_cast %147 : i32 to index
    %c2_141 = arith.constant 2 : index
    %c0_142 = arith.constant 0 : index
    %149 = vector.load %arg3[%c0_140, %148, %c2_141, %c0_142] : memref<1x18x18x4xf32, #tpu.memory_space<vmem>>, vector<1x16x16x4xf32>
    %150 = vector.shape_cast %149 : vector<1x16x16x4xf32> to vector<16x16x4xf32>
    %c2_i32_143 = arith.constant 2 : i32
    %151 = arith.addi %0, %c2_i32_143 : i32
    %c0_144 = arith.constant 0 : index
    %152 = arith.index_cast %151 : i32 to index
    %c2_145 = arith.constant 2 : index
    %c0_146 = arith.constant 0 : index
    %153 = vector.load %arg4[%c0_144, %152, %c2_145, %c0_146] : memref<1x18x18x4xf32, #tpu.memory_space<vmem>>, vector<1x16x16x4xf32>
    %154 = vector.shape_cast %153 : vector<1x16x16x4xf32> to vector<16x16x4xf32>
    %155 = vector.shape_cast %150 : vector<16x16x4xf32> to vector<256x4xf32>
    %156 = vector.shape_cast %154 : vector<16x16x4xf32> to vector<256x4xf32>
    %c2_147 = arith.constant 2 : index
    %c2_148 = arith.constant 2 : index
    %c0_149 = arith.constant 0 : index
    %c0_150 = arith.constant 0 : index
    %157 = vector.load %arg5[%c2_147, %c2_148, %c0_149, %c0_150] : memref<3x3x4x128xf32, #tpu.memory_space<vmem>>, vector<1x1x4x128xf32>
    %158 = vector.shape_cast %157 : vector<1x1x4x128xf32> to vector<4x128xf32>
    %c2_151 = arith.constant 2 : index
    %c2_152 = arith.constant 2 : index
    %c0_153 = arith.constant 0 : index
    %c0_154 = arith.constant 0 : index
    %159 = vector.load %arg6[%c2_151, %c2_152, %c0_153, %c0_154] : memref<3x3x4x128xf32, #tpu.memory_space<vmem>>, vector<1x1x4x128xf32>
    %160 = vector.shape_cast %159 : vector<1x1x4x128xf32> to vector<4x128xf32>
    %cst_155 = arith.constant dense<0.000000e+00> : vector<256x128xf32>
    %161 = tpu.matmul %155, %158, %cst_155 {dimension_numbers = #tpu.dot_dimension_numbers<[1], [0], [0], [1], [0, 0, 1, 1], [], []>} : vector<256x4xf32>, vector<4x128xf32>, vector<256x128xf32> -> vector<256x128xf32>
    %162 = arith.addf %144, %161 : vector<256x128xf32>
    %cst_156 = arith.constant dense<0.000000e+00> : vector<256x128xf32>
    %163 = tpu.matmul %156, %160, %cst_156 {dimension_numbers = #tpu.dot_dimension_numbers<[1], [0], [0], [1], [0, 0, 1, 1], [], []>} : vector<256x4xf32>, vector<4x128xf32>, vector<256x128xf32> -> vector<256x128xf32>
    %164 = arith.addf %146, %163 : vector<256x128xf32>
    %c0_157 = arith.constant 0 : index
    %c0_158 = arith.constant 0 : index
    %165 = vector.load %arg7[%c0_157, %c0_158] : memref<1x128xf32, #tpu.memory_space<vmem>>, vector<1x128xf32>
    %166 = vector.broadcast %165 : vector<1x128xf32> to vector<256x128xf32>
    %167 = arith.addf %162, %166 : vector<256x128xf32>
    %168 = arith.subf %167, %164 : vector<256x128xf32>
    %169 = vector.shape_cast %168 : vector<256x128xf32> to vector<16x16x128xf32>
    %c0_159 = arith.constant 0 : index
    %c0_160 = arith.constant 0 : index
    %c0_161 = arith.constant 0 : index
    %c0_162 = arith.constant 0 : index
    %170 = vector.load %arg8[%c0_159, %c0_160, %c0_161, %c0_162] : memref<1x16x16x128xf32, #tpu.memory_space<vmem>>, vector<1x16x16x128xf32>
    %171 = vector.shape_cast %170 : vector<1x16x16x128xf32> to vector<16x16x128xf32>
    %172 = vector.shape_cast %169 : vector<16x16x128xf32> to vector<1x16x16x128xf32>
    tpu.vector_store %arg8[%c0_159, %c0_160, %c0_161, %c0_162], %172 {strides = array<i32>} : memref<1x16x16x128xf32, #tpu.memory_space<vmem>>, vector<1x16x16x128xf32>,
    %173 = arith.addf %167, %164 : vector<256x128xf32>
    %174 = vector.shape_cast %173 : vector<256x128xf32> to vector<16x16x128xf32>
    %c0_163 = arith.constant 0 : index
    %c0_164 = arith.constant 0 : index
    %c0_165 = arith.constant 0 : index
    %c0_166 = arith.constant 0 : index
    %175 = vector.load %arg9[%c0_163, %c0_164, %c0_165, %c0_166] : memref<1x16x16x128xf32, #tpu.memory_space<vmem>>, vector<1x16x16x128xf32>
    %176 = vector.shape_cast %175 : vector<1x16x16x128xf32> to vector<16x16x128xf32>
    %177 = vector.shape_cast %174 : vector<16x16x128xf32> to vector<1x16x16x128xf32>
    tpu.vector_store %arg9[%c0_163, %c0_164, %c0_165, %c0_166], %177 {strides = array<i32>} : memref<1x16x16x128xf32, #tpu.memory_space<vmem>>, vector<1x16x16x128xf32>,
    return
  }
  func.func @transform_0(%arg0: i32, %arg1: i32, %arg2: i32) -> (i32, i32, i32, i32) {
    %c0_i32 = arith.constant 0 : i32
    %c0_i32_0 = arith.constant 0 : i32
    %c0_i32_1 = arith.constant 0 : i32
    %c0_i32_2 = arith.constant 0 : i32
    return %arg0, %c0_i32, %c0_i32_0, %c0_i32_1 : i32, i32, i32, i32
  }
  func.func @transform_1(%arg0: i32, %arg1: i32, %arg2: i32) -> (i32, i32, i32, i32) {
    %c0_i32 = arith.constant 0 : i32
    %c0_i32_0 = arith.constant 0 : i32
    %c0_i32_1 = arith.constant 0 : i32
    %c0_i32_2 = arith.constant 0 : i32
    return %arg0, %c0_i32, %c0_i32_0, %c0_i32_1 : i32, i32, i32, i32
  }
  func.func @transform_2(%arg0: i32, %arg1: i32, %arg2: i32) -> (i32, i32, i32, i32) {
    %c0_i32 = arith.constant 0 : i32
    %c0_i32_0 = arith.constant 0 : i32
    %c0_i32_1 = arith.constant 0 : i32
    %c0_i32_2 = arith.constant 0 : i32
    return %c0_i32, %c0_i32_0, %c0_i32_1, %arg2 : i32, i32, i32, i32
  }
  func.func @transform_3(%arg0: i32, %arg1: i32, %arg2: i32) -> (i32, i32, i32, i32) {
    %c0_i32 = arith.constant 0 : i32
    %c0_i32_0 = arith.constant 0 : i32
    %c0_i32_1 = arith.constant 0 : i32
    %c0_i32_2 = arith.constant 0 : i32
    return %c0_i32, %c0_i32_0, %c0_i32_1, %arg2 : i32, i32, i32, i32
  }
  func.func @transform_4(%arg0: i32, %arg1: i32, %arg2: i32) -> (i32, i32) {
    %c0_i32 = arith.constant 0 : i32
    %c0_i32_0 = arith.constant 0 : i32
    return %c0_i32, %arg2 : i32, i32
  }
  func.func @transform_5(%arg0: i32, %arg1: i32, %arg2: i32) -> (i32, i32, i32, i32) {
    %c0_i32 = arith.constant 0 : i32
    %c0_i32_0 = arith.constant 0 : i32
    return %arg0, %arg1, %c0_i32, %arg2 : i32, i32, i32, i32
  }
  func.func @transform_6(%arg0: i32, %arg1: i32, %arg2: i32) -> (i32, i32, i32, i32) {
    %c0_i32 = arith.constant 0 : i32
    %c0_i32_0 = arith.constant 0 : i32
    return %arg0, %arg1, %c0_i32, %arg2 : i32, i32, i32, i32
  }
}

</mosaic_0001>

<bundles_post_ra>
// kernel: interval_conv2d.1
= control target key start
LH: loop header
LB: loop body
LE: loop exit
PB: predicated region body
PF: predicated region fallthrough
CT: control target
= control target key end

     0   :  { %s10808_s21 = smov 0   ;;  %s10810_s22 = smov 0   ;;  %s12822_s0 = inlined_call_operand.vmem [shape: f32[2,18,18,4], index: 0, kind: input, shape index: {}]   ;;  %s12823_s1 = inlined_call_operand.vmem [shape: f32[2,18,18,4], index: 1, kind: input, shape index: {}]   ;;  %s12824_s2 = inlined_call_operand.vmem [shape: f32[3,3,4,128], index: 2, kind: input, shape index: {}]   ;;  %s12825_s3 = inlined_call_operand.vmem [shape: f32[3,3,4,128], index: 3, kind: input, shape index: {}]   ;;  %s12826_s4 = inlined_call_operand.vmem [shape: f32[1,128], index: 4, kind: input, shape index: {}]   ;;  %s12827_s5 = inlined_call_operand.vmem [shape: f32[2,16,16,128], index: 5, kind: output, shape index: {0}]   ;;  %s12828_s6 = inlined_call_operand.vmem [shape: f32[2,16,16,128], index: 6, kind: output, shape index: {1}]  }
   0x1   :  { %s10812_s23 = smov 0  }
   0x2 LB: > { %s36_s24 = sadd.s32 1, %s10767_s22  ;;  %p7712_p0 = scmp.ge.s32.totalorder %s10771_s23, 1  ;;  %s10771_s23 = sphi %s10812_s23, %s17_s23   ;;  %s10767_s22 = sphi %s10810_s22, %s13058_s22   ;;  %s10763_s21 = sphi %s10808_s21, %s13057_s21  }
   0x3   : > { %p38_p1 = scmp.ge.s32.totalorder %s36_s24, 2  ;;  %p278_p2 = scmp.lt.s32.totalorder %s10771_s23, 3 }
   0x5   : > { %s13060_s24 = smov (%p38_p1, %s36_s24), 0  ;;  %p279_p3 = pnand %p7712_p0, %p278_p2 }
   0x7   : > { %282 = sbr.rel (%p279_p3) target bundleno = 812 (0x32c), region = 40 }
   0xe   : > { %v7719_v0 = vld [vmem:[%s12824_s2 + $0x4] sm:$0xf]  ;;  %vm629_vm0 = vcmask 1043456   ;;  %p345_p4 = scmp.lt.s32.totalorder %s10763_s21, 1  ;;  %v462_v2 = vld [vmem:[%s12824_s2] sm:$0xf] }
   0xf   : > { %v7720_v1 = vld [vmem:[%s12825_s3 + $0x4] sm:$0xf]  ;;  %9312 = vmatprep.subr.msk.mxu0 %vm629_vm0, %v7719_v0  ;;  %v463_v3 = vld [vmem:[%s12825_s3] sm:$0xf]  ;;  %vm532_vm1 = vcmask 31744  }
  0x10   : > { %9412 = vmatprep.subr.msk.mxu1 %vm629_vm0, %v7720_v1  ;;  %9313 = vmatpush3.msk.msra.mxu0 %vm629_vm0, %v7719_v0  ;;  %s13062_s21 = smov (!%p345_p4, %s10763_s21), 1  ;;  %v10870_v10 = vld [vmem:[%s12824_s2 + $0x8] sm:$0xf] }
  0x11   : > { %9413 = vmatpush3.msk.msra.mxu1 %vm629_vm0, %v7720_v1  ;;  %9362 = vmatprep.subr.msk.mxu0 %vm629_vm0, %v462_v2  ;;  %s10724_s9 = smul.u32 432, %s13062_s21  ;;  %v10875_v11 = vld [vmem:[%s12825_s3 + $0x8] sm:$0xf]  ;;  %s8716_s8 = sshll.u32 %s13062_s21, 8 }
  0x12   : > { %9462 = vmatprep.subr.msk.mxu1 %vm629_vm0, %v463_v3  ;;  %s12716_s13 = scalar_lea.vmem %s12828_s6, %s8716_s8 }
  0x13   : > { %s10850_s12 = scalar_lea.vmem %s12822_s0, %s10724_s9  ;;  %s10855_s15 = scalar_lea.vmem %s12823_s1, %s10724_s9 }
  0x14   : > { %v464_v4 = vld [vmem:[%s10850_s12 + $0x1] sm:$0xff]  ;;  %v465_v6 = vld [vmem:[%s10850_s12 + $0x9] sm:$0xff]  ;;  %v466_v8 = vld [vmem:[%s10850_s12 + $0x19] sm:$0xff] }
  0x15   : > { %v496_v5 = vld [vmem:[%s10855_s15 + $0x1] sm:$0xff]  ;;  %9314 = vmatprep.mubr.msk.f32.mxu0 %vm532_vm1, %v464_v4  ;;  %v497_v7 = vld [vmem:[%s10855_s15 + $0x9] sm:$0xff]  ;;  %v498_v9 = vld [vmem:[%s10855_s15 + $0x19] sm:$0xff] }
  0x16   : > { %9414 = vmatprep.mubr.msk.f32.mxu1 %vm532_vm1, %v496_v5  ;;  %9315 = vmatmul.mubr.msk.f32.vlgmr.msra.gmra.mrb[0].mxu0 %vm532_vm1, %v465_v6  ;;  %v467_v12 = vld [vmem:[%s10850_s12 + $0x21] sm:$0xff]  ;;  %v468_v14 = vld [vmem:[%s10850_s12 + $0x31] sm:$0xff]  ;;  %v469_v16 = vld [vmem:[%s10850_s12 + $0x39] sm:$0xff] }
  0x17   : > { %9415 = vmatmul.mubr.msk.f32.vlgmr.msra.gmra.mrb[0].mxu1 %vm532_vm1, %v497_v7  ;;  %9363 = vmatpush3.msk.msra.mxu0 %vm629_vm0, %v462_v2  ;;  %v499_v13 = vld [vmem:[%s10855_s15 + $0x21] sm:$0xff]  ;;  %v500_v15 = vld [vmem:[%s10855_s15 + $0x31] sm:$0xff]  ;;  %v501_v17 = vld [vmem:[%s10855_s15 + $0x39] sm:$0xff] }
  0x18   : > { %9463 = vmatpush3.msk.msra.mxu1 %vm629_vm0, %v463_v3  ;;  %9317 = vmatprep.mubr.msk.f32.mxu0 %vm532_vm1, %v466_v8  ;;  %v470_v18 = vld [vmem:[%s10850_s12 + $0x49] sm:$0xff]  ;;  %v471_v20 = vld [vmem:[%s10850_s12 + $0x51] sm:$0xff]  ;;  %v472_v22 = vld [vmem:[%s10850_s12 + $0x61] sm:$0xff] }
  0x19   : > { %9417 = vmatprep.mubr.msk.f32.mxu1 %vm532_vm1, %v498_v9  ;;  %9512 = vmatprep.subr.msk.mxu0 %vm629_vm0, %v10870_v10  ;;  %v502_v19 = vld [vmem:[%s10855_s15 + $0x49] sm:$0xff]  ;;  %v503_v21 = vld [vmem:[%s10855_s15 + $0x51] sm:$0xff]  ;;  %v504_v23 = vld [vmem:[%s10855_s15 + $0x61] sm:$0xff] }
  0x1a   : > { %9562 = vmatprep.subr.msk.mxu1 %vm629_vm0, %v10875_v11  ;;  %9318 = vmatmul.mubr.msk.f32.gmra.mrb[2].mxu0 %vm532_vm1, %v467_v12  ;;  %v473_v24 = vld [vmem:[%s10850_s12 + $0x69] sm:$0xff]  ;;  %v474_v26 = vld [vmem:[%s10850_s12 + $0x79] sm:$0xff]  ;;  %v475_v28 = vld [vmem:[%s10850_s12 + $0x81] sm:$0xff] }
  0x1b   : > { %9418 = vmatmul.mubr.msk.f32.gmra.mrb[2].mxu1 %vm532_vm1, %v499_v13  ;;  %9320 = vmatprep.mubr.msk.f32.mxu0 %vm532_vm1, %v468_v14  ;;  %v505_v25 = vld [vmem:[%s10855_s15 + $0x69] sm:$0xff]  ;;  %v506_v27 = vld [vmem:[%s10855_s15 + $0x79] sm:$0xff]  ;;  %v507_v29 = vld [vmem:[%s10855_s15 + $0x81] sm:$0xff] }
  0x1c   : > { %9420 = vmatprep.mubr.msk.f32.mxu1 %vm532_vm1, %v500_v15  ;;  %v476_v30 = vld [vmem:[%s10850_s12 + $0x91] sm:$0xff]  ;;  %v477_v32 = vld [vmem:[%s10850_s12 + $0x99] sm:$0xff]  ;;  %v478_v34 = vld [vmem:[%s10850_s12 + $0xa9] sm:$0xff] }
  0x1d   : > { %v508_v31 = vld [vmem:[%s10855_s15 + $0x91] sm:$0xff]  ;;  %v509_v33 = vld [vmem:[%s10855_s15 + $0x99] sm:$0xff]  ;;  %v510_v35 = vld [vmem:[%s10855_s15 + $0xa9] sm:$0xff] }
  0x1e   : > { %9321 = vmatmul.mubr.msk.f32.gmra.mrb[4].mxu0 %vm532_vm1, %v469_v16  ;;  %v479_v36 = vld [vmem:[%s10850_s12 + $0xb1] sm:$0xff]  ;;  %v480_v38 = vld [vmem:[%s10850_s12 + $0xc1] sm:$0xff]  ;;  %v481_v40 = vld [vmem:[%s10850_s12 + $0xc9] sm:$0xff] }
  0x1f   : > { %9421 = vmatmul.mubr.msk.f32.gmra.mrb[4].mxu1 %vm532_vm1, %v501_v17  ;;  %9323 = vmatprep.mubr.msk.f32.mxu0 %vm532_vm1, %v470_v18  ;;  %v511_v37 = vld [vmem:[%s10855_s15 + $0xb1] sm:$0xff]  ;;  %v512_v39 = vld [vmem:[%s10855_s15 + $0xc1] sm:$0xff]  ;;  %v513_v41 = vld [vmem:[%s10855_s15 + $0xc9] sm:$0xff] }
  0x20   : > { %9423 = vmatprep.mubr.msk.f32.mxu1 %vm532_vm1, %v502_v19  ;;  %v482_v42 = vld [vmem:[%s10850_s12 + $0xd9] sm:$0xff]  ;;  %v483_v44 = vld [vmem:[%s10850_s12 + $0xe1] sm:$0xff]  ;;  %v484_v46 = vld [vmem:[%s10850_s12 + $0xf1] sm:$0xff] }
  0x21   : > { %v514_v43 = vld [vmem:[%s10855_s15 + $0xd9] sm:$0xff]  ;;  %v515_v45 = vld [vmem:[%s10855_s15 + $0xe1] sm:$0xff]  ;;  %v516_v47 = vld [vmem:[%s10855_s15 + $0xf1] sm:$0xff] }
  0x22   : > { %9324 = vmatmul.mubr.msk.f32.gmra.mrb[6].mxu0 %vm532_vm1, %v471_v20  ;;  %v485_v48 = vld [vmem:[%s10850_s12 + $0xf9] sm:$0xff]  ;;  %v486_v50 = vld [vmem:[%s10850_s12 + $0x109] sm:$0xff]  ;;  %v487_v52 = vld [vmem:[%s10850_s12 + $0x111] sm:$0xff] }
  0x23   : > { %9424 = vmatmul.mubr.msk.f32.gmra.mrb[6].mxu1 %vm532_vm1, %v503_v21  ;;  %9326 = vmatprep.mubr.msk.f32.mxu0 %vm532_vm1, %v472_v22  ;;  %v517_v49 = vld [vmem:[%s10855_s15 + $0xf9] sm:$0xff]  ;;  %v518_v51 = vld [vmem:[%s10855_s15 + $0x109] sm:$0xff]  ;;  %v519_v53 = vld [vmem:[%s10855_s15 + $0x111] sm:$0xff] }
  0x24   : > { %9426 = vmatprep.mubr.msk.f32.mxu1 %vm532_vm1, %v504_v23  ;;  %v488_v54 = vld [vmem:[%s10850_s12 + $0x121] sm:$0xff]  ;;  %v489_v56 = vld [vmem:[%s10850_s12 + $0x129] sm:$0xff]  ;;  %v490_v58 = vld [vmem:[%s10850_s12 + $0x139] sm:$0xff] }
  0x25   : > { %v520_v55 = vld [vmem:[%s10855_s15 + $0x121] sm:$0xff]  ;;  %v521_v57 = vld [vmem:[%s10855_s15 + $0x129] sm:$0xff]  ;;  %v522_v59 = vld [vmem:[%s10855_s15 + $0x139] sm:$0xff] }
  0x26   : > { %9327 = vmatmul.mubr.msk.f32.gmra.mrb[8].mxu0 %vm532_vm1, %v473_v24  ;;  %v491_v60 = vld [vmem:[%s10850_s12 + $0x141] sm:$0xff]  ;;  %v492_v62 = vld [vmem:[%s10850_s12 + $0x151] sm:$0xff]  ;;  %v493_v0 = vld [vmem:[%s10850_s12 + $0x159] sm:$0xff] }
  0x27   : > { %9427 = vmatmul.mubr.msk.f32.gmra.mrb[8].mxu1 %vm532_vm1, %v505_v25  ;;  %9329 = vmatprep.mubr.msk.f32.mxu0 %vm532_vm1, %v474_v26  ;;  %v523_v61 = vld [vmem:[%s10855_s15 + $0x141] sm:$0xff]  ;;  %v524_v63 = vld [vmem:[%s10855_s15 + $0x151] sm:$0xff]  ;;  %v525_v1 = vld [vmem:[%s10855_s15 + $0x159] sm:$0xff] }
  0x28   : > { %9429 = vmatprep.mubr.msk.f32.mxu1 %vm532_vm1, %v506_v27  ;;  %v494_v2 = vld [vmem:[%s10850_s12 + $0x169] sm:$0xff]  ;;  %v495_v4 = vld [vmem:[%s10850_s12 + $0x171] sm:$0xff]  ;;  %v397_v6 = vld [vmem:[%s10850_s12] sm:$0xff] }
  0x29   : > { %v526_v3 = vld [vmem:[%s10855_s15 + $0x169] sm:$0xff]  ;;  %v527_v5 = vld [vmem:[%s10855_s15 + $0x171] sm:$0xff]  ;;  %v430_v7 = vld [vmem:[%s10855_s15] sm:$0xff] }
  0x2a   : > { %9330 = vmatmul.mubr.msk.f32.gmra.mrb[10].mxu0 %vm532_vm1, %v475_v28  ;;  %v398_v8 = vld [vmem:[%s10850_s12 + $0x8] sm:$0xff]  ;;  %v11008_v12 = vld [vmem:[%s10850_s12 + $0x18] sm:$0xff]  ;;  %v11030_v16 = vld [vmem:[%s10850_s12 + $0x20] sm:$0xff] }
  0x2b   : > { %9430 = vmatmul.mubr.msk.f32.gmra.mrb[10].mxu1 %vm532_vm1, %v507_v29  ;;  %9332 = vmatprep.mubr.msk.f32.mxu0 %vm532_vm1, %v476_v30  ;;  %v431_v9 = vld [vmem:[%s10855_s15 + $0x8] sm:$0xff]  ;;  %v11011_v13 = vld [vmem:[%s10855_s15 + $0x18] sm:$0xff]  ;;  %v11033_v17 = vld [vmem:[%s10855_s15 + $0x20] sm:$0xff] }
  0x2c   : > { %9432 = vmatprep.mubr.msk.f32.mxu1 %vm532_vm1, %v508_v31  ;;  %v11018_v14 = vld [vmem:[%s12824_s2 + $0xc] sm:$0xf]  ;;  %v11040_v18 = vld [vmem:[%s10850_s12 + $0x30] sm:$0xff]  ;;  %v11084_v24 = vld [vmem:[%s10850_s12 + $0x60] sm:$0xff] }
  0x2d   : > { %v11023_v15 = vld [vmem:[%s12825_s3 + $0xc] sm:$0xf]  ;;  %v11043_v19 = vld [vmem:[%s10855_s15 + $0x30] sm:$0xff]  ;;  %v11087_v25 = vld [vmem:[%s10855_s15 + $0x60] sm:$0xff] }
  0x2e   : > { %9333 = vmatmul.mubr.msk.f32.gmra.mrb[12].mxu0 %vm532_vm1, %v477_v32  ;;  %v11064_v20 = vld [vmem:[%s10850_s12 + $0x48] sm:$0xff]  ;;  %v11078_v22 = vld [vmem:[%s10850_s12 + $0x50] sm:$0xff]  ;;  %v11104_v28 = vld [vmem:[%s10850_s12 + $0x78] sm:$0xff] }
  0x2f   : > { %9433 = vmatmul.mubr.msk.f32.gmra.mrb[12].mxu1 %vm532_vm1, %v509_v33  ;;  %9335 = vmatprep.mubr.msk.f32.mxu0 %vm532_vm1, %v478_v34  ;;  %v11067_v21 = vld [vmem:[%s10855_s15 + $0x48] sm:$0xff]  ;;  %v11081_v23 = vld [vmem:[%s10855_s15 + $0x50] sm:$0xff]  ;;  %v11107_v29 = vld [vmem:[%s10855_s15 + $0x78] sm:$0xff] }
  0x30   : > { %9435 = vmatprep.mubr.msk.f32.mxu1 %vm532_vm1, %v510_v35  ;;  %v11098_v26 = vld [vmem:[%s10850_s12 + $0x68] sm:$0xff]  ;;  %v11118_v30 = vld [vmem:[%s10850_s12 + $0x80] sm:$0xff]  ;;  %v11124_v32 = vld [vmem:[%s10850_s12 + $0x90] sm:$0xff] }
  0x31   : > { %v11101_v27 = vld [vmem:[%s10855_s15 + $0x68] sm:$0xff]  ;;  %v11121_v31 = vld [vmem:[%s10855_s15 + $0x80] sm:$0xff]  ;;  %v11127_v33 = vld [vmem:[%s10855_s15 + $0x90] sm:$0xff] }
  0x32   : > { %9336 = vmatmul.mubr.msk.f32.gmra.mrb[14].mxu0 %vm532_vm1, %v479_v36  ;;  %v11138_v34 = vld [vmem:[%s10850_s12 + $0x98] sm:$0xff]  ;;  %v11144_v36 = vld [vmem:[%s10850_s12 + $0xa8] sm:$0xff] }
  0x33   : > { %9436 = vmatmul.mubr.msk.f32.gmra.mrb[14].mxu1 %vm532_vm1, %v511_v37  ;;  %9338 = vmatprep.mubr.msk.f32.mxu0 %vm532_vm1, %v480_v38  ;;  %v11141_v35 = vld [vmem:[%s10855_s15 + $0x98] sm:$0xff]  ;;  %v11147_v37 = vld [vmem:[%s10855_s15 + $0xa8] sm:$0xff]  ;;  %v11158_v38 = vld [vmem:[%s10850_s12 + $0xb0] sm:$0xff] }
  0x34   : > { %9438 = vmatprep.mubr.msk.f32.mxu1 %vm532_vm1, %v512_v39  ;;  %v11161_v39 = vld [vmem:[%s10855_s15 + $0xb0] sm:$0xff] }
  0x36   : > { %9339 = vmatmul.mubr.msk.f32.gmra.mrb[16].mxu0 %vm532_vm1, %v481_v40  ;;  %v11164_v40 = vld [vmem:[%s10850_s12 + $0xc0] sm:$0xff] }
  0x37   : > { %9439 = vmatmul.mubr.msk.f32.gmra.mrb[16].mxu1 %vm532_vm1, %v513_v41  ;;  %9341 = vmatprep.mubr.msk.f32.mxu0 %vm532_vm1, %v482_v42  ;;  %v11167_v41 = vld [vmem:[%s10855_s15 + $0xc0] sm:$0xff]  ;;  %v11178_v42 = vld [vmem:[%s10850_s12 + $0xc8] sm:$0xff] }
  0x38   : > { %9441 = vmatprep.mubr.msk.f32.mxu1 %vm532_vm1, %v514_v43  ;;  %v11181_v43 = vld [vmem:[%s10855_s15 + $0xc8] sm:$0xff] }
  0x3a   : > { %9342 = vmatmul.mubr.msk.f32.gmra.mrb[18].mxu0 %vm532_vm1, %v483_v44  ;;  %v11184_v44 = vld [vmem:[%s10850_s12 + $0xd8] sm:$0xff] }
  0x3b   : > { %9442 = vmatmul.mubr.msk.f32.gmra.mrb[18].mxu1 %vm532_vm1, %v515_v45  ;;  %9344 = vmatprep.mubr.msk.f32.mxu0 %vm532_vm1, %v484_v46  ;;  %v11187_v45 = vld [vmem:[%s10855_s15 + $0xd8] sm:$0xff]  ;;  %v11198_v46 = vld [vmem:[%s10850_s12 + $0xe0] sm:$0xff] }
  0x3c   : > { %9444 = vmatprep.mubr.msk.f32.mxu1 %vm532_vm1, %v516_v47  ;;  %v11201_v47 = vld [vmem:[%s10855_s15 + $0xe0] sm:$0xff] }
  0x3e   : > { %9345 = vmatmul.mubr.msk.f32.gmra.mrb[20].mxu0 %vm532_vm1, %v485_v48  ;;  %v11204_v48 = vld [vmem:[%s10850_s12 + $0xf0] sm:$0xff] }
  0x3f   : > { %9445 = vmatmul.mubr.msk.f32.gmra.mrb[20].mxu1 %vm532_vm1, %v517_v49  ;;  %9347 = vmatprep.mubr.msk.f32.mxu0 %vm532_vm1, %v486_v50  ;;  %v11207_v49 = vld [vmem:[%s10855_s15 + $0xf0] sm:$0xff]  ;;  %v11218_v50 = vld [vmem:[%s10850_s12 + $0xf8] sm:$0xff] }
  0x40   : > { %9447 = vmatprep.mubr.msk.f32.mxu1 %vm532_vm1, %v518_v51  ;;  %v11221_v51 = vld [vmem:[%s10855_s15 + $0xf8] sm:$0xff] }
  0x42   : > { %9348 = vmatmul.mubr.msk.f32.gmra.mrb[22].mxu0 %vm532_vm1, %v487_v52  ;;  %v11224_v52 = vld [vmem:[%s10850_s12 + $0x108] sm:$0xff] }
  0x43   : > { %9448 = vmatmul.mubr.msk.f32.gmra.mrb[22].mxu1 %vm532_vm1, %v519_v53  ;;  %9350 = vmatprep.mubr.msk.f32.mxu0 %vm532_vm1, %v488_v54  ;;  %v11227_v53 = vld [vmem:[%s10855_s15 + $0x108] sm:$0xff]  ;;  %v11238_v54 = vld [vmem:[%s10850_s12 + $0x110] sm:$0xff] }
  0x44   : > { %9450 = vmatprep.mubr.msk.f32.mxu1 %vm532_vm1, %v520_v55  ;;  %v11241_v55 = vld [vmem:[%s10855_s15 + $0x110] sm:$0xff] }
  0x46   : > { %9351 = vmatmul.mubr.msk.f32.gmra.mrb[24].mxu0 %vm532_vm1, %v489_v56  ;;  %v11244_v56 = vld [vmem:[%s10850_s12 + $0x120] sm:$0xff] }
  0x47   : > { %9451 = vmatmul.mubr.msk.f32.gmra.mrb[24].mxu1 %vm532_vm1, %v521_v57  ;;  %9353 = vmatprep.mubr.msk.f32.mxu0 %vm532_vm1, %v490_v58  ;;  %v11247_v57 = vld [vmem:[%s10855_s15 + $0x120] sm:$0xff]  ;;  %v11258_v58 = vld [vmem:[%s10850_s12 + $0x128] sm:$0xff] }
  0x48   : > { %9453 = vmatprep.mubr.msk.f32.mxu1 %vm532_vm1, %v522_v59  ;;  %v11261_v59 = vld [vmem:[%s10855_s15 + $0x128] sm:$0xff] }
  0x4a   : > { %9354 = vmatmul.mubr.msk.f32.gmra.mrb[26].mxu0 %vm532_vm1, %v491_v60  ;;  %v11264_v60 = vld [vmem:[%s10850_s12 + $0x138] sm:$0xff] }
  0x4b   : > { %9454 = vmatmul.mubr.msk.f32.gmra.mrb[26].mxu1 %vm532_vm1, %v523_v61  ;;  %9356 = vmatprep.mubr.msk.f32.mxu0 %vm532_vm1, %v492_v62  ;;  %v11267_v61 = vld [vmem:[%s10855_s15 + $0x138] sm:$0xff]  ;;  %v11278_v62 = vld [vmem:[%s10850_s12 + $0x140] sm:$0xff] }
  0x4c   : > { %9456 = vmatprep.mubr.msk.f32.mxu1 %vm532_vm1, %v524_v63  ;;  %v11281_v63 = vld [vmem:[%s10855_s15 + $0x140] sm:$0xff] }
  0x4e   : > { %9357 = vmatmul.mubr.msk.f32.gmra.mrb[28].mxu0 %vm532_vm1, %v493_v0  ;;  %v11284_v0 = vld [vmem:[%s10850_s12 + $0x150] sm:$0xff] }
  0x4f   : > { %9457 = vmatmul.mubr.msk.f32.gmra.mrb[28].mxu1 %vm532_vm1, %v525_v1  ;;  %9359 = vmatprep.mubr.msk.f32.mxu0 %vm532_vm1, %v494_v2  ;;  %v11287_v1 = vld [vmem:[%s10855_s15 + $0x150] sm:$0xff]  ;;  %v11298_v2 = vld [vmem:[%s10850_s12 + $0x158] sm:$0xff] }
  0x50   : > { %9459 = vmatprep.mubr.msk.f32.mxu1 %vm532_vm1, %v526_v3  ;;  %12905 = vst [vmem:[#allocation2_spill] sm:$0xff] %v11298_v2  ;;  %v11301_v3 = vld [vmem:[%s10855_s15 + $0x158] sm:$0xff] }
  0x51   : > { %12906 = vst [vmem:[#allocation3_spill] sm:$0xff] %v11301_v3 }
  0x52   : > { %9360 = vmatmul.mubr.msk.f32.gmra.mrb[30].mxu0 %vm532_vm1, %v495_v4  ;;  %v11304_v4 = vld [vmem:[%s10850_s12 + $0x168] sm:$0xff] }
  0x53   : > { %9460 = vmatmul.mubr.msk.f32.gmra.mrb[30].mxu1 %vm532_vm1, %v527_v5  ;;  %9364 = vmatprep.mubr.msk.f32.mxu0 %vm532_vm1, %v397_v6  ;;  %12907 = vst [vmem:[#allocation4_spill] sm:$0xff] %v11304_v4  ;;  %v11307_v5 = vld [vmem:[%s10855_s15 + $0x168] sm:$0xff]  ;;  %v11318_v6 = vld [vmem:[%s10850_s12 + $0x170] sm:$0xff] }
  0x54   : > { %9464 = vmatprep.mubr.msk.f32.mxu1 %vm532_vm1, %v430_v7  ;;  %12908 = vst [vmem:[#allocation5_spill] sm:$0xff] %v11307_v5  ;;  %12909 = vst [vmem:[#allocation6_spill] sm:$0xff] %v11318_v6  ;;  %v11321_v7 = vld [vmem:[%s10855_s15 + $0x170] sm:$0xff] }
  0x55   : > { %12910 = vst [vmem:[#allocation7_spill] sm:$0xff] %v11321_v7 }
  0x56   : > { %9365 = vmatmul.mubr.msk.f32.vlgmr.msra.gmra.mrb[0].mxu0 %vm532_vm1, %v398_v8  ;;  %v1830_v8 = vld [vmem:[%s10850_s12 + $0x2] sm:$0xff] }
  0x57   : > { %9465 = vmatmul.mubr.msk.f32.vlgmr.msra.gmra.mrb[0].mxu1 %vm532_vm1, %v431_v9  ;;  %9513 = vmatpush3.msk.msra.mxu0 %vm629_vm0, %v10870_v10  ;;  %v11058_v10 = vld [vmem:[%s10850_s12 + $0x38] sm:$0xff]  ;;  %v1862_v9 = vld [vmem:[%s10855_s15 + $0x2] sm:$0xff] }
  0x58   : > { %9563 = vmatpush3.msk.msra.mxu1 %vm629_vm0, %v10875_v11  ;;  %9367 = vmatprep.mubr.msk.f32.mxu0 %vm532_vm1, %v11008_v12  ;;  %v11061_v11 = vld [vmem:[%s10855_s15 + $0x38] sm:$0xff] }
  0x59   : > { %9467 = vmatprep.mubr.msk.f32.mxu1 %vm532_vm1, %v11011_v13  ;;  %9612 = vmatprep.subr.msk.mxu0 %vm629_vm0, %v11018_v14 }
  0x5a   : > { %9662 = vmatprep.subr.msk.mxu1 %vm629_vm0, %v11023_v15  ;;  %9368 = vmatmul.mubr.msk.f32.gmra.mrb[2].mxu0 %vm532_vm1, %v11030_v16 }
  0x5b   : > { %9468 = vmatmul.mubr.msk.f32.gmra.mrb[2].mxu1 %vm532_vm1, %v11033_v17  ;;  %9370 = vmatprep.mubr.msk.f32.mxu0 %vm532_vm1, %v11040_v18 }
  0x5c   : > { %9470 = vmatprep.mubr.msk.f32.mxu1 %vm532_vm1, %v11043_v19 }
  0x5e   : > { %9371 = vmatmul.mubr.msk.f32.gmra.mrb[4].mxu0 %vm532_vm1, %v11058_v10 }
  0x5f   : > { %9471 = vmatmul.mubr.msk.f32.gmra.mrb[4].mxu1 %vm532_vm1, %v11061_v11  ;;  %9373 = vmatprep.mubr.msk.f32.mxu0 %vm532_vm1, %v11064_v20 }
  0x60   : > { %9473 = vmatprep.mubr.msk.f32.mxu1 %vm532_vm1, %v11067_v21 }
  0x62   : > { %9374 = vmatmul.mubr.msk.f32.gmra.mrb[6].mxu0 %vm532_vm1, %v11078_v22 }
  0x63   : > { %9474 = vmatmul.mubr.msk.f32.gmra.mrb[6].mxu1 %vm532_vm1, %v11081_v23  ;;  %9376 = vmatprep.mubr.msk.f32.mxu0 %vm532_vm1, %v11084_v24 }
  0x64   : > { %9476 = vmatprep.mubr.msk.f32.mxu1 %vm532_vm1, %v11087_v25 }
  0x66   : > { %9377 = vmatmul.mubr.msk.f32.gmra.mrb[8].mxu0 %vm532_vm1, %v11098_v26 }
  0x67   : > { %9477 = vmatmul.mubr.msk.f32.gmra.mrb[8].mxu1 %vm532_vm1, %v11101_v27  ;;  %9379 = vmatprep.mubr.msk.f32.mxu0 %vm532_vm1, %v11104_v28 }
  0x68   : > { %9479 = vmatprep.mubr.msk.f32.mxu1 %vm532_vm1, %v11107_v29 }
  0x6a   : > { %9380 = vmatmul.mubr.msk.f32.gmra.mrb[10].mxu0 %vm532_vm1, %v11118_v30 }
  0x6b   : > { %9480 = vmatmul.mubr.msk.f32.gmra.mrb[10].mxu1 %vm532_vm1, %v11121_v31  ;;  %9382 = vmatprep.mubr.msk.f32.mxu0 %vm532_vm1, %v11124_v32 }
  0x6c   : > { %9482 = vmatprep.mubr.msk.f32.mxu1 %vm532_vm1, %v11127_v33 }
  0x6e   : > { %9383 = vmatmul.mubr.msk.f32.gmra.mrb[12].mxu0 %vm532_vm1, %v11138_v34 }
  0x6f   : > { %9483 = vmatmul.mubr.msk.f32.gmra.mrb[12].mxu1 %vm532_vm1, %v11141_v35  ;;  %9385 = vmatprep.mubr.msk.f32.mxu0 %vm532_vm1, %v11144_v36 }
  0x70   : > { %9485 = vmatprep.mubr.msk.f32.mxu1 %vm532_vm1, %v11147_v37 }
  0x72   : > { %9386 = vmatmul.mubr.msk.f32.gmra.mrb[14].mxu0 %vm532_vm1, %v11158_v38 }
  0x73   : > { %9486 = vmatmul.mubr.msk.f32.gmra.mrb[14].mxu1 %vm532_vm1, %v11161_v39  ;;  %9388 = vmatprep.mubr.msk.f32.mxu0 %vm532_vm1, %v11164_v40 }
  0x74   : > { %9488 = vmatprep.mubr.msk.f32.mxu1 %vm532_vm1, %v11167_v41 }
  0x76   : > { %9389 = vmatmul.mubr.msk.f32.gmra.mrb[16].mxu0 %vm532_vm1, %v11178_v42 }
  0x77   : > { %9489 = vmatmul.mubr.msk.f32.gmra.mrb[16].mxu1 %vm532_vm1, %v11181_v43  ;;  %9391 = vmatprep.mubr.msk.f32.mxu0 %vm532_vm1, %v11184_v44 }
  0x78   : > { %9491 = vmatprep.mubr.msk.f32.mxu1 %vm532_vm1, %v11187_v45 }
  0x7a   : > { %9392 = vmatmul.mubr.msk.f32.gmra.mrb[18].mxu0 %vm532_vm1, %v11198_v46 }
  0x7b   : > { %9492 = vmatmul.mubr.msk.f32.gmra.mrb[18].mxu1 %vm532_vm1, %v11201_v47  ;;  %9394 = vmatprep.mubr.msk.f32.mxu0 %vm532_vm1, %v11204_v48 }
  0x7c   : > { %9494 = vmatprep.mubr.msk.f32.mxu1 %vm532_vm1, %v11207_v49 }
  0x7e   : > { %9395 = vmatmul.mubr.msk.f32.gmra.mrb[20].mxu0 %vm532_vm1, %v11218_v50 }
  0x7f   : > { %9495 = vmatmul.mubr.msk.f32.gmra.mrb[20].mxu1 %vm532_vm1, %v11221_v51  ;;  %9397 = vmatprep.mubr.msk.f32.mxu0 %vm532_vm1, %v11224_v52 }
  0x80   : > { %9497 = vmatprep.mubr.msk.f32.mxu1 %vm532_vm1, %v11227_v53 }
  0x82   : > { %9398 = vmatmul.mubr.msk.f32.gmra.mrb[22].mxu0 %vm532_vm1, %v11238_v54 }
  0x83   : > { %9498 = vmatmul.mubr.msk.f32.gmra.mrb[22].mxu1 %vm532_vm1, %v11241_v55  ;;  %9400 = vmatprep.mubr.msk.f32.mxu0 %vm532_vm1, %v11244_v56 }
  0x84   : > { %9500 = vmatprep.mubr.msk.f32.mxu1 %vm532_vm1, %v11247_v57 }
  0x86   : > { %9401 = vmatmul.mubr.msk.f32.gmra.mrb[24].mxu0 %vm532_vm1, %v11258_v58 }
  0x87   : > { %9501 = vmatmul.mubr.msk.f32.gmra.mrb[24].mxu1 %vm532_vm1, %v11261_v59  ;;  %9403 = vmatprep.mubr.msk.f32.mxu0 %vm532_vm1, %v11264_v60 }
  0x88   : > { %9503 = vmatprep.mubr.msk.f32.mxu1 %vm532_vm1, %v11267_v61 }
  0x8a   : > { %9404 = vmatmul.mubr.msk.f32.gmra.mrb[26].mxu0 %vm532_vm1, %v11278_v62 }
  0x8b   : > { %9504 = vmatmul.mubr.msk.f32.gmra.mrb[26].mxu1 %vm532_vm1, %v11281_v63  ;;  %9406 = vmatprep.mubr.msk.f32.mxu0 %vm532_vm1, %v11284_v0 }
  0x8c   : > { %9506 = vmatprep.mubr.msk.f32.mxu1 %vm532_vm1, %v11287_v1 }
  0x8e   : > { %9407 = vmatmul.mubr.msk.f32.gmra.mrb[28].mxu0 %vm532_vm1, %v11298_v2  ;;  %v11337_v2 = vld [vmem:[%s10855_s15 + $0x1a] sm:$0xff] }
  0x8f   : > { %9507 = vmatmul.mubr.msk.f32.gmra.mrb[28].mxu1 %vm532_vm1, %v11301_v3  ;;  %9409 = vmatprep.mubr.msk.f32.mxu0 %vm532_vm1, %v11304_v4  ;;  %v1863_v4 = vld [vmem:[%s10855_s15 + $0xa] sm:$0xff]  ;;  %v11334_v3 = vld [vmem:[%s10850_s12 + $0x1a] sm:$0xff]  ;;  %12912 = vst [vmem:[#allocation9_spill] sm:$0xff] %v11337_v2 }
  0x90   : > { %9509 = vmatprep.mubr.msk.f32.mxu1 %vm532_vm1, %v11307_v5  ;;  %v1831_v5 = vld [vmem:[%s10850_s12 + $0xa] sm:$0xff]  ;;  %12911 = vst [vmem:[#allocation8_spill] sm:$0xff] %v11334_v3 }
  0x92   : > { %9410 = vmatmul.mubr.msk.f32.gmra.mrb[30].mxu0 %vm532_vm1, %v11318_v6  ;;  %v11369_v6 = vld [vmem:[%s10855_s15 + $0x32] sm:$0xff] }
  0x93   : > { %9510 = vmatmul.mubr.msk.f32.gmra.mrb[30].mxu1 %vm532_vm1, %v11321_v7  ;;  %9514 = vmatprep.mubr.msk.f32.mxu0 %vm532_vm1, %v1830_v8  ;;  %v11344_v7 = vld [vmem:[%s12824_s2 + $0x10] sm:$0xf]  ;;  %12916 = vst [vmem:[#allocation13_spill] sm:$0xff] %v11369_v6 }
  0x94   : > { %9564 = vmatprep.mubr.msk.f32.mxu1 %vm532_vm1, %v1862_v9  ;;  %v11349_v8 = vld [vmem:[%s12825_s3 + $0x10] sm:$0xf] }
  0x95   : > { %v11366_v9 = vld [vmem:[%s10850_s12 + $0x32] sm:$0xff] }
  0x96   : > { %9515 = vmatmul.mubr.msk.f32.vlgmr.msra.gmra.mrb[0].mxu0 %vm532_vm1, %v1831_v5  ;;  %v11359_v5 = vld [vmem:[%s10855_s15 + $0x22] sm:$0xff]  ;;  %12915 = vst [vmem:[#allocation12_spill] sm:$0xff] %v11366_v9 }
  0x97   : > { %9565 = vmatmul.mubr.msk.f32.vlgmr.msra.gmra.mrb[0].mxu1 %vm532_vm1, %v1863_v4  ;;  %9613 = vmatpush3.msk.msra.mxu0 %vm629_vm0, %v11018_v14  ;;  %v11356_v4 = vld [vmem:[%s10850_s12 + $0x22] sm:$0xff]  ;;  %12914 = vst [vmem:[#allocation11_spill] sm:$0xff] %v11359_v5  ;;  %v11384_v14 = vld [vmem:[%s10850_s12 + $0x3a] sm:$0xff] }
  0x98   : > { %9663 = vmatpush3.msk.msra.mxu1 %vm629_vm0, %v11023_v15  ;;  %12913 = vst [vmem:[#allocation10_spill] sm:$0xff] %v11356_v4  ;;  %9517 = vmatprep.mubr.msk.f32.mxu0 %vm532_vm1, %v11334_v3  ;;  %12917 = vst [vmem:[#allocation14_spill] sm:$0xff] %v11384_v14  ;;  %v11387_v15 = vld [vmem:[%s10855_s15 + $0x3a] sm:$0xff]  ;;  %v11393_v3 = vld [vmem:[%s10855_s15 + $0x4a] sm:$0xff] }
  0x99   : > { %9567 = vmatprep.mubr.msk.f32.mxu1 %vm532_vm1, %v11337_v2  ;;  %9712 = vmatprep.subr.msk.mxu0 %vm629_vm0, %v11344_v7  ;;  %12918 = vst [vmem:[#allocation15_spill] sm:$0xff] %v11387_v15  ;;  %v11390_v2 = vld [vmem:[%s10850_s12 + $0x4a] sm:$0xff]  ;;  %12920 = vst [vmem:[#allocation17_spill] sm:$0xff] %v11393_v3 }
  0x9a   : > { %9762 = vmatprep.subr.msk.mxu1 %vm629_vm0, %v11349_v8  ;;  %9518 = vmatmul.mubr.msk.f32.gmra.mrb[2].mxu0 %vm532_vm1, %v11356_v4  ;;  %12919 = vst [vmem:[#allocation16_spill] sm:$0xff] %v11390_v2  ;;  %v11413_v4 = vld [vmem:[%s10855_s15 + $0x62] sm:$0xff] }
  0x9b   : > { %9568 = vmatmul.mubr.msk.f32.gmra.mrb[2].mxu1 %vm532_vm1, %v11359_v5  ;;  %9520 = vmatprep.mubr.msk.f32.mxu0 %vm532_vm1, %v11366_v9  ;;  %v11407_v9 = vld [vmem:[%s10855_s15 + $0x52] sm:$0xff]  ;;  %v11410_v5 = vld [vmem:[%s10850_s12 + $0x62] sm:$0xff]  ;;  %12924 = vst [vmem:[#allocation21_spill] sm:$0xff] %v11413_v4 }
  0x9c   : > { %9570 = vmatprep.mubr.msk.f32.mxu1 %vm532_vm1, %v11369_v6  ;;  %v11404_v6 = vld [vmem:[%s10850_s12 + $0x52] sm:$0xff]  ;;  %12922 = vst [vmem:[#allocation19_spill] sm:$0xff] %v11407_v9  ;;  %12923 = vst [vmem:[#allocation20_spill] sm:$0xff] %v11410_v5 }
  0x9d   : > { %12921 = vst [vmem:[#allocation18_spill] sm:$0xff] %v11404_v6 }
  0x9e   : > { %9521 = vmatmul.mubr.msk.f32.gmra.mrb[4].mxu0 %vm532_vm1, %v11384_v14  ;;  %v11433_v14 = vld [vmem:[%s10855_s15 + $0x7a] sm:$0xff] }
  0x9f   : > { %9571 = vmatmul.mubr.msk.f32.gmra.mrb[4].mxu1 %vm532_vm1, %v11387_v15  ;;  %9523 = vmatprep.mubr.msk.f32.mxu0 %vm532_vm1, %v11390_v2  ;;  %v11427_v2 = vld [vmem:[%s10855_s15 + $0x6a] sm:$0xff]  ;;  %v11430_v15 = vld [vmem:[%s10850_s12 + $0x7a] sm:$0xff]  ;;  %12928 = vst [vmem:[#allocation25_spill] sm:$0xff] %v11433_v14 }
  0xa0   : > { %9573 = vmatprep.mubr.msk.f32.mxu1 %vm532_vm1, %v11393_v3  ;;  %v11424_v3 = vld [vmem:[%s10850_s12 + $0x6a] sm:$0xff]  ;;  %12926 = vst [vmem:[#allocation23_spill] sm:$0xff] %v11427_v2  ;;  %12927 = vst [vmem:[#allocation24_spill] sm:$0xff] %v11430_v15 }
  0xa1   : > { %12925 = vst [vmem:[#allocation22_spill] sm:$0xff] %v11424_v3 }
  0xa2   : > { %9524 = vmatmul.mubr.msk.f32.gmra.mrb[6].mxu0 %vm532_vm1, %v11404_v6  ;;  %v11453_v6 = vld [vmem:[%s10855_s15 + $0x92] sm:$0xff] }
  0xa3   : > { %9574 = vmatmul.mubr.msk.f32.gmra.mrb[6].mxu1 %vm532_vm1, %v11407_v9  ;;  %9526 = vmatprep.mubr.msk.f32.mxu0 %vm532_vm1, %v11410_v5  ;;  %v11447_v5 = vld [vmem:[%s10855_s15 + $0x82] sm:$0xff]  ;;  %v11450_v9 = vld [vmem:[%s10850_s12 + $0x92] sm:$0xff]  ;;  %12932 = vst [vmem:[#allocation29_spill] sm:$0xff] %v11453_v6 }
  0xa4   : > { %9576 = vmatprep.mubr.msk.f32.mxu1 %vm532_vm1, %v11413_v4  ;;  %v11444_v4 = vld [vmem:[%s10850_s12 + $0x82] sm:$0xff]  ;;  %12930 = vst [vmem:[#allocation27_spill] sm:$0xff] %v11447_v5  ;;  %12931 = vst [vmem:[#allocation28_spill] sm:$0xff] %v11450_v9 }
  0xa5   : > { %12929 = vst [vmem:[#allocation26_spill] sm:$0xff] %v11444_v4 }
  0xa6   : > { %9527 = vmatmul.mubr.msk.f32.gmra.mrb[8].mxu0 %vm532_vm1, %v11424_v3  ;;  %v11473_v3 = vld [vmem:[%s10855_s15 + $0xaa] sm:$0xff] }
  0xa7   : > { %9577 = vmatmul.mubr.msk.f32.gmra.mrb[8].mxu1 %vm532_vm1, %v11427_v2  ;;  %9529 = vmatprep.mubr.msk.f32.mxu0 %vm532_vm1, %v11430_v15  ;;  %v11467_v15 = vld [vmem:[%s10855_s15 + $0x9a] sm:$0xff]  ;;  %v11470_v2 = vld [vmem:[%s10850_s12 + $0xaa] sm:$0xff]  ;;  %12936 = vst [vmem:[#allocation33_spill] sm:$0xff] %v11473_v3 }
  0xa8   : > { %9579 = vmatprep.mubr.msk.f32.mxu1 %vm532_vm1, %v11433_v14  ;;  %v11464_v14 = vld [vmem:[%s10850_s12 + $0x9a] sm:$0xff]  ;;  %12934 = vst [vmem:[#allocation31_spill] sm:$0xff] %v11467_v15  ;;  %12935 = vst [vmem:[#allocation32_spill] sm:$0xff] %v11470_v2 }
  0xa9   : > { %12933 = vst [vmem:[#allocation30_spill] sm:$0xff] %v11464_v14 }
  0xaa   : > { %9530 = vmatmul.mubr.msk.f32.gmra.mrb[10].mxu0 %vm532_vm1, %v11444_v4  ;;  %v11493_v4 = vld [vmem:[%s10855_s15 + $0xc2] sm:$0xff] }
  0xab   : > { %9580 = vmatmul.mubr.msk.f32.gmra.mrb[10].mxu1 %vm532_vm1, %v11447_v5  ;;  %9532 = vmatprep.mubr.msk.f32.mxu0 %vm532_vm1, %v11450_v9  ;;  %v11487_v9 = vld [vmem:[%s10855_s15 + $0xb2] sm:$0xff]  ;;  %v11490_v5 = vld [vmem:[%s10850_s12 + $0xc2] sm:$0xff]  ;;  %12940 = vst [vmem:[#allocation37_spill] sm:$0xff] %v11493_v4 }
  0xac   : > { %9582 = vmatprep.mubr.msk.f32.mxu1 %vm532_vm1, %v11453_v6  ;;  %v11484_v6 = vld [vmem:[%s10850_s12 + $0xb2] sm:$0xff]  ;;  %12938 = vst [vmem:[#allocation35_spill] sm:$0xff] %v11487_v9  ;;  %12939 = vst [vmem:[#allocation36_spill] sm:$0xff] %v11490_v5 }
  0xad   : > { %12937 = vst [vmem:[#allocation34_spill] sm:$0xff] %v11484_v6 }
  0xae   : > { %9533 = vmatmul.mubr.msk.f32.gmra.mrb[12].mxu0 %vm532_vm1, %v11464_v14  ;;  %v11513_v14 = vld [vmem:[%s10855_s15 + $0xda] sm:$0xff] }
  0xaf   : > { %9583 = vmatmul.mubr.msk.f32.gmra.mrb[12].mxu1 %vm532_vm1, %v11467_v15  ;;  %9535 = vmatprep.mubr.msk.f32.mxu0 %vm532_vm1, %v11470_v2  ;;  %v11507_v2 = vld [vmem:[%s10855_s15 + $0xca] sm:$0xff]  ;;  %v11510_v15 = vld [vmem:[%s10850_s12 + $0xda] sm:$0xff]  ;;  %12944 = vst [vmem:[#allocation41_spill] sm:$0xff] %v11513_v14 }
  0xb0   : > { %9585 = vmatprep.mubr.msk.f32.mxu1 %vm532_vm1, %v11473_v3  ;;  %v11504_v3 = vld [vmem:[%s10850_s12 + $0xca] sm:$0xff]  ;;  %12942 = vst [vmem:[#allocation39_spill] sm:$0xff] %v11507_v2  ;;  %12943 = vst [vmem:[#allocation40_spill] sm:$0xff] %v11510_v15 }
  0xb1   : > { %12941 = vst [vmem:[#allocation38_spill] sm:$0xff] %v11504_v3 }
  0xb2   : > { %9536 = vmatmul.mubr.msk.f32.gmra.mrb[14].mxu0 %vm532_vm1, %v11484_v6  ;;  %v11533_v6 = vld [vmem:[%s10855_s15 + $0xf2] sm:$0xff] }
  0xb3   : > { %9586 = vmatmul.mubr.msk.f32.gmra.mrb[14].mxu1 %vm532_vm1, %v11487_v9  ;;  %9538 = vmatprep.mubr.msk.f32.mxu0 %vm532_vm1, %v11490_v5  ;;  %v11527_v5 = vld [vmem:[%s10855_s15 + $0xe2] sm:$0xff]  ;;  %v11530_v9 = vld [vmem:[%s10850_s12 + $0xf2] sm:$0xff]  ;;  %12948 = vst [vmem:[#allocation45_spill] sm:$0xff] %v11533_v6 }
  0xb4   : > { %9588 = vmatprep.mubr.msk.f32.mxu1 %vm532_vm1, %v11493_v4  ;;  %v11524_v4 = vld [vmem:[%s10850_s12 + $0xe2] sm:$0xff]  ;;  %12946 = vst [vmem:[#allocation43_spill] sm:$0xff] %v11527_v5  ;;  %12947 = vst [vmem:[#allocation44_spill] sm:$0xff] %v11530_v9 }
  0xb5   : > { %12945 = vst [vmem:[#allocation42_spill] sm:$0xff] %v11524_v4 }
  0xb6   : > { %9539 = vmatmul.mubr.msk.f32.gmra.mrb[16].mxu0 %vm532_vm1, %v11504_v3  ;;  %v11553_v3 = vld [vmem:[%s10855_s15 + $0x10a] sm:$0xff] }
  0xb7   : > { %9589 = vmatmul.mubr.msk.f32.gmra.mrb[16].mxu1 %vm532_vm1, %v11507_v2  ;;  %9541 = vmatprep.mubr.msk.f32.mxu0 %vm532_vm1, %v11510_v15  ;;  %v11547_v15 = vld [vmem:[%s10855_s15 + $0xfa] sm:$0xff]  ;;  %v11550_v2 = vld [vmem:[%s10850_s12 + $0x10a] sm:$0xff]  ;;  %12952 = vst [vmem:[#allocation49_spill] sm:$0xff] %v11553_v3 }
  0xb8   : > { %9591 = vmatprep.mubr.msk.f32.mxu1 %vm532_vm1, %v11513_v14  ;;  %v11544_v14 = vld [vmem:[%s10850_s12 + $0xfa] sm:$0xff]  ;;  %12950 = vst [vmem:[#allocation47_spill] sm:$0xff] %v11547_v15  ;;  %12951 = vst [vmem:[#allocation48_spill] sm:$0xff] %v11550_v2 }
  0xb9   : > { %12949 = vst [vmem:[#allocation46_spill] sm:$0xff] %v11544_v14 }
  0xba   : > { %9542 = vmatmul.mubr.msk.f32.gmra.mrb[18].mxu0 %vm532_vm1, %v11524_v4  ;;  %v11573_v4 = vld [vmem:[%s10855_s15 + $0x122] sm:$0xff] }
  0xbb   : > { %9592 = vmatmul.mubr.msk.f32.gmra.mrb[18].mxu1 %vm532_vm1, %v11527_v5  ;;  %9544 = vmatprep.mubr.msk.f32.mxu0 %vm532_vm1, %v11530_v9  ;;  %v11567_v9 = vld [vmem:[%s10855_s15 + $0x112] sm:$0xff]  ;;  %v11570_v5 = vld [vmem:[%s10850_s12 + $0x122] sm:$0xff]  ;;  %12956 = vst [vmem:[#allocation53_spill] sm:$0xff] %v11573_v4 }
  0xbc   : > { %9594 = vmatprep.mubr.msk.f32.mxu1 %vm532_vm1, %v11533_v6  ;;  %v11564_v6 = vld [vmem:[%s10850_s12 + $0x112] sm:$0xff]  ;;  %12954 = vst [vmem:[#allocation51_spill] sm:$0xff] %v11567_v9  ;;  %12955 = vst [vmem:[#allocation52_spill] sm:$0xff] %v11570_v5 }
  0xbd   : > { %12953 = vst [vmem:[#allocation50_spill] sm:$0xff] %v11564_v6 }
  0xbe   : > { %9545 = vmatmul.mubr.msk.f32.gmra.mrb[20].mxu0 %vm532_vm1, %v11544_v14  ;;  %v11593_v14 = vld [vmem:[%s10855_s15 + $0x13a] sm:$0xff] }
  0xbf   : > { %9595 = vmatmul.mubr.msk.f32.gmra.mrb[20].mxu1 %vm532_vm1, %v11547_v15  ;;  %9547 = vmatprep.mubr.msk.f32.mxu0 %vm532_vm1, %v11550_v2  ;;  %v11587_v2 = vld [vmem:[%s10855_s15 + $0x12a] sm:$0xff]  ;;  %v11590_v15 = vld [vmem:[%s10850_s12 + $0x13a] sm:$0xff]  ;;  %12960 = vst [vmem:[#allocation57_spill] sm:$0xff] %v11593_v14 }
  0xc0   : > { %9597 = vmatprep.mubr.msk.f32.mxu1 %vm532_vm1, %v11553_v3  ;;  %v11584_v3 = vld [vmem:[%s10850_s12 + $0x12a] sm:$0xff]  ;;  %12958 = vst [vmem:[#allocation55_spill] sm:$0xff] %v11587_v2  ;;  %12959 = vst [vmem:[#allocation56_spill] sm:$0xff] %v11590_v15 }
  0xc1   : > { %12957 = vst [vmem:[#allocation54_spill] sm:$0xff] %v11584_v3 }
  0xc2   : > { %9548 = vmatmul.mubr.msk.f32.gmra.mrb[22].mxu0 %vm532_vm1, %v11564_v6  ;;  %v11613_v6 = vld [vmem:[%s10855_s15 + $0x152] sm:$0xff] }
  0xc3   : > { %9598 = vmatmul.mubr.msk.f32.gmra.mrb[22].mxu1 %vm532_vm1, %v11567_v9  ;;  %9550 = vmatprep.mubr.msk.f32.mxu0 %vm532_vm1, %v11570_v5  ;;  %v11607_v5 = vld [vmem:[%s10855_s15 + $0x142] sm:$0xff]  ;;  %v11610_v9 = vld [vmem:[%s10850_s12 + $0x152] sm:$0xff]  ;;  %12962 = vst [vmem:[#allocation59_spill] sm:$0xff] %v11613_v6 }
  0xc4   : > { %9600 = vmatprep.mubr.msk.f32.mxu1 %vm532_vm1, %v11573_v4  ;;  %v11604_v4 = vld [vmem:[%s10850_s12 + $0x142] sm:$0xff]  ;;  %12961 = vst [vmem:[#allocation58_spill] sm:$0xff] %v11610_v9 }
  0xc6   : > { %9551 = vmatmul.mubr.msk.f32.gmra.mrb[24].mxu0 %vm532_vm1, %v11584_v3  ;;  %v11633_v3 = vld [vmem:[%s10855_s15 + $0x16a] sm:$0xff] }
  0xc7   : > { %9601 = vmatmul.mubr.msk.f32.gmra.mrb[24].mxu1 %vm532_vm1, %v11587_v2  ;;  %9553 = vmatprep.mubr.msk.f32.mxu0 %vm532_vm1, %v11590_v15  ;;  %v11627_v15 = vld [vmem:[%s10855_s15 + $0x15a] sm:$0xff]  ;;  %v11630_v2 = vld [vmem:[%s10850_s12 + $0x16a] sm:$0xff]  ;;  %12963 = vst [vmem:[#allocation60_spill] sm:$0xff] %v11633_v3 }
  0xc8   : > { %9603 = vmatprep.mubr.msk.f32.mxu1 %vm532_vm1, %v11593_v14  ;;  %v11624_v14 = vld [vmem:[%s10850_s12 + $0x15a] sm:$0xff] }
  0xca   : > { %9554 = vmatmul.mubr.msk.f32.gmra.mrb[26].mxu0 %vm532_vm1, %v11604_v4 }
  0xcb   : > { %9604 = vmatmul.mubr.msk.f32.gmra.mrb[26].mxu1 %vm532_vm1, %v11607_v5  ;;  %9556 = vmatprep.mubr.msk.f32.mxu0 %vm532_vm1, %v11610_v9  ;;  %v11647_v9 = vld [vmem:[%s10855_s15 + $0x172] sm:$0xff] }
  0xcc   : > { %9606 = vmatprep.mubr.msk.f32.mxu1 %vm532_vm1, %v11613_v6  ;;  %v11644_v6 = vld [vmem:[%s10850_s12 + $0x172] sm:$0xff]  ;;  %12964 = vst [vmem:[#allocation61_spill] sm:$0xff] %v11647_v9 }
  0xce   : > { %9557 = vmatmul.mubr.msk.f32.gmra.mrb[28].mxu0 %vm532_vm1, %v11624_v14 }
  0xcf   : > { %9607 = vmatmul.mubr.msk.f32.gmra.mrb[28].mxu1 %vm532_vm1, %v11627_v15  ;;  %9559 = vmatprep.mubr.msk.f32.mxu0 %vm532_vm1, %v11630_v2 }
  0xd0   : > { %9609 = vmatprep.mubr.msk.f32.mxu1 %vm532_vm1, %v11633_v3  ;;  %v11664_v3 = vld [vmem:[%s12824_s2 + $0x14] sm:$0xf] }
  0xd2   : > { %9560 = vmatmul.mubr.msk.f32.gmra.mrb[30].mxu0 %vm532_vm1, %v11644_v6 }
  0xd3   : > { %9610 = vmatmul.mubr.msk.f32.gmra.mrb[30].mxu1 %vm532_vm1, %v11647_v9  ;;  %9614 = vmatprep.mubr.msk.f32.mxu0 %vm532_vm1, %v11008_v12  ;;  %v11669_v9 = vld [vmem:[%s12825_s3 + $0x14] sm:$0xf]  ;;  %v12965_v12 = vld [vmem:[#allocation2_spill] sm:$0xff] }
  0xd4   : > { %9664 = vmatprep.mubr.msk.f32.mxu1 %vm532_vm1, %v11011_v13  ;;  %v12966_v13 = vld [vmem:[#allocation3_spill] sm:$0xff] }
  0xd6   : > { %9615 = vmatmul.mubr.msk.f32.vlgmr.msra.gmra.mrb[0].mxu0 %vm532_vm1, %v11030_v16  ;;  %v12967_v16 = vld [vmem:[#allocation4_spill] sm:$0xff] }
  0xd7   : > { %9665 = vmatmul.mubr.msk.f32.vlgmr.msra.gmra.mrb[0].mxu1 %vm532_vm1, %v11033_v17  ;;  %9713 = vmatpush3.msk.msra.mxu0 %vm629_vm0, %v11344_v7  ;;  %v12968_v17 = vld [vmem:[#allocation5_spill] sm:$0xff] }
  0xd8   : > { %9763 = vmatpush3.msk.msra.mxu1 %vm629_vm0, %v11349_v8  ;;  %9617 = vmatprep.mubr.msk.f32.mxu0 %vm532_vm1, %v11040_v18  ;;  %v11788_v18 = vld [vmem:[%s10850_s12 + $0x180] sm:$0xff]  ;;  %v12031_v7 = vld [vmem:[%s10855_s15 + $0x111] sm:$0xff] }
  0xd9   : > { %9667 = vmatprep.mubr.msk.f32.mxu1 %vm532_vm1, %v11043_v19  ;;  %9812 = vmatprep.subr.msk.mxu0 %vm629_vm0, %v11664_v3  ;;  %v11791_v19 = vld [vmem:[%s10855_s15 + $0x180] sm:$0xff] }
  0xda   : > { %9862 = vmatprep.subr.msk.mxu1 %vm629_vm0, %v11669_v9  ;;  %9618 = vmatmul.mubr.msk.f32.gmra.mrb[2].mxu0 %vm532_vm1, %v11058_v10  ;;  %v12969_v10 = vld [vmem:[#allocation6_spill] sm:$0xff] }
  0xdb   : > { %9668 = vmatmul.mubr.msk.f32.gmra.mrb[2].mxu1 %vm532_vm1, %v11061_v11  ;;  %9620 = vmatprep.mubr.msk.f32.mxu0 %vm532_vm1, %v11064_v20  ;;  %v12970_v11 = vld [vmem:[#allocation7_spill] sm:$0xff] }
  0xdc   : > { %9670 = vmatprep.mubr.msk.f32.mxu1 %vm532_vm1, %v11067_v21  ;;  %v11802_v20 = vld [vmem:[%s10850_s12 + $0x188] sm:$0xff] }
  0xdd   : > { %v11805_v21 = vld [vmem:[%s10855_s15 + $0x188] sm:$0xff] }
  0xde   : > { %9621 = vmatmul.mubr.msk.f32.gmra.mrb[4].mxu0 %vm532_vm1, %v11078_v22  ;;  %v8053_v22 = vld [vmem:[%s10850_s12 + $0x19] sm:$0xff]  ;;  %v12034_v8 = vld [vmem:[%s10850_s12 + $0x121] sm:$0xff] }
  0xdf   : > { %9671 = vmatmul.mubr.msk.f32.gmra.mrb[4].mxu1 %vm532_vm1, %v11081_v23  ;;  %9623 = vmatprep.mubr.msk.f32.mxu0 %vm532_vm1, %v11084_v24  ;;  %v8085_v23 = vld [vmem:[%s10855_s15 + $0x19] sm:$0xff]  ;;  %v8054_v24 = vld [vmem:[%s10850_s12 + $0x21] sm:$0xff] }
  0xe0   : > { %9673 = vmatprep.mubr.msk.f32.mxu1 %vm532_vm1, %v11087_v25  ;;  %v8086_v25 = vld [vmem:[%s10855_s15 + $0x21] sm:$0xff] }
  0xe2   : > { %9624 = vmatmul.mubr.msk.f32.gmra.mrb[6].mxu0 %vm532_vm1, %v11098_v26  ;;  %v11818_v26 = vld [vmem:[%s10850_s12 + $0x31] sm:$0xff] }
  0xe3   : > { %9674 = vmatmul.mubr.msk.f32.gmra.mrb[6].mxu1 %vm532_vm1, %v11101_v27  ;;  %9626 = vmatprep.mubr.msk.f32.mxu0 %vm532_vm1, %v11104_v28  ;;  %v11821_v27 = vld [vmem:[%s10855_s15 + $0x31] sm:$0xff] }
  0xe4   : > { %9676 = vmatprep.mubr.msk.f32.mxu1 %vm532_vm1, %v11107_v29  ;;  %v11828_v28 = vld [vmem:[%s12824_s2 + $0x18] sm:$0xf] }
  0xe5   : > { %v11833_v29 = vld [vmem:[%s12825_s3 + $0x18] sm:$0xf] }
  0xe6   : > { %9627 = vmatmul.mubr.msk.f32.gmra.mrb[8].mxu0 %vm532_vm1, %v11118_v30  ;;  %v11840_v30 = vld [vmem:[%s10850_s12 + $0x39] sm:$0xff] }
  0xe7   : > { %9677 = vmatmul.mubr.msk.f32.gmra.mrb[8].mxu1 %vm532_vm1, %v11121_v31  ;;  %9629 = vmatprep.mubr.msk.f32.mxu0 %vm532_vm1, %v11124_v32  ;;  %v11843_v31 = vld [vmem:[%s10855_s15 + $0x39] sm:$0xff]  ;;  %v11850_v32 = vld [vmem:[%s10850_s12 + $0x49] sm:$0xff] }
  0xe8   : > { %9679 = vmatprep.mubr.msk.f32.mxu1 %vm532_vm1, %v11127_v33  ;;  %v11853_v33 = vld [vmem:[%s10855_s15 + $0x49] sm:$0xff] }
  0xea   : > { %9630 = vmatmul.mubr.msk.f32.gmra.mrb[10].mxu0 %vm532_vm1, %v11138_v34  ;;  %v11868_v34 = vld [vmem:[%s10850_s12 + $0x51] sm:$0xff] }
  0xeb   : > { %9680 = vmatmul.mubr.msk.f32.gmra.mrb[10].mxu1 %vm532_vm1, %v11141_v35  ;;  %9632 = vmatprep.mubr.msk.f32.mxu0 %vm532_vm1, %v11144_v36  ;;  %v11871_v35 = vld [vmem:[%s10855_s15 + $0x51] sm:$0xff]  ;;  %v11874_v36 = vld [vmem:[%s10850_s12 + $0x61] sm:$0xff] }
  0xec   : > { %9682 = vmatprep.mubr.msk.f32.mxu1 %vm532_vm1, %v11147_v37  ;;  %v11877_v37 = vld [vmem:[%s10855_s15 + $0x61] sm:$0xff] }
  0xee   : > { %9633 = vmatmul.mubr.msk.f32.gmra.mrb[12].mxu0 %vm532_vm1, %v11158_v38  ;;  %v11888_v38 = vld [vmem:[%s10850_s12 + $0x69] sm:$0xff] }
  0xef   : > { %9683 = vmatmul.mubr.msk.f32.gmra.mrb[12].mxu1 %vm532_vm1, %v11161_v39  ;;  %9635 = vmatprep.mubr.msk.f32.mxu0 %vm532_vm1, %v11164_v40  ;;  %v11891_v39 = vld [vmem:[%s10855_s15 + $0x69] sm:$0xff]  ;;  %v11894_v40 = vld [vmem:[%s10850_s12 + $0x79] sm:$0xff] }
  0xf0   : > { %9685 = vmatprep.mubr.msk.f32.mxu1 %vm532_vm1, %v11167_v41  ;;  %v11897_v41 = vld [vmem:[%s10855_s15 + $0x79] sm:$0xff] }
  0xf2   : > { %9636 = vmatmul.mubr.msk.f32.gmra.mrb[14].mxu0 %vm532_vm1, %v11178_v42  ;;  %v11908_v42 = vld [vmem:[%s10850_s12 + $0x81] sm:$0xff] }
  0xf3   : > { %9686 = vmatmul.mubr.msk.f32.gmra.mrb[14].mxu1 %vm532_vm1, %v11181_v43  ;;  %9638 = vmatprep.mubr.msk.f32.mxu0 %vm532_vm1, %v11184_v44  ;;  %v11911_v43 = vld [vmem:[%s10855_s15 + $0x81] sm:$0xff]  ;;  %v11914_v44 = vld [vmem:[%s10850_s12 + $0x91] sm:$0xff] }
  0xf4   : > { %9688 = vmatprep.mubr.msk.f32.mxu1 %vm532_vm1, %v11187_v45  ;;  %v11917_v45 = vld [vmem:[%s10855_s15 + $0x91] sm:$0xff] }
  0xf6   : > { %9639 = vmatmul.mubr.msk.f32.gmra.mrb[16].mxu0 %vm532_vm1, %v11198_v46  ;;  %v11928_v46 = vld [vmem:[%s10850_s12 + $0x99] sm:$0xff] }
  0xf7   : > { %9689 = vmatmul.mubr.msk.f32.gmra.mrb[16].mxu1 %vm532_vm1, %v11201_v47  ;;  %9641 = vmatprep.mubr.msk.f32.mxu0 %vm532_vm1, %v11204_v48  ;;  %v11931_v47 = vld [vmem:[%s10855_s15 + $0x99] sm:$0xff]  ;;  %v11934_v48 = vld [vmem:[%s10850_s12 + $0xa9] sm:$0xff] }
  0xf8   : > { %9691 = vmatprep.mubr.msk.f32.mxu1 %vm532_vm1, %v11207_v49  ;;  %v11937_v49 = vld [vmem:[%s10855_s15 + $0xa9] sm:$0xff] }
  0xfa   : > { %9642 = vmatmul.mubr.msk.f32.gmra.mrb[18].mxu0 %vm532_vm1, %v11218_v50  ;;  %v11948_v50 = vld [vmem:[%s10850_s12 + $0xb1] sm:$0xff] }
  0xfb   : > { %9692 = vmatmul.mubr.msk.f32.gmra.mrb[18].mxu1 %vm532_vm1, %v11221_v51  ;;  %9644 = vmatprep.mubr.msk.f32.mxu0 %vm532_vm1, %v11224_v52  ;;  %v11951_v51 = vld [vmem:[%s10855_s15 + $0xb1] sm:$0xff]  ;;  %v11954_v52 = vld [vmem:[%s10850_s12 + $0xc1] sm:$0xff] }
  0xfc   : > { %9694 = vmatprep.mubr.msk.f32.mxu1 %vm532_vm1, %v11227_v53  ;;  %v11957_v53 = vld [vmem:[%s10855_s15 + $0xc1] sm:$0xff] }
  0xfe   : > { %9645 = vmatmul.mubr.msk.f32.gmra.mrb[20].mxu0 %vm532_vm1, %v11238_v54  ;;  %v11968_v54 = vld [vmem:[%s10850_s12 + $0xc9] sm:$0xff] }
  0xff   : > { %9695 = vmatmul.mubr.msk.f32.gmra.mrb[20].mxu1 %vm532_vm1, %v11241_v55  ;;  %9647 = vmatprep.mubr.msk.f32.mxu0 %vm532_vm1, %v11244_v56  ;;  %v11971_v55 = vld [vmem:[%s10855_s15 + $0xc9] sm:$0xff]  ;;  %v11974_v56 = vld [vmem:[%s10850_s12 + $0xd9] sm:$0xff] }
 0x100   : > { %9697 = vmatprep.mubr.msk.f32.mxu1 %vm532_vm1, %v11247_v57  ;;  %v11977_v57 = vld [vmem:[%s10855_s15 + $0xd9] sm:$0xff] }
 0x102   : > { %9648 = vmatmul.mubr.msk.f32.gmra.mrb[22].mxu0 %vm532_vm1, %v11258_v58  ;;  %v11988_v58 = vld [vmem:[%s10850_s12 + $0xe1] sm:$0xff] }
 0x103   : > { %9698 = vmatmul.mubr.msk.f32.gmra.mrb[22].mxu1 %vm532_vm1, %v11261_v59  ;;  %9650 = vmatprep.mubr.msk.f32.mxu0 %vm532_vm1, %v11264_v60  ;;  %v11991_v59 = vld [vmem:[%s10855_s15 + $0xe1] sm:$0xff]  ;;  %v11994_v60 = vld [vmem:[%s10850_s12 + $0xf1] sm:$0xff] }
 0x104   : > { %9700 = vmatprep.mubr.msk.f32.mxu1 %vm532_vm1, %v11267_v61  ;;  %v11997_v61 = vld [vmem:[%s10855_s15 + $0xf1] sm:$0xff] }
 0x106   : > { %9651 = vmatmul.mubr.msk.f32.gmra.mrb[24].mxu0 %vm532_vm1, %v11278_v62  ;;  %v12008_v62 = vld [vmem:[%s10850_s12 + $0xf9] sm:$0xff] }
 0x107   : > { %9701 = vmatmul.mubr.msk.f32.gmra.mrb[24].mxu1 %vm532_vm1, %v11281_v63  ;;  %9653 = vmatprep.mubr.msk.f32.mxu0 %vm532_vm1, %v11284_v0  ;;  %v12011_v63 = vld [vmem:[%s10855_s15 + $0xf9] sm:$0xff]  ;;  %v12014_v0 = vld [vmem:[%s10850_s12 + $0x109] sm:$0xff] }
 0x108   : > { %9703 = vmatprep.mubr.msk.f32.mxu1 %vm532_vm1, %v11287_v1  ;;  %v12017_v1 = vld [vmem:[%s10855_s15 + $0x109] sm:$0xff] }
 0x10a   : > { %9654 = vmatmul.mubr.msk.f32.gmra.mrb[26].mxu0 %vm532_vm1, %v12965_v12  ;;  %v12048_v12 = vld [vmem:[%s10850_s12 + $0x129] sm:$0xff] }
 0x10b   : > { %9704 = vmatmul.mubr.msk.f32.gmra.mrb[26].mxu1 %vm532_vm1, %v12966_v13  ;;  %9656 = vmatprep.mubr.msk.f32.mxu0 %vm532_vm1, %v12967_v16  ;;  %v12051_v13 = vld [vmem:[%s10855_s15 + $0x129] sm:$0xff]  ;;  %v12054_v16 = vld [vmem:[%s10850_s12 + $0x139] sm:$0xff] }
 0x10c   : > { %9706 = vmatprep.mubr.msk.f32.mxu1 %vm532_vm1, %v12968_v17  ;;  %12971 = vst [vmem:[#allocation2_spill] sm:$0xff] %v12054_v16  ;;  %v12057_v17 = vld [vmem:[%s10855_s15 + $0x139] sm:$0xff] }
 0x10d   : > { %12972 = vst [vmem:[#allocation3_spill] sm:$0xff] %v12057_v17 }
 0x10e   : > { %9657 = vmatmul.mubr.msk.f32.gmra.mrb[28].mxu0 %vm532_vm1, %v12969_v10  ;;  %v12068_v10 = vld [vmem:[%s10850_s12 + $0x141] sm:$0xff] }
 0x10f   : > { %9707 = vmatmul.mubr.msk.f32.gmra.mrb[28].mxu1 %vm532_vm1, %v12970_v11  ;;  %9659 = vmatprep.mubr.msk.f32.mxu0 %vm532_vm1, %v11788_v18  ;;  %12973 = vst [vmem:[#allocation4_spill] sm:$0xff] %v12068_v10  ;;  %v12071_v11 = vld [vmem:[%s10855_s15 + $0x141] sm:$0xff] }
 0x110   : > { %9709 = vmatprep.mubr.msk.f32.mxu1 %vm532_vm1, %v11791_v19  ;;  %12974 = vst [vmem:[#allocation5_spill] sm:$0xff] %v12071_v11 }
 0x112   : > { %9660 = vmatmul.mubr.msk.f32.gmra.mrb[30].mxu0 %vm532_vm1, %v11802_v20 }
 0x113   : > { %9710 = vmatmul.mubr.msk.f32.gmra.mrb[30].mxu1 %vm532_vm1, %v11805_v21  ;;  %9714 = vmatprep.mubr.msk.f32.mxu0 %vm532_vm1, %v8053_v22  ;;  %v12074_v22 = vld [vmem:[%s10850_s12 + $0x151] sm:$0xff] }
 0x114   : > { %9764 = vmatprep.mubr.msk.f32.mxu1 %vm532_vm1, %v8085_v23  ;;  %12975 = vst [vmem:[#allocation6_spill] sm:$0xff] %v12074_v22  ;;  %v12077_v23 = vld [vmem:[%s10855_s15 + $0x151] sm:$0xff] }
 0x115   : > { %12976 = vst [vmem:[#allocation7_spill] sm:$0xff] %v12077_v23 }
 0x116   : > { %9715 = vmatmul.mubr.msk.f32.vlgmr.msra.gmra.mrb[0].mxu0 %vm532_vm1, %v8054_v24  ;;  %v12088_v24 = vld [vmem:[%s10850_s12 + $0x159] sm:$0xff] }
 0x117   : > { %9765 = vmatmul.mubr.msk.f32.vlgmr.msra.gmra.mrb[0].mxu1 %vm532_vm1, %v8086_v25  ;;  %9813 = vmatpush3.msk.msra.mxu0 %vm629_vm0, %v11664_v3  ;;  %v12028_v3 = vld [vmem:[%s10850_s12 + $0x111] sm:$0xff]  ;;  %12977 = vst [vmem:[#allocation62_spill] sm:$0xff] %v12088_v24  ;;  %v12091_v25 = vld [vmem:[%s10855_s15 + $0x159] sm:$0xff] }
 0x118   : > { %9863 = vmatpush3.msk.msra.mxu1 %vm629_vm0, %v11669_v9  ;;  %9717 = vmatprep.mubr.msk.f32.mxu0 %vm532_vm1, %v11818_v26  ;;  %v12037_v9 = vld [vmem:[%s10855_s15 + $0x121] sm:$0xff]  ;;  %12978 = vst [vmem:[#allocation63_spill] sm:$0xff] %v12091_v25 }
 0x119   : > { %9767 = vmatprep.mubr.msk.f32.mxu1 %vm532_vm1, %v11821_v27  ;;  %9912 = vmatprep.subr.msk.mxu0 %vm629_vm0, %v11828_v28 }
 0x11a   : > { %9962 = vmatprep.subr.msk.mxu1 %vm629_vm0, %v11833_v29  ;;  %9718 = vmatmul.mubr.msk.f32.gmra.mrb[2].mxu0 %vm532_vm1, %v11840_v30 }
 0x11b   : > { %9768 = vmatmul.mubr.msk.f32.gmra.mrb[2].mxu1 %vm532_vm1, %v11843_v31  ;;  %9720 = vmatprep.mubr.msk.f32.mxu0 %vm532_vm1, %v11850_v32 }
 0x11c   : > { %9770 = vmatprep.mubr.msk.f32.mxu1 %vm532_vm1, %v11853_v33 }
 0x11e   : > { %9721 = vmatmul.mubr.msk.f32.gmra.mrb[4].mxu0 %vm532_vm1, %v11868_v34 }
 0x11f   : > { %9771 = vmatmul.mubr.msk.f32.gmra.mrb[4].mxu1 %vm532_vm1, %v11871_v35  ;;  %9723 = vmatprep.mubr.msk.f32.mxu0 %vm532_vm1, %v11874_v36 }
 0x120   : > { %9773 = vmatprep.mubr.msk.f32.mxu1 %vm532_vm1, %v11877_v37 }
 0x122   : > { %9724 = vmatmul.mubr.msk.f32.gmra.mrb[6].mxu0 %vm532_vm1, %v11888_v38 }
 0x123   : > { %9774 = vmatmul.mubr.msk.f32.gmra.mrb[6].mxu1 %vm532_vm1, %v11891_v39  ;;  %9726 = vmatprep.mubr.msk.f32.mxu0 %vm532_vm1, %v11894_v40 }
 0x124   : > { %9776 = vmatprep.mubr.msk.f32.mxu1 %vm532_vm1, %v11897_v41 }
 0x126   : > { %9727 = vmatmul.mubr.msk.f32.gmra.mrb[8].mxu0 %vm532_vm1, %v11908_v42 }
 0x127   : > { %9777 = vmatmul.mubr.msk.f32.gmra.mrb[8].mxu1 %vm532_vm1, %v11911_v43  ;;  %9729 = vmatprep.mubr.msk.f32.mxu0 %vm532_vm1, %v11914_v44 }
 0x128   : > { %9779 = vmatprep.mubr.msk.f32.mxu1 %vm532_vm1, %v11917_v45 }
 0x12a   : > { %9730 = vmatmul.mubr.msk.f32.gmra.mrb[10].mxu0 %vm532_vm1, %v11928_v46 }
 0x12b   : > { %9780 = vmatmul.mubr.msk.f32.gmra.mrb[10].mxu1 %vm532_vm1, %v11931_v47  ;;  %9732 = vmatprep.mubr.msk.f32.mxu0 %vm532_vm1, %v11934_v48 }
 0x12c   : > { %9782 = vmatprep.mubr.msk.f32.mxu1 %vm532_vm1, %v11937_v49 }
 0x12e   : > { %9733 = vmatmul.mubr.msk.f32.gmra.mrb[12].mxu0 %vm532_vm1, %v11948_v50 }
 0x12f   : > { %9783 = vmatmul.mubr.msk.f32.gmra.mrb[12].mxu1 %vm532_vm1, %v11951_v51  ;;  %9735 = vmatprep.mubr.msk.f32.mxu0 %vm532_vm1, %v11954_v52 }
 0x130   : > { %9785 = vmatprep.mubr.msk.f32.mxu1 %vm532_vm1, %v11957_v53 }
 0x132   : > { %9736 = vmatmul.mubr.msk.f32.gmra.mrb[14].mxu0 %vm532_vm1, %v11968_v54 }
 0x133   : > { %9786 = vmatmul.mubr.msk.f32.gmra.mrb[14].mxu1 %vm532_vm1, %v11971_v55  ;;  %9738 = vmatprep.mubr.msk.f32.mxu0 %vm532_vm1, %v11974_v56 }
 0x134   : > { %9788 = vmatprep.mubr.msk.f32.mxu1 %vm532_vm1, %v11977_v57 }
 0x136   : > { %9739 = vmatmul.mubr.msk.f32.gmra.mrb[16].mxu0 %vm532_vm1, %v11988_v58 }
 0x137   : > { %9789 = vmatmul.mubr.msk.f32.gmra.mrb[16].mxu1 %vm532_vm1, %v11991_v59  ;;  %9741 = vmatprep.mubr.msk.f32.mxu0 %vm532_vm1, %v11994_v60 }
 0x138   : > { %9791 = vmatprep.mubr.msk.f32.mxu1 %vm532_vm1, %v11997_v61 }
 0x13a   : > { %9742 = vmatmul.mubr.msk.f32.gmra.mrb[18].mxu0 %vm532_vm1, %v12008_v62 }
 0x13b   : > { %9792 = vmatmul.mubr.msk.f32.gmra.mrb[18].mxu1 %vm532_vm1, %v12011_v63  ;;  %9744 = vmatprep.mubr.msk.f32.mxu0 %vm532_vm1, %v12014_v0 }
 0x13c   : > { %9794 = vmatprep.mubr.msk.f32.mxu1 %vm532_vm1, %v12017_v1 }
 0x13e   : > { %9745 = vmatmul.mubr.msk.f32.gmra.mrb[20].mxu0 %vm532_vm1, %v12028_v3 }
 0x13f   : > { %9795 = vmatmul.mubr.msk.f32.gmra.mrb[20].mxu1 %vm532_vm1, %v12031_v7  ;;  %9747 = vmatprep.mubr.msk.f32.mxu0 %vm532_vm1, %v12034_v8 }
 0x140   : > { %9797 = vmatprep.mubr.msk.f32.mxu1 %vm532_vm1, %v12037_v9 }
 0x142   : > { %9748 = vmatmul.mubr.msk.f32.gmra.mrb[22].mxu0 %vm532_vm1, %v12048_v12 }
 0x143   : > { %9798 = vmatmul.mubr.msk.f32.gmra.mrb[22].mxu1 %vm532_vm1, %v12051_v13  ;;  %9750 = vmatprep.mubr.msk.f32.mxu0 %vm532_vm1, %v12054_v16  ;;  %v12097_v16 = vld [vmem:[%s10855_s15 + $0x169] sm:$0xff] }
 0x144   : > { %9800 = vmatprep.mubr.msk.f32.mxu1 %vm532_vm1, %v12057_v17  ;;  %v12094_v17 = vld [vmem:[%s10850_s12 + $0x169] sm:$0xff]  ;;  %12980 = vst [vmem:[#allocation65_spill] sm:$0xff] %v12097_v16 }
 0x145   : > { %12979 = vst [vmem:[#allocation64_spill] sm:$0xff] %v12094_v17 }
 0x146   : > { %9751 = vmatmul.mubr.msk.f32.gmra.mrb[24].mxu0 %vm532_vm1, %v12068_v10  ;;  %v12117_v10 = vld [vmem:[%s10855_s15 + $0x181] sm:$0xff] }
 0x147   : > { %9801 = vmatmul.mubr.msk.f32.gmra.mrb[24].mxu1 %vm532_vm1, %v12071_v11  ;;  %9753 = vmatprep.mubr.msk.f32.mxu0 %vm532_vm1, %v12074_v22  ;;  %v12111_v22 = vld [vmem:[%s10855_s15 + $0x171] sm:$0xff]  ;;  %v12114_v11 = vld [vmem:[%s10850_s12 + $0x181] sm:$0xff]  ;;  %12984 = vst [vmem:[#allocation69_spill] sm:$0xff] %v12117_v10 }
 0x148   : > { %9803 = vmatprep.mubr.msk.f32.mxu1 %vm532_vm1, %v12077_v23  ;;  %v12108_v23 = vld [vmem:[%s10850_s12 + $0x171] sm:$0xff]  ;;  %12982 = vst [vmem:[#allocation67_spill] sm:$0xff] %v12111_v22  ;;  %12983 = vst [vmem:[#allocation68_spill] sm:$0xff] %v12114_v11 }
 0x149   : > { %12981 = vst [vmem:[#allocation66_spill] sm:$0xff] %v12108_v23 }
 0x14a   : > { %9754 = vmatmul.mubr.msk.f32.gmra.mrb[26].mxu0 %vm532_vm1, %v12088_v24  ;;  %v13000_v24 = vld [vmem:[#allocation21_spill] sm:$0xff] }
 0x14b   : > { %9804 = vmatmul.mubr.msk.f32.gmra.mrb[26].mxu1 %vm532_vm1, %v12091_v25  ;;  %9756 = vmatprep.mubr.msk.f32.mxu0 %vm532_vm1, %v12094_v17  ;;  %v12131_v17 = vld [vmem:[%s10855_s15 + $0x189] sm:$0xff]  ;;  %v12148_v25 = vld [vmem:[%s12824_s2 + $0x1c] sm:$0xf] }
 0x14c   : > { %9806 = vmatprep.mubr.msk.f32.mxu1 %vm532_vm1, %v12097_v16  ;;  %v12128_v16 = vld [vmem:[%s10850_s12 + $0x189] sm:$0xff]  ;;  %12986 = vst [vmem:[#allocation71_spill] sm:$0xff] %v12131_v17 }
 0x14d   : > { %12985 = vst [vmem:[#allocation70_spill] sm:$0xff] %v12128_v16 }
 0x14e   : > { %9757 = vmatmul.mubr.msk.f32.gmra.mrb[28].mxu0 %vm532_vm1, %v12108_v23  ;;  %v12987_v23 = vld [vmem:[#allocation8_spill] sm:$0xff] }
 0x14f   : > { %9807 = vmatmul.mubr.msk.f32.gmra.mrb[28].mxu1 %vm532_vm1, %v12111_v22  ;;  %9759 = vmatprep.mubr.msk.f32.mxu0 %vm532_vm1, %v12114_v11  ;;  %v12988_v22 = vld [vmem:[#allocation9_spill] sm:$0xff]  ;;  %v12989_v11 = vld [vmem:[#allocation10_spill] sm:$0xff] }
 0x150   : > { %9809 = vmatprep.mubr.msk.f32.mxu1 %vm532_vm1, %v12117_v10  ;;  %v12990_v10 = vld [vmem:[#allocation11_spill] sm:$0xff] }
 0x152   : > { %9760 = vmatmul.mubr.msk.f32.gmra.mrb[30].mxu0 %vm532_vm1, %v12128_v16  ;;  %v12999_v16 = vld [vmem:[#allocation20_spill] sm:$0xff] }
 0x153   : > { %9810 = vmatmul.mubr.msk.f32.gmra.mrb[30].mxu1 %vm532_vm1, %v12131_v17  ;;  %9814 = vmatprep.mubr.msk.f32.mxu0 %vm532_vm1, %v12987_v23  ;;  %v12153_v17 = vld [vmem:[%s12825_s3 + $0x1c] sm:$0xf]  ;;  %v12994_v23 = vld [vmem:[#allocation15_spill] sm:$0xff] }
 0x154   : > { %9864 = vmatprep.mubr.msk.f32.mxu1 %vm532_vm1, %v12988_v22  ;;  %v12993_v22 = vld [vmem:[#allocation14_spill] sm:$0xff] }
 0x156   : > { %9815 = vmatmul.mubr.msk.f32.vlgmr.msra.gmra.mrb[0].mxu0 %vm532_vm1, %v12989_v11  ;;  %v12991_v11 = vld [vmem:[#allocation12_spill] sm:$0xff] }
 0x157   : > { %9865 = vmatmul.mubr.msk.f32.vlgmr.msra.gmra.mrb[0].mxu1 %vm532_vm1, %v12990_v10  ;;  %9913 = vmatpush3.msk.msra.mxu0 %vm629_vm0, %v11828_v28  ;;  %v12992_v10 = vld [vmem:[#allocation13_spill] sm:$0xff]  ;;  %v12995_v28 = vld [vmem:[#allocation16_spill] sm:$0xff] }
 0x158   : > { %9963 = vmatpush3.msk.msra.mxu1 %vm629_vm0, %v11833_v29  ;;  %9817 = vmatprep.mubr.msk.f32.mxu0 %vm532_vm1, %v12991_v11  ;;  %v12996_v29 = vld [vmem:[#allocation17_spill] sm:$0xff]  ;;  %v12997_v11 = vld [vmem:[#allocation18_spill] sm:$0xff] }
 0x159   : > { %9867 = vmatprep.mubr.msk.f32.mxu1 %vm532_vm1, %v12992_v10  ;;  %10012 = vmatprep.subr.msk.mxu0 %vm629_vm0, %v12148_v25  ;;  %v12998_v10 = vld [vmem:[#allocation19_spill] sm:$0xff] }
 0x15a   : > { %10062 = vmatprep.subr.msk.mxu1 %vm629_vm0, %v12153_v17  ;;  %9818 = vmatmul.mubr.msk.f32.gmra.mrb[2].mxu0 %vm532_vm1, %v12993_v22  ;;  %v13001_v22 = vld [vmem:[#allocation22_spill] sm:$0xff] }
 0x15b   : > { %9868 = vmatmul.mubr.msk.f32.gmra.mrb[2].mxu1 %vm532_vm1, %v12994_v23  ;;  %9820 = vmatprep.mubr.msk.f32.mxu0 %vm532_vm1, %v12995_v28  ;;  %v13002_v23 = vld [vmem:[#allocation23_spill] sm:$0xff]  ;;  %v13003_v28 = vld [vmem:[#allocation24_spill] sm:$0xff] }
 0x15c   : > { %9870 = vmatprep.mubr.msk.f32.mxu1 %vm532_vm1, %v12996_v29  ;;  %v13004_v29 = vld [vmem:[#allocation25_spill] sm:$0xff] }
 0x15e   : > { %9821 = vmatmul.mubr.msk.f32.gmra.mrb[4].mxu0 %vm532_vm1, %v12997_v11  ;;  %v13005_v11 = vld [vmem:[#allocation26_spill] sm:$0xff] }
 0x15f   : > { %9871 = vmatmul.mubr.msk.f32.gmra.mrb[4].mxu1 %vm532_vm1, %v12998_v10  ;;  %9823 = vmatprep.mubr.msk.f32.mxu0 %vm532_vm1, %v12999_v16  ;;  %v13006_v10 = vld [vmem:[#allocation27_spill] sm:$0xff]  ;;  %v13007_v16 = vld [vmem:[#allocation28_spill] sm:$0xff] }
 0x160   : > { %9873 = vmatprep.mubr.msk.f32.mxu1 %vm532_vm1, %v13000_v24  ;;  %v13008_v24 = vld [vmem:[#allocation29_spill] sm:$0xff] }
 0x162   : > { %9824 = vmatmul.mubr.msk.f32.gmra.mrb[6].mxu0 %vm532_vm1, %v13001_v22  ;;  %v13009_v22 = vld [vmem:[#allocation30_spill] sm:$0xff] }
 0x163   : > { %9874 = vmatmul.mubr.msk.f32.gmra.mrb[6].mxu1 %vm532_vm1, %v13002_v23  ;;  %9826 = vmatprep.mubr.msk.f32.mxu0 %vm532_vm1, %v13003_v28  ;;  %v13010_v23 = vld [vmem:[#allocation31_spill] sm:$0xff]  ;;  %v13011_v28 = vld [vmem:[#allocation32_spill] sm:$0xff] }
 0x164   : > { %9876 = vmatprep.mubr.msk.f32.mxu1 %vm532_vm1, %v13004_v29  ;;  %v13012_v29 = vld [vmem:[#allocation33_spill] sm:$0xff] }
 0x166   : > { %9827 = vmatmul.mubr.msk.f32.gmra.mrb[8].mxu0 %vm532_vm1, %v13005_v11  ;;  %v13013_v11 = vld [vmem:[#allocation34_spill] sm:$0xff] }
 0x167   : > { %9877 = vmatmul.mubr.msk.f32.gmra.mrb[8].mxu1 %vm532_vm1, %v13006_v10  ;;  %9829 = vmatprep.mubr.msk.f32.mxu0 %vm532_vm1, %v13007_v16  ;;  %v13014_v10 = vld [vmem:[#allocation35_spill] sm:$0xff]  ;;  %v13015_v16 = vld [vmem:[#allocation36_spill] sm:$0xff] }
 0x168   : > { %9879 = vmatprep.mubr.msk.f32.mxu1 %vm532_vm1, %v13008_v24  ;;  %v13016_v24 = vld [vmem:[#allocation37_spill] sm:$0xff] }
 0x16a   : > { %9830 = vmatmul.mubr.msk.f32.gmra.mrb[10].mxu0 %vm532_vm1, %v13009_v22  ;;  %v13017_v22 = vld [vmem:[#allocation38_spill] sm:$0xff] }
 0x16b   : > { %9880 = vmatmul.mubr.msk.f32.gmra.mrb[10].mxu1 %vm532_vm1, %v13010_v23  ;;  %9832 = vmatprep.mubr.msk.f32.mxu0 %vm532_vm1, %v13011_v28  ;;  %v13018_v23 = vld [vmem:[#allocation39_spill] sm:$0xff]  ;;  %v13019_v28 = vld [vmem:[#allocation40_spill] sm:$0xff] }
 0x16c   : > { %9882 = vmatprep.mubr.msk.f32.mxu1 %vm532_vm1, %v13012_v29  ;;  %v13020_v29 = vld [vmem:[#allocation41_spill] sm:$0xff] }
 0x16e   : > { %9833 = vmatmul.mubr.msk.f32.gmra.mrb[12].mxu0 %vm532_vm1, %v13013_v11  ;;  %v13021_v11 = vld [vmem:[#allocation42_spill] sm:$0xff] }
 0x16f   : > { %9883 = vmatmul.mubr.msk.f32.gmra.mrb[12].mxu1 %vm532_vm1, %v13014_v10  ;;  %9835 = vmatprep.mubr.msk.f32.mxu0 %vm532_vm1, %v13015_v16  ;;  %v13022_v10 = vld [vmem:[#allocation43_spill] sm:$0xff]  ;;  %v13023_v16 = vld [vmem:[#allocation44_spill] sm:$0xff] }
 0x170   : > { %9885 = vmatprep.mubr.msk.f32.mxu1 %vm532_vm1, %v13016_v24  ;;  %v13024_v24 = vld [vmem:[#allocation45_spill] sm:$0xff] }
 0x172   : > { %9836 = vmatmul.mubr.msk.f32.gmra.mrb[14].mxu0 %vm532_vm1, %v13017_v22  ;;  %v13025_v22 = vld [vmem:[#allocation46_spill] sm:$0xff] }
 0x173   : > { %9886 = vmatmul.mubr.msk.f32.gmra.mrb[14].mxu1 %vm532_vm1, %v13018_v23  ;;  %9838 = vmatprep.mubr.msk.f32.mxu0 %vm532_vm1, %v13019_v28  ;;  %v13026_v23 = vld [vmem:[#allocation47_spill] sm:$0xff]  ;;  %v13027_v28 = vld [vmem:[#allocation48_spill] sm:$0xff] }
 0x174   : > { %9888 = vmatprep.mubr.msk.f32.mxu1 %vm532_vm1, %v13020_v29  ;;  %v13028_v29 = vld [vmem:[#allocation49_spill] sm:$0xff] }
 0x176   : > { %9839 = vmatmul.mubr.msk.f32.gmra.mrb[16].mxu0 %vm532_vm1, %v13021_v11  ;;  %v13029_v11 = vld [vmem:[#allocation50_spill] sm:$0xff] }
 0x177   : > { %9889 = vmatmul.mubr.msk.f32.gmra.mrb[16].mxu1 %vm532_vm1, %v13022_v10  ;;  %9841 = vmatprep.mubr.msk.f32.mxu0 %vm532_vm1, %v13023_v16  ;;  %v13030_v10 = vld [vmem:[#allocation51_spill] sm:$0xff]  ;;  %v13031_v16 = vld [vmem:[#allocation52_spill] sm:$0xff] }
 0x178   : > { %9891 = vmatprep.mubr.msk.f32.mxu1 %vm532_vm1, %v13024_v24  ;;  %v13032_v24 = vld [vmem:[#allocation53_spill] sm:$0xff] }
 0x17a   : > { %9842 = vmatmul.mubr.msk.f32.gmra.mrb[18].mxu0 %vm532_vm1, %v13025_v22  ;;  %v13033_v22 = vld [vmem:[#allocation54_spill] sm:$0xff] }
 0x17b   : > { %9892 = vmatmul.mubr.msk.f32.gmra.mrb[18].mxu1 %vm532_vm1, %v13026_v23  ;;  %9844 = vmatprep.mubr.msk.f32.mxu0 %vm532_vm1, %v13027_v28  ;;  %v13034_v23 = vld [vmem:[#allocation55_spill] sm:$0xff]  ;;  %v13035_v28 = vld [vmem:[#allocation56_spill] sm:$0xff] }
 0x17c   : > { %9894 = vmatprep.mubr.msk.f32.mxu1 %vm532_vm1, %v13028_v29  ;;  %v13036_v29 = vld [vmem:[#allocation57_spill] sm:$0xff] }
 0x17e   : > { %9845 = vmatmul.mubr.msk.f32.gmra.mrb[20].mxu0 %vm532_vm1, %v13029_v11  ;;  %v13037_v11 = vld [vmem:[#allocation58_spill] sm:$0xff] }
 0x17f   : > { %9895 = vmatmul.mubr.msk.f32.gmra.mrb[20].mxu1 %vm532_vm1, %v13030_v10  ;;  %9847 = vmatprep.mubr.msk.f32.mxu0 %vm532_vm1, %v13031_v16  ;;  %v13038_v10 = vld [vmem:[#allocation59_spill] sm:$0xff] }
 0x180   : > { %9897 = vmatprep.mubr.msk.f32.mxu1 %vm532_vm1, %v13032_v24  ;;  %v12275_v16 = vld [vmem:[%s10855_s15 + $0x182] sm:$0xff]  ;;  %v8317_v24 = vld [vmem:[%s10850_s12 + $0x30] sm:$0xff] }
 0x182   : > { %9848 = vmatmul.mubr.msk.f32.gmra.mrb[22].mxu0 %vm532_vm1, %v13033_v22  ;;  %v8349_v22 = vld [vmem:[%s10855_s15 + $0x30] sm:$0xff] }
 0x183   : > { %9898 = vmatmul.mubr.msk.f32.gmra.mrb[22].mxu1 %vm532_vm1, %v13034_v23  ;;  %9850 = vmatprep.mubr.msk.f32.mxu0 %vm532_vm1, %v13035_v28  ;;  %v8350_v23 = vld [vmem:[%s10855_s15 + $0x38] sm:$0xff]  ;;  %v8319_v28 = vld [vmem:[%s10850_s12 + $0x48] sm:$0xff] }
 0x184   : > { %9900 = vmatprep.mubr.msk.f32.mxu1 %vm532_vm1, %v13036_v29  ;;  %v8351_v29 = vld [vmem:[%s10855_s15 + $0x48] sm:$0xff] }
 0x186   : > { %9851 = vmatmul.mubr.msk.f32.gmra.mrb[24].mxu0 %vm532_vm1, %v11604_v4  ;;  %v13039_v4 = vld [vmem:[#allocation60_spill] sm:$0xff] }
 0x187   : > { %9901 = vmatmul.mubr.msk.f32.gmra.mrb[24].mxu1 %vm532_vm1, %v11607_v5  ;;  %9853 = vmatprep.mubr.msk.f32.mxu0 %vm532_vm1, %v13037_v11  ;;  %v12272_v5 = vld [vmem:[%s10850_s12 + $0x182] sm:$0xff] }
 0x188   : > { %9903 = vmatprep.mubr.msk.f32.mxu1 %vm532_vm1, %v13038_v10  ;;  %v12308_v11 = vld [vmem:[%s12824_s2 + $0x20] sm:$0xf] }
 0x189   : > { %v12313_v10 = vld [vmem:[%s12825_s3 + $0x20] sm:$0xf] }
 0x18a   : > { %9854 = vmatmul.mubr.msk.f32.gmra.mrb[26].mxu0 %vm532_vm1, %v11624_v14  ;;  %v13040_v14 = vld [vmem:[#allocation61_spill] sm:$0xff] }
 0x18b   : > { %9904 = vmatmul.mubr.msk.f32.gmra.mrb[26].mxu1 %vm532_vm1, %v11627_v15  ;;  %9856 = vmatprep.mubr.msk.f32.mxu0 %vm532_vm1, %v11630_v2  ;;  %v12286_v2 = vld [vmem:[%s10850_s12 + $0x18a] sm:$0xff] }
 0x18c   : > { %9906 = vmatprep.mubr.msk.f32.mxu1 %vm532_vm1, %v13039_v4  ;;  %v12289_v15 = vld [vmem:[%s10855_s15 + $0x18a] sm:$0xff] }
 0x18d   : > { %v8320_v4 = vld [vmem:[%s10850_s12 + $0x50] sm:$0xff] }
 0x18e   : > { %9857 = vmatmul.mubr.msk.f32.gmra.mrb[28].mxu0 %vm532_vm1, %v11644_v6  ;;  %v8318_v6 = vld [vmem:[%s10850_s12 + $0x38] sm:$0xff] }
 0x18f   : > { %9907 = vmatmul.mubr.msk.f32.gmra.mrb[28].mxu1 %vm532_vm1, %v13040_v14  ;;  %9859 = vmatprep.mubr.msk.f32.mxu0 %vm532_vm1, %v12272_v5  ;;  %v8352_v14 = vld [vmem:[%s10855_s15 + $0x50] sm:$0xff] }
 0x190   : > { %9909 = vmatprep.mubr.msk.f32.mxu1 %vm532_vm1, %v12275_v16 }
 0x192   : > { %9860 = vmatmul.mubr.msk.f32.gmra.mrb[30].mxu0 %vm532_vm1, %v12286_v2 }
 0x193   : > { %9910 = vmatmul.mubr.msk.f32.gmra.mrb[30].mxu1 %vm532_vm1, %v12289_v15  ;;  %9914 = vmatprep.mubr.msk.f32.mxu0 %vm532_vm1, %v8317_v24  ;;  %v8321_v24 = vld [vmem:[%s10850_s12 + $0x60] sm:$0xff] }
 0x194   : > { %9964 = vmatprep.mubr.msk.f32.mxu1 %vm532_vm1, %v8349_v22  ;;  %v8353_v22 = vld [vmem:[%s10855_s15 + $0x60] sm:$0xff] }
 0x196   : > { %9915 = vmatmul.mubr.msk.f32.vlgmr.msra.gmra.mrb[0].mxu0 %vm532_vm1, %v8318_v6  ;;  %v8323_v6 = vld [vmem:[%s10850_s12 + $0x78] sm:$0xff] }
 0x197   : > { %9965 = vmatmul.mubr.msk.f32.vlgmr.msra.gmra.mrb[0].mxu1 %vm532_vm1, %v8350_v23  ;;  %10013 = vmatpush3.msk.msra.mxu0 %vm629_vm0, %v12148_v25  ;;  %v8354_v25 = vld [vmem:[%s10855_s15 + $0x68] sm:$0xff]  ;;  %v8355_v23 = vld [vmem:[%s10855_s15 + $0x78] sm:$0xff] }
 0x198   : > { %10063 = vmatpush3.msk.msra.mxu1 %vm629_vm0, %v12153_v17  ;;  %9917 = vmatprep.mubr.msk.f32.mxu0 %vm532_vm1, %v8319_v28  ;;  %v8322_v17 = vld [vmem:[%s10850_s12 + $0x68] sm:$0xff]  ;;  %v8324_v28 = vld [vmem:[%s10850_s12 + $0x80] sm:$0xff] }
 0x199   : > { %9967 = vmatprep.mubr.msk.f32.mxu1 %vm532_vm1, %v8351_v29  ;;  %10112 = vmatprep.subr.msk.mxu0 %vm629_vm0, %v12308_v11  ;;  %v8356_v29 = vld [vmem:[%s10855_s15 + $0x80] sm:$0xff] }
 0x19a   : > { %10162 = vmatprep.subr.msk.mxu1 %vm629_vm0, %v12313_v10  ;;  %9918 = vmatmul.mubr.msk.f32.gmra.mrb[2].mxu0 %vm532_vm1, %v8320_v4  ;;  %v8325_v4 = vld [vmem:[%s10850_s12 + $0x90] sm:$0xff] }
 0x19b   : > { %9968 = vmatmul.mubr.msk.f32.gmra.mrb[2].mxu1 %vm532_vm1, %v8352_v14  ;;  %9920 = vmatprep.mubr.msk.f32.mxu0 %vm532_vm1, %v8321_v24  ;;  %v8357_v14 = vld [vmem:[%s10855_s15 + $0x90] sm:$0xff]  ;;  %v8326_v24 = vld [vmem:[%s10850_s12 + $0x98] sm:$0xff] }
 0x19c   : > { %9970 = vmatprep.mubr.msk.f32.mxu1 %vm532_vm1, %v8353_v22  ;;  %v8358_v22 = vld [vmem:[%s10855_s15 + $0x98] sm:$0xff] }
 0x19e   : > { %9921 = vmatmul.mubr.msk.f32.gmra.mrb[4].mxu0 %vm532_vm1, %v8322_v17  ;;  %v8327_v17 = vld [vmem:[%s10850_s12 + $0xa8] sm:$0xff] }
 0x19f   : > { %9971 = vmatmul.mubr.msk.f32.gmra.mrb[4].mxu1 %vm532_vm1, %v8354_v25  ;;  %9923 = vmatprep.mubr.msk.f32.mxu0 %vm532_vm1, %v8323_v6  ;;  %v8359_v25 = vld [vmem:[%s10855_s15 + $0xa8] sm:$0xff]  ;;  %v8328_v6 = vld [vmem:[%s10850_s12 + $0xb0] sm:$0xff] }
 0x1a0   : > { %9973 = vmatprep.mubr.msk.f32.mxu1 %vm532_vm1, %v8355_v23  ;;  %v8360_v23 = vld [vmem:[%s10855_s15 + $0xb0] sm:$0xff] }
 0x1a2   : > { %9924 = vmatmul.mubr.msk.f32.gmra.mrb[6].mxu0 %vm532_vm1, %v8324_v28  ;;  %v8329_v28 = vld [vmem:[%s10850_s12 + $0xc0] sm:$0xff] }
 0x1a3   : > { %9974 = vmatmul.mubr.msk.f32.gmra.mrb[6].mxu1 %vm532_vm1, %v8356_v29  ;;  %9926 = vmatprep.mubr.msk.f32.mxu0 %vm532_vm1, %v8325_v4  ;;  %v8361_v29 = vld [vmem:[%s10855_s15 + $0xc0] sm:$0xff]  ;;  %v8330_v4 = vld [vmem:[%s10850_s12 + $0xc8] sm:$0xff] }
 0x1a4   : > { %9976 = vmatprep.mubr.msk.f32.mxu1 %vm532_vm1, %v8357_v14  ;;  %v8362_v14 = vld [vmem:[%s10855_s15 + $0xc8] sm:$0xff] }
 0x1a6   : > { %9927 = vmatmul.mubr.msk.f32.gmra.mrb[8].mxu0 %vm532_vm1, %v8326_v24  ;;  %v8331_v24 = vld [vmem:[%s10850_s12 + $0xd8] sm:$0xff] }
 0x1a7   : > { %9977 = vmatmul.mubr.msk.f32.gmra.mrb[8].mxu1 %vm532_vm1, %v8358_v22  ;;  %9929 = vmatprep.mubr.msk.f32.mxu0 %vm532_vm1, %v8327_v17  ;;  %v8363_v22 = vld [vmem:[%s10855_s15 + $0xd8] sm:$0xff]  ;;  %v8332_v17 = vld [vmem:[%s10850_s12 + $0xe0] sm:$0xff] }
 0x1a8   : > { %9979 = vmatprep.mubr.msk.f32.mxu1 %vm532_vm1, %v8359_v25  ;;  %v8364_v25 = vld [vmem:[%s10855_s15 + $0xe0] sm:$0xff] }
 0x1aa   : > { %9930 = vmatmul.mubr.msk.f32.gmra.mrb[10].mxu0 %vm532_vm1, %v8328_v6  ;;  %v8333_v6 = vld [vmem:[%s10850_s12 + $0xf0] sm:$0xff] }
 0x1ab   : > { %9980 = vmatmul.mubr.msk.f32.gmra.mrb[10].mxu1 %vm532_vm1, %v8360_v23  ;;  %9932 = vmatprep.mubr.msk.f32.mxu0 %vm532_vm1, %v8329_v28  ;;  %v8365_v23 = vld [vmem:[%s10855_s15 + $0xf0] sm:$0xff]  ;;  %v8334_v28 = vld [vmem:[%s10850_s12 + $0xf8] sm:$0xff] }
 0x1ac   : > { %9982 = vmatprep.mubr.msk.f32.mxu1 %vm532_vm1, %v8361_v29  ;;  %v8366_v29 = vld [vmem:[%s10855_s15 + $0xf8] sm:$0xff] }
 0x1ae   : > { %9933 = vmatmul.mubr.msk.f32.gmra.mrb[12].mxu0 %vm532_vm1, %v8330_v4  ;;  %v8335_v4 = vld [vmem:[%s10850_s12 + $0x108] sm:$0xff] }
 0x1af   : > { %9983 = vmatmul.mubr.msk.f32.gmra.mrb[12].mxu1 %vm532_vm1, %v8362_v14  ;;  %9935 = vmatprep.mubr.msk.f32.mxu0 %vm532_vm1, %v8331_v24  ;;  %v8367_v14 = vld [vmem:[%s10855_s15 + $0x108] sm:$0xff]  ;;  %v8336_v24 = vld [vmem:[%s10850_s12 + $0x110] sm:$0xff] }
 0x1b0   : > { %9985 = vmatprep.mubr.msk.f32.mxu1 %vm532_vm1, %v8363_v22  ;;  %v8368_v22 = vld [vmem:[%s10855_s15 + $0x110] sm:$0xff] }
 0x1b2   : > { %9936 = vmatmul.mubr.msk.f32.gmra.mrb[14].mxu0 %vm532_vm1, %v8332_v17  ;;  %v8337_v17 = vld [vmem:[%s10850_s12 + $0x120] sm:$0xff] }
 0x1b3   : > { %9986 = vmatmul.mubr.msk.f32.gmra.mrb[14].mxu1 %vm532_vm1, %v8364_v25  ;;  %9938 = vmatprep.mubr.msk.f32.mxu0 %vm532_vm1, %v8333_v6  ;;  %v8369_v25 = vld [vmem:[%s10855_s15 + $0x120] sm:$0xff]  ;;  %v8338_v6 = vld [vmem:[%s10850_s12 + $0x128] sm:$0xff] }
 0x1b4   : > { %9988 = vmatprep.mubr.msk.f32.mxu1 %vm532_vm1, %v8365_v23  ;;  %v8370_v23 = vld [vmem:[%s10855_s15 + $0x128] sm:$0xff] }
 0x1b6   : > { %9939 = vmatmul.mubr.msk.f32.gmra.mrb[16].mxu0 %vm532_vm1, %v8334_v28  ;;  %v8339_v28 = vld [vmem:[%s10850_s12 + $0x138] sm:$0xff] }
 0x1b7   : > { %9989 = vmatmul.mubr.msk.f32.gmra.mrb[16].mxu1 %vm532_vm1, %v8366_v29  ;;  %9941 = vmatprep.mubr.msk.f32.mxu0 %vm532_vm1, %v8335_v4  ;;  %v8371_v29 = vld [vmem:[%s10855_s15 + $0x138] sm:$0xff]  ;;  %v8340_v4 = vld [vmem:[%s10850_s12 + $0x140] sm:$0xff] }
 0x1b8   : > { %9991 = vmatprep.mubr.msk.f32.mxu1 %vm532_vm1, %v8367_v14  ;;  %v8372_v14 = vld [vmem:[%s10855_s15 + $0x140] sm:$0xff] }
 0x1ba   : > { %9942 = vmatmul.mubr.msk.f32.gmra.mrb[18].mxu0 %vm532_vm1, %v8336_v24  ;;  %v8341_v24 = vld [vmem:[%s10850_s12 + $0x150] sm:$0xff] }
 0x1bb   : > { %9992 = vmatmul.mubr.msk.f32.gmra.mrb[18].mxu1 %vm532_vm1, %v8368_v22  ;;  %9944 = vmatprep.mubr.msk.f32.mxu0 %vm532_vm1, %v8337_v17  ;;  %v8373_v22 = vld [vmem:[%s10855_s15 + $0x150] sm:$0xff]  ;;  %v8342_v17 = vld [vmem:[%s10850_s12 + $0x158] sm:$0xff] }
 0x1bc   : > { %9994 = vmatprep.mubr.msk.f32.mxu1 %vm532_vm1, %v8369_v25  ;;  %v8374_v25 = vld [vmem:[%s10855_s15 + $0x158] sm:$0xff] }
 0x1be   : > { %9945 = vmatmul.mubr.msk.f32.gmra.mrb[20].mxu0 %vm532_vm1, %v8338_v6  ;;  %v8343_v6 = vld [vmem:[%s10850_s12 + $0x168] sm:$0xff] }
 0x1bf   : > { %9995 = vmatmul.mubr.msk.f32.gmra.mrb[20].mxu1 %vm532_vm1, %v8370_v23  ;;  %9947 = vmatprep.mubr.msk.f32.mxu0 %vm532_vm1, %v8339_v28  ;;  %v8375_v23 = vld [vmem:[%s10855_s15 + $0x168] sm:$0xff]  ;;  %v8344_v28 = vld [vmem:[%s10850_s12 + $0x170] sm:$0xff] }
 0x1c0   : > { %9997 = vmatprep.mubr.msk.f32.mxu1 %vm532_vm1, %v8371_v29  ;;  %v8376_v29 = vld [vmem:[%s10855_s15 + $0x170] sm:$0xff] }
 0x1c2   : > { %9948 = vmatmul.mubr.msk.f32.gmra.mrb[22].mxu0 %vm532_vm1, %v8340_v4  ;;  %v8347_v4 = vld [vmem:[%s10850_s12 + $0x198] sm:$0xff] }
 0x1c3   : > { %9998 = vmatmul.mubr.msk.f32.gmra.mrb[22].mxu1 %vm532_vm1, %v8372_v14  ;;  %9950 = vmatprep.mubr.msk.f32.mxu0 %vm532_vm1, %v8341_v24  ;;  %v8379_v14 = vld [vmem:[%s10855_s15 + $0x198] sm:$0xff]  ;;  %v8348_v24 = vld [vmem:[%s10850_s12 + $0x1a0] sm:$0xff] }
 0x1c4   : > { %10000 = vmatprep.mubr.msk.f32.mxu1 %vm532_vm1, %v8373_v22  ;;  %v8380_v22 = vld [vmem:[%s10855_s15 + $0x1a0] sm:$0xff] }
 0x1c6   : > { %9951 = vmatmul.mubr.msk.f32.gmra.mrb[24].mxu0 %vm532_vm1, %v8342_v17  ;;  %v8596_v17 = vld [vmem:[%s10850_s12 + $0xe2] sm:$0xff] }
 0x1c7   : > { %10001 = vmatmul.mubr.msk.f32.gmra.mrb[24].mxu1 %vm532_vm1, %v8374_v25  ;;  %9953 = vmatprep.mubr.msk.f32.mxu0 %vm532_vm1, %v8343_v6  ;;  %v8628_v25 = vld [vmem:[%s10855_s15 + $0xe2] sm:$0xff]  ;;  %v8597_v6 = vld [vmem:[%s10850_s12 + $0xf2] sm:$0xff] }
 0x1c8   : > { %10003 = vmatprep.mubr.msk.f32.mxu1 %vm532_vm1, %v8375_v23  ;;  %v8629_v23 = vld [vmem:[%s10855_s15 + $0xf2] sm:$0xff] }
 0x1ca   : > { %9954 = vmatmul.mubr.msk.f32.gmra.mrb[26].mxu0 %vm532_vm1, %v8344_v28  ;;  %v8598_v28 = vld [vmem:[%s10850_s12 + $0xfa] sm:$0xff] }
 0x1cb   : > { %10004 = vmatmul.mubr.msk.f32.gmra.mrb[26].mxu1 %vm532_vm1, %v8376_v29  ;;  %9956 = vmatprep.mubr.msk.f32.mxu0 %vm532_vm1, %v11788_v18  ;;  %v13041_v18 = vld [vmem:[#allocation2_spill] sm:$0xff] }
 0x1cc   : > { %10006 = vmatprep.mubr.msk.f32.mxu1 %vm532_vm1, %v11791_v19  ;;  %v13042_v19 = vld [vmem:[#allocation3_spill] sm:$0xff]  ;;  %v8630_v29 = vld [vmem:[%s10855_s15 + $0xfa] sm:$0xff] }
 0x1ce   : > { %9957 = vmatmul.mubr.msk.f32.gmra.mrb[28].mxu0 %vm532_vm1, %v11802_v20  ;;  %v13043_v20 = vld [vmem:[#allocation4_spill] sm:$0xff] }
 0x1cf   : > { %10007 = vmatmul.mubr.msk.f32.gmra.mrb[28].mxu1 %vm532_vm1, %v11805_v21  ;;  %9959 = vmatprep.mubr.msk.f32.mxu0 %vm532_vm1, %v8347_v4  ;;  %v13044_v21 = vld [vmem:[#allocation5_spill] sm:$0xff]  ;;  %v8599_v4 = vld [vmem:[%s10850_s12 + $0x10a] sm:$0xff] }
 0x1d0   : > { %10009 = vmatprep.mubr.msk.f32.mxu1 %vm532_vm1, %v8379_v14  ;;  %v8631_v14 = vld [vmem:[%s10855_s15 + $0x10a] sm:$0xff] }
 0x1d2   : > { %9960 = vmatmul.mubr.msk.f32.gmra.mrb[30].mxu0 %vm532_vm1, %v8348_v24  ;;  %v8600_v24 = vld [vmem:[%s10850_s12 + $0x112] sm:$0xff] }
 0x1d3   : > { %10010 = vmatmul.mubr.msk.f32.gmra.mrb[30].mxu1 %vm532_vm1, %v8380_v22  ;;  %10014 = vmatprep.mubr.msk.f32.mxu0 %vm532_vm1, %v11818_v26  ;;  %v13045_v26 = vld [vmem:[#allocation6_spill] sm:$0xff]  ;;  %v8632_v22 = vld [vmem:[%s10855_s15 + $0x112] sm:$0xff] }
 0x1d4   : > { %10064 = vmatprep.mubr.msk.f32.mxu1 %vm532_vm1, %v11821_v27  ;;  %v13046_v27 = vld [vmem:[#allocation7_spill] sm:$0xff] }
 0x1d6   : > { %10015 = vmatmul.mubr.msk.f32.vlgmr.msra.gmra.mrb[0].mxu0 %vm532_vm1, %v11840_v30  ;;  %v13047_v30 = vld [vmem:[#allocation62_spill] sm:$0xff] }
 0x1d7   : > { %10065 = vmatmul.mubr.msk.f32.vlgmr.msra.gmra.mrb[0].mxu1 %vm532_vm1, %v11843_v31  ;;  %10113 = vmatpush3.msk.msra.mxu0 %vm629_vm0, %v12308_v11  ;;  %v13048_v31 = vld [vmem:[#allocation63_spill] sm:$0xff]  ;;  %v8595_v11 = vld [vmem:[%s10850_s12 + $0xda] sm:$0xff] }
 0x1d8   : > { %10163 = vmatpush3.msk.msra.mxu1 %vm629_vm0, %v12313_v10  ;;  %10017 = vmatprep.mubr.msk.f32.mxu0 %vm532_vm1, %v11850_v32  ;;  %v13049_v32 = vld [vmem:[#allocation64_spill] sm:$0xff]  ;;  %v8627_v10 = vld [vmem:[%s10855_s15 + $0xda] sm:$0xff] }
 0x1d9   : > { %10067 = vmatprep.mubr.msk.f32.mxu1 %vm532_vm1, %v11853_v33  ;;  %v13050_v33 = vld [vmem:[#allocation65_spill] sm:$0xff] }
 0x1da   : > { %10018 = vmatmul.mubr.msk.f32.gmra.mrb[2].mxu0 %vm532_vm1, %v11868_v34  ;;  %v13051_v34 = vld [vmem:[#allocation66_spill] sm:$0xff] }
 0x1db   : > { %10068 = vmatmul.mubr.msk.f32.gmra.mrb[2].mxu1 %vm532_vm1, %v11871_v35  ;;  %10020 = vmatprep.mubr.msk.f32.mxu0 %vm532_vm1, %v11874_v36  ;;  %v13052_v35 = vld [vmem:[#allocation67_spill] sm:$0xff]  ;;  %v13053_v36 = vld [vmem:[#allocation68_spill] sm:$0xff] }
 0x1dc   : > { %10070 = vmatprep.mubr.msk.f32.mxu1 %vm532_vm1, %v11877_v37  ;;  %v13054_v37 = vld [vmem:[#allocation69_spill] sm:$0xff] }
 0x1de   : > { %10021 = vmatmul.mubr.msk.f32.gmra.mrb[4].mxu0 %vm532_vm1, %v11888_v38  ;;  %v8479_v38 = vld [vmem:[%s10850_s12 + $0x199] sm:$0xff] }
 0x1df   : > { %10071 = vmatmul.mubr.msk.f32.gmra.mrb[4].mxu1 %vm532_vm1, %v11891_v39  ;;  %10023 = vmatprep.mubr.msk.f32.mxu0 %vm532_vm1, %v11894_v40  ;;  %v8511_v39 = vld [vmem:[%s10855_s15 + $0x199] sm:$0xff] }
 0x1e0   : > { %10073 = vmatprep.mubr.msk.f32.mxu1 %vm532_vm1, %v11897_v41  ;;  %v13055_v40 = vld [vmem:[#allocation70_spill] sm:$0xff]  ;;  %v13056_v41 = vld [vmem:[#allocation71_spill] sm:$0xff] }
 0x1e2   : > { %10024 = vmatmul.mubr.msk.f32.gmra.mrb[6].mxu0 %vm532_vm1, %v11908_v42  ;;  %v8480_v42 = vld [vmem:[%s10850_s12 + $0x1a1] sm:$0xff] }
 0x1e3   : > { %10074 = vmatmul.mubr.msk.f32.gmra.mrb[6].mxu1 %vm532_vm1, %v11911_v43  ;;  %10026 = vmatprep.mubr.msk.f32.mxu0 %vm532_vm1, %v11914_v44  ;;  %v8512_v43 = vld [vmem:[%s10855_s15 + $0x1a1] sm:$0xff]  ;;  %v8581_v44 = vld [vmem:[%s10850_s12 + $0x32] sm:$0xff] }
 0x1e4   : > { %10076 = vmatprep.mubr.msk.f32.mxu1 %vm532_vm1, %v11917_v45  ;;  %v8613_v45 = vld [vmem:[%s10855_s15 + $0x32] sm:$0xff] }
 0x1e6   : > { %10027 = vmatmul.mubr.msk.f32.gmra.mrb[8].mxu0 %vm532_vm1, %v11928_v46  ;;  %v8582_v46 = vld [vmem:[%s10850_s12 + $0x3a] sm:$0xff] }
 0x1e7   : > { %10077 = vmatmul.mubr.msk.f32.gmra.mrb[8].mxu1 %vm532_vm1, %v11931_v47  ;;  %10029 = vmatprep.mubr.msk.f32.mxu0 %vm532_vm1, %v11934_v48  ;;  %v8614_v47 = vld [vmem:[%s10855_s15 + $0x3a] sm:$0xff]  ;;  %v8583_v48 = vld [vmem:[%s10850_s12 + $0x4a] sm:$0xff] }
 0x1e8   : > { %10079 = vmatprep.mubr.msk.f32.mxu1 %vm532_vm1, %v11937_v49  ;;  %v8615_v49 = vld [vmem:[%s10855_s15 + $0x4a] sm:$0xff] }
 0x1ea   : > { %10030 = vmatmul.mubr.msk.f32.gmra.mrb[10].mxu0 %vm532_vm1, %v11948_v50  ;;  %v8584_v50 = vld [vmem:[%s10850_s12 + $0x52] sm:$0xff] }
 0x1eb   : > { %10080 = vmatmul.mubr.msk.f32.gmra.mrb[10].mxu1 %vm532_vm1, %v11951_v51  ;;  %10032 = vmatprep.mubr.msk.f32.mxu0 %vm532_vm1, %v11954_v52  ;;  %v8616_v51 = vld [vmem:[%s10855_s15 + $0x52] sm:$0xff]  ;;  %v8585_v52 = vld [vmem:[%s10850_s12 + $0x62] sm:$0xff] }
 0x1ec   : > { %10082 = vmatprep.mubr.msk.f32.mxu1 %vm532_vm1, %v11957_v53  ;;  %v8617_v53 = vld [vmem:[%s10855_s15 + $0x62] sm:$0xff] }
 0x1ee   : > { %10033 = vmatmul.mubr.msk.f32.gmra.mrb[12].mxu0 %vm532_vm1, %v11968_v54  ;;  %v8586_v54 = vld [vmem:[%s10850_s12 + $0x6a] sm:$0xff] }
 0x1ef   : > { %10083 = vmatmul.mubr.msk.f32.gmra.mrb[12].mxu1 %vm532_vm1, %v11971_v55  ;;  %10035 = vmatprep.mubr.msk.f32.mxu0 %vm532_vm1, %v11974_v56  ;;  %v8618_v55 = vld [vmem:[%s10855_s15 + $0x6a] sm:$0xff]  ;;  %v8587_v56 = vld [vmem:[%s10850_s12 + $0x7a] sm:$0xff] }
 0x1f0   : > { %10085 = vmatprep.mubr.msk.f32.mxu1 %vm532_vm1, %v11977_v57  ;;  %v8619_v57 = vld [vmem:[%s10855_s15 + $0x7a] sm:$0xff] }
 0x1f2   : > { %10036 = vmatmul.mubr.msk.f32.gmra.mrb[14].mxu0 %vm532_vm1, %v11988_v58  ;;  %v8588_v58 = vld [vmem:[%s10850_s12 + $0x82] sm:$0xff] }
 0x1f3   : > { %10086 = vmatmul.mubr.msk.f32.gmra.mrb[14].mxu1 %vm532_vm1, %v11991_v59  ;;  %10038 = vmatprep.mubr.msk.f32.mxu0 %vm532_vm1, %v11994_v60  ;;  %v8620_v59 = vld [vmem:[%s10855_s15 + $0x82] sm:$0xff]  ;;  %v8589_v60 = vld [vmem:[%s10850_s12 + $0x92] sm:$0xff] }
 0x1f4   : > { %10088 = vmatprep.mubr.msk.f32.mxu1 %vm532_vm1, %v11997_v61  ;;  %v8621_v61 = vld [vmem:[%s10855_s15 + $0x92] sm:$0xff] }
 0x1f6   : > { %10039 = vmatmul.mubr.msk.f32.gmra.mrb[16].mxu0 %vm532_vm1, %v12008_v62  ;;  %v8590_v62 = vld [vmem:[%s10850_s12 + $0x9a] sm:$0xff] }
 0x1f7   : > { %10089 = vmatmul.mubr.msk.f32.gmra.mrb[16].mxu1 %vm532_vm1, %v12011_v63  ;;  %10041 = vmatprep.mubr.msk.f32.mxu0 %vm532_vm1, %v12014_v0  ;;  %v8622_v63 = vld [vmem:[%s10855_s15 + $0x9a] sm:$0xff]  ;;  %v8591_v0 = vld [vmem:[%s10850_s12 + $0xaa] sm:$0xff] }
 0x1f8   : > { %10091 = vmatprep.mubr.msk.f32.mxu1 %vm532_vm1, %v12017_v1  ;;  %v8623_v1 = vld [vmem:[%s10855_s15 + $0xaa] sm:$0xff] }
 0x1fa   : > { %10042 = vmatmul.mubr.msk.f32.gmra.mrb[18].mxu0 %vm532_vm1, %v12028_v3  ;;  %v8592_v3 = vld [vmem:[%s10850_s12 + $0xb2] sm:$0xff] }
 0x1fb   : > { %10092 = vmatmul.mubr.msk.f32.gmra.mrb[18].mxu1 %vm532_vm1, %v12031_v7  ;;  %10044 = vmatprep.mubr.msk.f32.mxu0 %vm532_vm1, %v12034_v8  ;;  %v8624_v7 = vld [vmem:[%s10855_s15 + $0xb2] sm:$0xff]  ;;  %v8593_v8 = vld [vmem:[%s10850_s12 + $0xc2] sm:$0xff] }
 0x1fc   : > { %10094 = vmatprep.mubr.msk.f32.mxu1 %vm532_vm1, %v12037_v9  ;;  %v8625_v9 = vld [vmem:[%s10855_s15 + $0xc2] sm:$0xff] }
 0x1fe   : > { %10045 = vmatmul.mubr.msk.f32.gmra.mrb[20].mxu0 %vm532_vm1, %v12048_v12  ;;  %v8594_v12 = vld [vmem:[%s10850_s12 + $0xca] sm:$0xff] }
 0x1ff   : > { %10095 = vmatmul.mubr.msk.f32.gmra.mrb[20].mxu1 %vm532_vm1, %v12051_v13  ;;  %10047 = vmatprep.mubr.msk.f32.mxu0 %vm532_vm1, %v13041_v18  ;;  %v8626_v13 = vld [vmem:[%s10855_s15 + $0xca] sm:$0xff]  ;;  %v8601_v18 = vld [vmem:[%s10850_s12 + $0x122] sm:$0xff] }
 0x200   : > { %10097 = vmatprep.mubr.msk.f32.mxu1 %vm532_vm1, %v13042_v19  ;;  %v8633_v19 = vld [vmem:[%s10855_s15 + $0x122] sm:$0xff] }
 0x202   : > { %10048 = vmatmul.mubr.msk.f32.gmra.mrb[22].mxu0 %vm532_vm1, %v13043_v20  ;;  %v8602_v20 = vld [vmem:[%s10850_s12 + $0x12a] sm:$0xff] }
 0x203   : > { %10098 = vmatmul.mubr.msk.f32.gmra.mrb[22].mxu1 %vm532_vm1, %v13044_v21  ;;  %10050 = vmatprep.mubr.msk.f32.mxu0 %vm532_vm1, %v13045_v26  ;;  %v8634_v21 = vld [vmem:[%s10855_s15 + $0x12a] sm:$0xff]  ;;  %v8603_v26 = vld [vmem:[%s10850_s12 + $0x13a] sm:$0xff] }
 0x204   : > { %10100 = vmatprep.mubr.msk.f32.mxu1 %vm532_vm1, %v13046_v27  ;;  %v8635_v27 = vld [vmem:[%s10855_s15 + $0x13a] sm:$0xff] }
 0x206   : > { %10051 = vmatmul.mubr.msk.f32.gmra.mrb[24].mxu0 %vm532_vm1, %v13047_v30  ;;  %v8604_v30 = vld [vmem:[%s10850_s12 + $0x142] sm:$0xff] }
 0x207   : > { %10101 = vmatmul.mubr.msk.f32.gmra.mrb[24].mxu1 %vm532_vm1, %v13048_v31  ;;  %10053 = vmatprep.mubr.msk.f32.mxu0 %vm532_vm1, %v13049_v32  ;;  %v8636_v31 = vld [vmem:[%s10855_s15 + $0x142] sm:$0xff]  ;;  %v8605_v32 = vld [vmem:[%s10850_s12 + $0x152] sm:$0xff] }
 0x208   : > { %10103 = vmatprep.mubr.msk.f32.mxu1 %vm532_vm1, %v13050_v33  ;;  %v8637_v33 = vld [vmem:[%s10855_s15 + $0x152] sm:$0xff] }
 0x20a   : > { %10054 = vmatmul.mubr.msk.f32.gmra.mrb[26].mxu0 %vm532_vm1, %v13051_v34  ;;  %v8606_v34 = vld [vmem:[%s10850_s12 + $0x15a] sm:$0xff] }
 0x20b   : > { %10104 = vmatmul.mubr.msk.f32.gmra.mrb[26].mxu1 %vm532_vm1, %v13052_v35  ;;  %10056 = vmatprep.mubr.msk.f32.mxu0 %vm532_vm1, %v13053_v36  ;;  %v8638_v35 = vld [vmem:[%s10855_s15 + $0x15a] sm:$0xff]  ;;  %v8607_v36 = vld [vmem:[%s10850_s12 + $0x16a] sm:$0xff] }
 0x20c   : > { %10106 = vmatprep.mubr.msk.f32.mxu1 %vm532_vm1, %v13054_v37  ;;  %v8639_v37 = vld [vmem:[%s10855_s15 + $0x16a] sm:$0xff] }
 0x20e   : > { %10057 = vmatmul.mubr.msk.f32.gmra.mrb[28].mxu0 %vm532_vm1, %v13055_v40  ;;  %v8611_v40 = vld [vmem:[%s10850_s12 + $0x19a] sm:$0xff] }
 0x20f   : > { %10107 = vmatmul.mubr.msk.f32.gmra.mrb[28].mxu1 %vm532_vm1, %v13056_v41  ;;  %10059 = vmatprep.mubr.msk.f32.mxu0 %vm532_vm1, %v8479_v38  ;;  %v8608_v38 = vld [vmem:[%s10850_s12 + $0x172] sm:$0xff]  ;;  %v8643_v41 = vld [vmem:[%s10855_s15 + $0x19a] sm:$0xff] }
 0x210   : > { %10109 = vmatprep.mubr.msk.f32.mxu1 %vm532_vm1, %v8511_v39  ;;  %v8640_v39 = vld [vmem:[%s10855_s15 + $0x172] sm:$0xff] }
 0x212   : > { %10060 = vmatmul.mubr.msk.f32.gmra.mrb[30].mxu0 %vm532_vm1, %v8480_v42  ;;  %v8612_v42 = vld [vmem:[%s10850_s12 + $0x1a2] sm:$0xff]  ;;  %s12711_s12 = scalar_lea.vmem %s12827_s5, %s8716_s8 }
 0x213   : > { %10110 = vmatmul.mubr.msk.f32.gmra.mrb[30].mxu1 %vm532_vm1, %v8512_v43  ;;  %10114 = vmatprep.mubr.msk.f32.mxu0 %vm532_vm1, %v8581_v44  ;;  %v8644_v43 = vld [vmem:[%s10855_s15 + $0x1a2] sm:$0xff] }
 0x214   : > { %10164 = vmatprep.mubr.msk.f32.mxu1 %vm532_vm1, %v8613_v45 }
 0x216   : > { %10115 = vmatmul.mubr.msk.f32.vlgmr.msra.gmra.mrb[0].mxu0 %vm532_vm1, %v8582_v46 }
 0x217   : > { %10165 = vmatmul.mubr.msk.f32.vlgmr.msra.gmra.mrb[0].mxu1 %vm532_vm1, %v8614_v47  ;;  %10117 = vmatprep.mubr.msk.f32.mxu0 %vm532_vm1, %v8583_v48 }
 0x218   : > { %10167 = vmatprep.mubr.msk.f32.mxu1 %vm532_vm1, %v8615_v49 }
 0x21a   : > { %10118 = vmatmul.mubr.msk.f32.gmra.mrb[2].mxu0 %vm532_vm1, %v8584_v50 }
 0x21b   : > { %10168 = vmatmul.mubr.msk.f32.gmra.mrb[2].mxu1 %vm532_vm1, %v8616_v51  ;;  %10120 = vmatprep.mubr.msk.f32.mxu0 %vm532_vm1, %v8585_v52 }
 0x21c   : > { %10170 = vmatprep.mubr.msk.f32.mxu1 %vm532_vm1, %v8617_v53 }
 0x21e   : > { %10121 = vmatmul.mubr.msk.f32.gmra.mrb[4].mxu0 %vm532_vm1, %v8586_v54 }
 0x21f   : > { %10171 = vmatmul.mubr.msk.f32.gmra.mrb[4].mxu1 %vm532_vm1, %v8618_v55  ;;  %10123 = vmatprep.mubr.msk.f32.mxu0 %vm532_vm1, %v8587_v56 }
 0x220   : > { %10173 = vmatprep.mubr.msk.f32.mxu1 %vm532_vm1, %v8619_v57 }
 0x222   : > { %10124 = vmatmul.mubr.msk.f32.gmra.mrb[6].mxu0 %vm532_vm1, %v8588_v58 }
 0x223   : > { %10174 = vmatmul.mubr.msk.f32.gmra.mrb[6].mxu1 %vm532_vm1, %v8620_v59  ;;  %10126 = vmatprep.mubr.msk.f32.mxu0 %vm532_vm1, %v8589_v60 }
 0x224   : > { %10176 = vmatprep.mubr.msk.f32.mxu1 %vm532_vm1, %v8621_v61 }
 0x226   : > { %10127 = vmatmul.mubr.msk.f32.gmra.mrb[8].mxu0 %vm532_vm1, %v8590_v62 }
 0x227   : > { %10177 = vmatmul.mubr.msk.f32.gmra.mrb[8].mxu1 %vm532_vm1, %v8622_v63  ;;  %10129 = vmatprep.mubr.msk.f32.mxu0 %vm532_vm1, %v8591_v0 }
 0x228   : > { %10179 = vmatprep.mubr.msk.f32.mxu1 %vm532_vm1, %v8623_v1 }
 0x22a   : > { %10130 = vmatmul.mubr.msk.f32.gmra.mrb[10].mxu0 %vm532_vm1, %v8592_v3 }
 0x22b   : > { %10180 = vmatmul.mubr.msk.f32.gmra.mrb[10].mxu1 %vm532_vm1, %v8624_v7  ;;  %10132 = vmatprep.mubr.msk.f32.mxu0 %vm532_vm1, %v8593_v8 }
 0x22c   : > { %10182 = vmatprep.mubr.msk.f32.mxu1 %vm532_vm1, %v8625_v9 }
 0x22e   : > { %10133 = vmatmul.mubr.msk.f32.gmra.mrb[12].mxu0 %vm532_vm1, %v8594_v12 }
 0x22f   : > { %10183 = vmatmul.mubr.msk.f32.gmra.mrb[12].mxu1 %vm532_vm1, %v8626_v13  ;;  %10135 = vmatprep.mubr.msk.f32.mxu0 %vm532_vm1, %v8595_v11 }
 0x230   : > { %10185 = vmatprep.mubr.msk.f32.mxu1 %vm532_vm1, %v8627_v10 }
 0x232   : > { %10136 = vmatmul.mubr.msk.f32.gmra.mrb[14].mxu0 %vm532_vm1, %v8596_v17 }
 0x233   : > { %10186 = vmatmul.mubr.msk.f32.gmra.mrb[14].mxu1 %vm532_vm1, %v8628_v25  ;;  %10138 = vmatprep.mubr.msk.f32.mxu0 %vm532_vm1, %v8597_v6 }
 0x234   : > { %10188 = vmatprep.mubr.msk.f32.mxu1 %vm532_vm1, %v8629_v23 }
 0x236   : > { %10139 = vmatmul.mubr.msk.f32.gmra.mrb[16].mxu0 %vm532_vm1, %v8598_v28 }
 0x237   : > { %10189 = vmatmul.mubr.msk.f32.gmra.mrb[16].mxu1 %vm532_vm1, %v8630_v29  ;;  %10141 = vmatprep.mubr.msk.f32.mxu0 %vm532_vm1, %v8599_v4 }
 0x238   : > { %10191 = vmatprep.mubr.msk.f32.mxu1 %vm532_vm1, %v8631_v14 }
 0x23a   : > { %10142 = vmatmul.mubr.msk.f32.gmra.mrb[18].mxu0 %vm532_vm1, %v8600_v24 }
 0x23b   : > { %10192 = vmatmul.mubr.msk.f32.gmra.mrb[18].mxu1 %vm532_vm1, %v8632_v22  ;;  %10144 = vmatprep.mubr.msk.f32.mxu0 %vm532_vm1, %v8601_v18 }
 0x23c   : > { %10194 = vmatprep.mubr.msk.f32.mxu1 %vm532_vm1, %v8633_v19 }
 0x23e   : > { %10145 = vmatmul.mubr.msk.f32.gmra.mrb[20].mxu0 %vm532_vm1, %v8602_v20 }
 0x23f   : > { %10195 = vmatmul.mubr.msk.f32.gmra.mrb[20].mxu1 %vm532_vm1, %v8634_v21  ;;  %10147 = vmatprep.mubr.msk.f32.mxu0 %vm532_vm1, %v8603_v26 }
 0x240   : > { %10197 = vmatprep.mubr.msk.f32.mxu1 %vm532_vm1, %v8635_v27 }
 0x242   : > { %10148 = vmatmul.mubr.msk.f32.gmra.mrb[22].mxu0 %vm532_vm1, %v8604_v30 }
 0x243   : > { %10198 = vmatmul.mubr.msk.f32.gmra.mrb[22].mxu1 %vm532_vm1, %v8636_v31  ;;  %10150 = vmatprep.mubr.msk.f32.mxu0 %vm532_vm1, %v8605_v32 }
 0x244   : > { %10200 = vmatprep.mubr.msk.f32.mxu1 %vm532_vm1, %v8637_v33 }
 0x246   : > { %10151 = vmatmul.mubr.msk.f32.gmra.mrb[24].mxu0 %vm532_vm1, %v8606_v34 }
 0x247   : > { %10201 = vmatmul.mubr.msk.f32.gmra.mrb[24].mxu1 %vm532_vm1, %v8638_v35  ;;  %10153 = vmatprep.mubr.msk.f32.mxu0 %vm532_vm1, %v8607_v36 }
 0x248   : > { %10203 = vmatprep.mubr.msk.f32.mxu1 %vm532_vm1, %v8639_v37 }
 0x24a   : > { %10154 = vmatmul.mubr.msk.f32.gmra.mrb[26].mxu0 %vm532_vm1, %v8608_v38 }
 0x24b   : > { %10204 = vmatmul.mubr.msk.f32.gmra.mrb[26].mxu1 %vm532_vm1, %v8640_v39  ;;  %10156 = vmatprep.mubr.msk.f32.mxu0 %vm532_vm1, %v12272_v5  ;;  %v12704_v5 = vld [vmem:[%s12826_s4] ss:$0 sm:$0xff] }
 0x24c   : > { %10206 = vmatprep.mubr.msk.f32.mxu1 %vm532_vm1, %v12275_v16 }
 0x24e   : > { %10157 = vmatmul.mubr.msk.f32.gmra.mrb[28].mxu0 %vm532_vm1, %v12286_v2 }
 0x24f   : > { %10207 = vmatmul.mubr.msk.f32.gmra.mrb[28].mxu1 %vm532_vm1, %v12289_v15  ;;  %10159 = vmatprep.mubr.msk.f32.mxu0 %vm532_vm1, %v8611_v40 }
 0x250   : > { %10209 = vmatprep.mubr.msk.f32.mxu1 %vm532_vm1, %v8643_v41 }
 0x252   : > { %10160 = vmatmul.mubr.msk.f32.gmra.mrb[30].mxu0 %vm532_vm1, %v8612_v42 }
 0x253   : > { %10210 = vmatmul.mubr.msk.f32.gmra.mrb[30].mxu1 %vm532_vm1, %v8644_v43 }
 0x2e9   : > { %v10116_v16 = vpop.f32.mrb[0].mxu0 }
 0x2ea   : > { %v10166_v2 = vpop.f32.mrb[0].mxu1  ;;  %v7306_v15 = vadd.f32 %v10116_v16, %v12704_v5  ;;  %v6751_v44 = vpop.f32.mrb[1].mxu0 }
 0x2eb   : > { %v7107_v45 = vpop.f32.mrb[1].mxu1  ;;  %v7305_v46 = vadd.f32 %v12704_v5, %v6751_v44 }
 0x2ec   : > { %v7338_v47 = vsub.f32 %v7306_v15, %v10166_v2  ;;  %v7402_v48 = vadd.f32 %v10166_v2, %v7306_v15 }
 0x2ed   : > { %v7337_v49 = vsub.f32 %v7305_v46, %v7107_v45  ;;  %v7401_v50 = vadd.f32 %v7305_v46, %v7107_v45  ;;  %v10119_v51 = vpop.f32.mrb[2].mxu0 }
 0x2ee   : > { %v10169_v52 = vpop.f32.mrb[2].mxu1  ;;  %7370 = vst [vmem:[%s12711_s12 + $0x8] sm:$0xff] %v7338_v47  ;;  %7434 = vst [vmem:[%s12716_s13 + $0x8] sm:$0xff] %v7402_v48  ;;  %v7308_v53 = vadd.f32 %v10119_v51, %v12704_v5  ;;  %v6761_v54 = vpop.f32.mrb[3].mxu0 }
 0x2ef   : > { %v7117_v55 = vpop.f32.mrb[3].mxu1  ;;  %7369 = vst [vmem:[%s12711_s12] sm:$0xff] %v7337_v49  ;;  %7433 = vst [vmem:[%s12716_s13] sm:$0xff] %v7401_v50  ;;  %v7307_v56 = vadd.f32 %v12704_v5, %v6761_v54 }
 0x2f0   : > { %v7340_v57 = vsub.f32 %v7308_v53, %v10169_v52  ;;  %v7404_v58 = vadd.f32 %v10169_v52, %v7308_v53 }
 0x2f1   : > { %v7339_v59 = vsub.f32 %v7307_v56, %v7117_v55  ;;  %v7403_v60 = vadd.f32 %v7307_v56, %v7117_v55  ;;  %v10122_v61 = vpop.f32.mrb[4].mxu0 }
 0x2f2   : > { %v10172_v62 = vpop.f32.mrb[4].mxu1  ;;  %7372 = vst [vmem:[%s12711_s12 + $0x18] sm:$0xff] %v7340_v57  ;;  %7436 = vst [vmem:[%s12716_s13 + $0x18] sm:$0xff] %v7404_v58  ;;  %v7310_v63 = vadd.f32 %v10122_v61, %v12704_v5  ;;  %v6771_v0 = vpop.f32.mrb[5].mxu0 }
 0x2f3   : > { %v7127_v1 = vpop.f32.mrb[5].mxu1  ;;  %7371 = vst [vmem:[%s12711_s12 + $0x10] sm:$0xff] %v7339_v59  ;;  %7435 = vst [vmem:[%s12716_s13 + $0x10] sm:$0xff] %v7403_v60  ;;  %v7309_v3 = vadd.f32 %v12704_v5, %v6771_v0 }
 0x2f4   : > { %v7342_v7 = vsub.f32 %v7310_v63, %v10172_v62  ;;  %v7406_v8 = vadd.f32 %v10172_v62, %v7310_v63 }
 0x2f5   : > { %v7341_v9 = vsub.f32 %v7309_v3, %v7127_v1  ;;  %v7405_v12 = vadd.f32 %v7309_v3, %v7127_v1  ;;  %v10125_v13 = vpop.f32.mrb[6].mxu0 }
 0x2f6   : > { %v10175_v11 = vpop.f32.mrb[6].mxu1  ;;  %7374 = vst [vmem:[%s12711_s12 + $0x28] sm:$0xff] %v7342_v7  ;;  %7438 = vst [vmem:[%s12716_s13 + $0x28] sm:$0xff] %v7406_v8  ;;  %v7312_v10 = vadd.f32 %v10125_v13, %v12704_v5  ;;  %v6781_v17 = vpop.f32.mrb[7].mxu0 }
 0x2f7   : > { %v7137_v25 = vpop.f32.mrb[7].mxu1  ;;  %7373 = vst [vmem:[%s12711_s12 + $0x20] sm:$0xff] %v7341_v9  ;;  %7437 = vst [vmem:[%s12716_s13 + $0x20] sm:$0xff] %v7405_v12  ;;  %v7311_v6 = vadd.f32 %v12704_v5, %v6781_v17 }
 0x2f8   : > { %v7344_v23 = vsub.f32 %v7312_v10, %v10175_v11  ;;  %v7408_v28 = vadd.f32 %v10175_v11, %v7312_v10 }
 0x2f9   : > { %v7343_v29 = vsub.f32 %v7311_v6, %v7137_v25  ;;  %v7407_v4 = vadd.f32 %v7311_v6, %v7137_v25  ;;  %v10128_v14 = vpop.f32.mrb[8].mxu0 }
 0x2fa   : > { %v10178_v24 = vpop.f32.mrb[8].mxu1  ;;  %7376 = vst [vmem:[%s12711_s12 + $0x38] sm:$0xff] %v7344_v23  ;;  %7440 = vst [vmem:[%s12716_s13 + $0x38] sm:$0xff] %v7408_v28  ;;  %v7314_v22 = vadd.f32 %v10128_v14, %v12704_v5  ;;  %v6791_v18 = vpop.f32.mrb[9].mxu0 }
 0x2fb   : > { %v7147_v19 = vpop.f32.mrb[9].mxu1  ;;  %7375 = vst [vmem:[%s12711_s12 + $0x30] sm:$0xff] %v7343_v29  ;;  %7439 = vst [vmem:[%s12716_s13 + $0x30] sm:$0xff] %v7407_v4  ;;  %v7313_v20 = vadd.f32 %v12704_v5, %v6791_v18 }
 0x2fc   : > { %v7346_v21 = vsub.f32 %v7314_v22, %v10178_v24  ;;  %v7410_v26 = vadd.f32 %v10178_v24, %v7314_v22 }
 0x2fd   : > { %v7345_v27 = vsub.f32 %v7313_v20, %v7147_v19  ;;  %v7409_v30 = vadd.f32 %v7313_v20, %v7147_v19  ;;  %v10131_v31 = vpop.f32.mrb[10].mxu0 }
 0x2fe   : > { %v10181_v32 = vpop.f32.mrb[10].mxu1  ;;  %7378 = vst [vmem:[%s12711_s12 + $0x48] sm:$0xff] %v7346_v21  ;;  %7442 = vst [vmem:[%s12716_s13 + $0x48] sm:$0xff] %v7410_v26  ;;  %v7316_v33 = vadd.f32 %v10131_v31, %v12704_v5  ;;  %v6801_v34 = vpop.f32.mrb[11].mxu0 }
 0x2ff   : > { %v7157_v35 = vpop.f32.mrb[11].mxu1  ;;  %7377 = vst [vmem:[%s12711_s12 + $0x40] sm:$0xff] %v7345_v27  ;;  %7441 = vst [vmem:[%s12716_s13 + $0x40] sm:$0xff] %v7409_v30  ;;  %v7315_v36 = vadd.f32 %v12704_v5, %v6801_v34 }
 0x300   : > { %v7348_v37 = vsub.f32 %v7316_v33, %v10181_v32  ;;  %v7412_v38 = vadd.f32 %v10181_v32, %v7316_v33 }
 0x301   : > { %v7347_v39 = vsub.f32 %v7315_v36, %v7157_v35  ;;  %v7411_v40 = vadd.f32 %v7315_v36, %v7157_v35  ;;  %v10134_v41 = vpop.f32.mrb[12].mxu0 }
 0x302   : > { %v10184_v42 = vpop.f32.mrb[12].mxu1  ;;  %7380 = vst [vmem:[%s12711_s12 + $0x58] sm:$0xff] %v7348_v37  ;;  %7444 = vst [vmem:[%s12716_s13 + $0x58] sm:$0xff] %v7412_v38  ;;  %v7318_v43 = vadd.f32 %v10134_v41, %v12704_v5  ;;  %v6811_v16 = vpop.f32.mrb[13].mxu0 }
 0x303   : > { %v7167_v2 = vpop.f32.mrb[13].mxu1  ;;  %7379 = vst [vmem:[%s12711_s12 + $0x50] sm:$0xff] %v7347_v39  ;;  %7443 = vst [vmem:[%s12716_s13 + $0x50] sm:$0xff] %v7411_v40  ;;  %v7317_v15 = vadd.f32 %v12704_v5, %v6811_v16 }
 0x304   : > { %v7350_v44 = vsub.f32 %v7318_v43, %v10184_v42  ;;  %v7414_v45 = vadd.f32 %v10184_v42, %v7318_v43 }
 0x305   : > { %v7349_v46 = vsub.f32 %v7317_v15, %v7167_v2  ;;  %v7413_v47 = vadd.f32 %v7317_v15, %v7167_v2  ;;  %v10137_v48 = vpop.f32.mrb[14].mxu0 }
 0x306   : > { %v10187_v49 = vpop.f32.mrb[14].mxu1  ;;  %7382 = vst [vmem:[%s12711_s12 + $0x68] sm:$0xff] %v7350_v44  ;;  %7446 = vst [vmem:[%s12716_s13 + $0x68] sm:$0xff] %v7414_v45  ;;  %v7320_v50 = vadd.f32 %v10137_v48, %v12704_v5  ;;  %v6821_v51 = vpop.f32.mrb[15].mxu0 }
 0x307   : > { %v7177_v52 = vpop.f32.mrb[15].mxu1  ;;  %7381 = vst [vmem:[%s12711_s12 + $0x60] sm:$0xff] %v7349_v46  ;;  %7445 = vst [vmem:[%s12716_s13 + $0x60] sm:$0xff] %v7413_v47  ;;  %v7319_v53 = vadd.f32 %v12704_v5, %v6821_v51 }
 0x308   : > { %v7352_v54 = vsub.f32 %v7320_v50, %v10187_v49  ;;  %v7416_v55 = vadd.f32 %v10187_v49, %v7320_v50 }
 0x309   : > { %v7351_v56 = vsub.f32 %v7319_v53, %v7177_v52  ;;  %v7415_v57 = vadd.f32 %v7319_v53, %v7177_v52  ;;  %v10140_v58 = vpop.f32.mrb[16].mxu0 }
 0x30a   : > { %v10190_v59 = vpop.f32.mrb[16].mxu1  ;;  %7384 = vst [vmem:[%s12711_s12 + $0x78] sm:$0xff] %v7352_v54  ;;  %7448 = vst [vmem:[%s12716_s13 + $0x78] sm:$0xff] %v7416_v55  ;;  %v7322_v60 = vadd.f32 %v10140_v58, %v12704_v5  ;;  %v6831_v61 = vpop.f32.mrb[17].mxu0 }
 0x30b   : > { %v7187_v62 = vpop.f32.mrb[17].mxu1  ;;  %7383 = vst [vmem:[%s12711_s12 + $0x70] sm:$0xff] %v7351_v56  ;;  %7447 = vst [vmem:[%s12716_s13 + $0x70] sm:$0xff] %v7415_v57  ;;  %v7321_v63 = vadd.f32 %v12704_v5, %v6831_v61 }
 0x30c   : > { %v7354_v0 = vsub.f32 %v7322_v60, %v10190_v59  ;;  %v7418_v1 = vadd.f32 %v10190_v59, %v7322_v60 }
 0x30d   : > { %v7353_v3 = vsub.f32 %v7321_v63, %v7187_v62  ;;  %v7417_v7 = vadd.f32 %v7321_v63, %v7187_v62  ;;  %v10143_v8 = vpop.f32.mrb[18].mxu0 }
 0x30e   : > { %v10193_v9 = vpop.f32.mrb[18].mxu1  ;;  %7386 = vst [vmem:[%s12711_s12 + $0x88] sm:$0xff] %v7354_v0  ;;  %7450 = vst [vmem:[%s12716_s13 + $0x88] sm:$0xff] %v7418_v1  ;;  %v7324_v12 = vadd.f32 %v10143_v8, %v12704_v5  ;;  %v6841_v13 = vpop.f32.mrb[19].mxu0 }
 0x30f   : > { %v7197_v11 = vpop.f32.mrb[19].mxu1  ;;  %7385 = vst [vmem:[%s12711_s12 + $0x80] sm:$0xff] %v7353_v3  ;;  %7449 = vst [vmem:[%s12716_s13 + $0x80] sm:$0xff] %v7417_v7  ;;  %v7323_v10 = vadd.f32 %v12704_v5, %v6841_v13 }
 0x310   : > { %v7356_v17 = vsub.f32 %v7324_v12, %v10193_v9  ;;  %v7420_v25 = vadd.f32 %v10193_v9, %v7324_v12 }
 0x311   : > { %v7355_v6 = vsub.f32 %v7323_v10, %v7197_v11  ;;  %v7419_v23 = vadd.f32 %v7323_v10, %v7197_v11  ;;  %v10146_v28 = vpop.f32.mrb[20].mxu0 }
 0x312   : > { %v10196_v29 = vpop.f32.mrb[20].mxu1  ;;  %7388 = vst [vmem:[%s12711_s12 + $0x98] sm:$0xff] %v7356_v17  ;;  %7452 = vst [vmem:[%s12716_s13 + $0x98] sm:$0xff] %v7420_v25  ;;  %v7326_v4 = vadd.f32 %v10146_v28, %v12704_v5  ;;  %v6851_v14 = vpop.f32.mrb[21].mxu0 }
 0x313   : > { %v7207_v24 = vpop.f32.mrb[21].mxu1  ;;  %7387 = vst [vmem:[%s12711_s12 + $0x90] sm:$0xff] %v7355_v6  ;;  %7451 = vst [vmem:[%s12716_s13 + $0x90] sm:$0xff] %v7419_v23  ;;  %v7325_v22 = vadd.f32 %v12704_v5, %v6851_v14 }
 0x314   : > { %v7358_v18 = vsub.f32 %v7326_v4, %v10196_v29  ;;  %v7422_v19 = vadd.f32 %v10196_v29, %v7326_v4 }
 0x315   : > { %v7357_v20 = vsub.f32 %v7325_v22, %v7207_v24  ;;  %v7421_v21 = vadd.f32 %v7325_v22, %v7207_v24  ;;  %v10149_v26 = vpop.f32.mrb[22].mxu0 }
 0x316   : > { %v10199_v27 = vpop.f32.mrb[22].mxu1  ;;  %7390 = vst [vmem:[%s12711_s12 + $0xa8] sm:$0xff] %v7358_v18  ;;  %7454 = vst [vmem:[%s12716_s13 + $0xa8] sm:$0xff] %v7422_v19  ;;  %v7328_v30 = vadd.f32 %v10149_v26, %v12704_v5  ;;  %v6861_v31 = vpop.f32.mrb[23].mxu0 }
 0x317   : > { %v7217_v32 = vpop.f32.mrb[23].mxu1  ;;  %7389 = vst [vmem:[%s12711_s12 + $0xa0] sm:$0xff] %v7357_v20  ;;  %7453 = vst [vmem:[%s12716_s13 + $0xa0] sm:$0xff] %v7421_v21  ;;  %v7327_v33 = vadd.f32 %v12704_v5, %v6861_v31 }
 0x318   : > { %v7360_v34 = vsub.f32 %v7328_v30, %v10199_v27  ;;  %v7424_v35 = vadd.f32 %v10199_v27, %v7328_v30 }
 0x319   : > { %v7359_v36 = vsub.f32 %v7327_v33, %v7217_v32  ;;  %v7423_v37 = vadd.f32 %v7327_v33, %v7217_v32  ;;  %v10152_v38 = vpop.f32.mrb[24].mxu0 }
 0x31a   : > { %v10202_v39 = vpop.f32.mrb[24].mxu1  ;;  %7392 = vst [vmem:[%s12711_s12 + $0xb8] sm:$0xff] %v7360_v34  ;;  %7456 = vst [vmem:[%s12716_s13 + $0xb8] sm:$0xff] %v7424_v35  ;;  %v7330_v40 = vadd.f32 %v10152_v38, %v12704_v5  ;;  %v6871_v41 = vpop.f32.mrb[25].mxu0 }
 0x31b   : > { %v7227_v42 = vpop.f32.mrb[25].mxu1  ;;  %7391 = vst [vmem:[%s12711_s12 + $0xb0] sm:$0xff] %v7359_v36  ;;  %7455 = vst [vmem:[%s12716_s13 + $0xb0] sm:$0xff] %v7423_v37  ;;  %v7329_v43 = vadd.f32 %v12704_v5, %v6871_v41 }
 0x31c   : > { %v7362_v16 = vsub.f32 %v7330_v40, %v10202_v39  ;;  %v7426_v2 = vadd.f32 %v10202_v39, %v7330_v40 }
 0x31d   : > { %v7361_v15 = vsub.f32 %v7329_v43, %v7227_v42  ;;  %v7425_v44 = vadd.f32 %v7329_v43, %v7227_v42  ;;  %v10155_v45 = vpop.f32.mrb[26].mxu0 }
 0x31e   : > { %v10205_v46 = vpop.f32.mrb[26].mxu1  ;;  %7394 = vst [vmem:[%s12711_s12 + $0xc8] sm:$0xff] %v7362_v16  ;;  %7458 = vst [vmem:[%s12716_s13 + $0xc8] sm:$0xff] %v7426_v2  ;;  %v7332_v47 = vadd.f32 %v10155_v45, %v12704_v5  ;;  %v6881_v48 = vpop.f32.mrb[27].mxu0 }
 0x31f   : > { %v7237_v49 = vpop.f32.mrb[27].mxu1  ;;  %7393 = vst [vmem:[%s12711_s12 + $0xc0] sm:$0xff] %v7361_v15  ;;  %7457 = vst [vmem:[%s12716_s13 + $0xc0] sm:$0xff] %v7425_v44  ;;  %v7331_v50 = vadd.f32 %v12704_v5, %v6881_v48 }
 0x320   : > { %v7364_v51 = vsub.f32 %v7332_v47, %v10205_v46  ;;  %v7428_v52 = vadd.f32 %v10205_v46, %v7332_v47 }
 0x321   : > { %v7363_v53 = vsub.f32 %v7331_v50, %v7237_v49  ;;  %v7427_v54 = vadd.f32 %v7331_v50, %v7237_v49  ;;  %v10158_v55 = vpop.f32.mrb[28].mxu0 }
 0x322   : > { %v10208_v56 = vpop.f32.mrb[28].mxu1  ;;  %7396 = vst [vmem:[%s12711_s12 + $0xd8] sm:$0xff] %v7364_v51  ;;  %7460 = vst [vmem:[%s12716_s13 + $0xd8] sm:$0xff] %v7428_v52  ;;  %v7334_v57 = vadd.f32 %v10158_v55, %v12704_v5  ;;  %v6891_v58 = vpop.f32.mrb[29].mxu0 }
 0x323   : > { %v7247_v59 = vpop.f32.mrb[29].mxu1  ;;  %7395 = vst [vmem:[%s12711_s12 + $0xd0] sm:$0xff] %v7363_v53  ;;  %7459 = vst [vmem:[%s12716_s13 + $0xd0] sm:$0xff] %v7427_v54  ;;  %v7333_v60 = vadd.f32 %v12704_v5, %v6891_v58 }
 0x324   : > { %v7366_v61 = vsub.f32 %v7334_v57, %v10208_v56  ;;  %v7430_v62 = vadd.f32 %v10208_v56, %v7334_v57 }
 0x325   : > { %v7365_v63 = vsub.f32 %v7333_v60, %v7247_v59  ;;  %v7429_v0 = vadd.f32 %v7333_v60, %v7247_v59  ;;  %v10161_v1 = vpop.f32.mrb[30].mxu0 }
 0x326   : > { %v10211_v3 = vpop.f32.mrb[30].mxu1  ;;  %7398 = vst [vmem:[%s12711_s12 + $0xe8] sm:$0xff] %v7366_v61  ;;  %7462 = vst [vmem:[%s12716_s13 + $0xe8] sm:$0xff] %v7430_v62  ;;  %v7336_v7 = vadd.f32 %v10161_v1, %v12704_v5  ;;  %v6901_v8 = vpop.f32.mrb[31].mxu0 }
 0x327   : > { %v7257_v9 = vpop.f32.mrb[31].mxu1  ;;  %7397 = vst [vmem:[%s12711_s12 + $0xe0] sm:$0xff] %v7365_v63  ;;  %7461 = vst [vmem:[%s12716_s13 + $0xe0] sm:$0xff] %v7429_v0  ;;  %v7335_v12 = vadd.f32 %v12704_v5, %v6901_v8 }
 0x328   : > { %v7368_v13 = vsub.f32 %v7336_v7, %v10211_v3  ;;  %v7432_v11 = vadd.f32 %v10211_v3, %v7336_v7 }
 0x329   : > { %v7367_v10 = vsub.f32 %v7335_v12, %v7257_v9  ;;  %v7431_v17 = vadd.f32 %v7335_v12, %v7257_v9 }
 0x32a   : > { %7400 = vst [vmem:[%s12711_s12 + $0xf8] sm:$0xff] %v7368_v13  ;;  %7464 = vst [vmem:[%s12716_s13 + $0xf8] sm:$0xff] %v7432_v11 }
 0x32b   : > { %7399 = vst [vmem:[%s12711_s12 + $0xf0] sm:$0xff] %v7367_v10  ;;  %7463 = vst [vmem:[%s12716_s13 + $0xf0] sm:$0xff] %v7431_v17 }
 0x32c PF: > { %s17_s23 = sadd.s32 1, %s10771_s23   ;;  %s13057_s21 = smov %s10767_s22 }
 0x32d   : > { %p14_p5 = scmp.ge.s32.totalorder %s17_s23, 4   ;;  %s13058_s22 = smov %s13060_s24 }
 0x32f   :  { %16 = sbr.rel (!%p14_p5) target bundleno = 2 (0x2), region = 116 }

</bundles_post_ra>
